<compile_context>
chip_gen: v6e
topology: v6e:2x2x1
jax: 0.10.0
libtpu: 0.0.40
codegen_flags: <defaults>
</compile_context>

<pallas_src>
import numpy as np
import jax
import jax.numpy as jnp
from jax import lax
from jax.experimental import pallas as pl
from jax.experimental.pallas import tpu as pltpu

NUM_CLASSES = 5
L_IN = 386          # forced by the architecture: flatten(8*6)=48, +4 feature = 52 = Linear(52, N)
EPS = 1e-5

T = 16              # per-sample lane segment per polyphase row (valid data <= 13)
EXTRA = 16          # one ghost segment of zeros so shifted im2col slices stay in bounds
PH_X = 32           # phase count of the raw input (= conv1 stride * 16)
P4L = 6             # pool4 output length per sample (flatten -> 8*6 = 48)

# (Q_in, stride, q_out) per conv stage; the following AvgPool(2) halves the phase count.
_STAGES = ((32, 2, 16), (8, 1, 8), (4, 1, 4), (2, 1, 2))


# --------------------------------------------------------------------------------------
# host-side parameter packing
# --------------------------------------------------------------------------------------
def _fold_bn(w, b, g, be, m, v):
    """Fold BatchNorm (running stats) into the *following* conv's weights/bias."""
    s = g / np.sqrt(v + EPS)
    t = be - m * s
    return w * s[None, :, None], b + np.sum(w * t[None, :, None], axis=(1, 2))


def _poly_pack(w, b, q_in, stride, q_out):
    """Pack a Conv1d into a polyphase matmul whose output pairs phases for AvgPool(2).

    Input signal rows : cin * q_in + phase                      (canonical layout)
    im2col rows       : d * (Cin*q_in) + cin * q_in + phase     (d = lane shift 0..D-1)
    Output rows       : parity * (Cout*q_out//2) + cout*(q_out//2) + rp,
                        holding output phase r = 2*rp + parity, so that the following
                        AvgPool(2) is just 0.5 * (top half + bottom half).
    """
    cout, cin, ksz = w.shape
    q_half = q_out // 2
    d_max = (stride * (q_out - 1) + ksz - 1) // q_in + 1
    r_in = cin * q_in
    wp = np.zeros((cout * q_out, d_max * r_in), np.float32)
    bp = np.zeros((cout * q_out, 1), np.float32)
    cin_idx = np.arange(cin) * q_in
    for parity in range(2):
        for co in range(cout):
            for rp in range(q_half):
                r = 2 * rp + parity
                row = parity * (cout * q_half) + co * q_half + rp
                bp[row, 0] = b[co]
                for kk in range(ksz):
                    d, c = divmod(r * stride + kk, q_in)
                    wp[row, d * r_in + cin_idx + c] = w[co, :, kk]
    return wp, bp, d_max


def _prepare_constants(params):
    (w1, b1, w2, b2, w3, b3, w4, b4,
     g1, be1, m1, v1, g2, be2, m2, v2, g3, be3, m3, v3,
     fw1, fb1, ow, ob) = [np.asarray(p, np.float32) for p in params]

    w2f, b2f = _fold_bn(w2, b2, g1, be1, m1, v1)   # bn1 folded into conv2
    w3f, b3f = _fold_bn(w3, b3, g2, be2, m2, v2)   # bn2 folded into conv3
    w4f, b4f = _fold_bn(w4, b4, g3, be3, m3, v3)   # bn3 folded into conv4

    packed, shifts = [], []
    for (wc, bc), (q_in, s, q_out) in zip(
            ((w1, b1), (w2f, b2f), (w3f, b3f), (w4f, b4f)), _STAGES):
        wp, bp, d = _poly_pack(wc, bc, q_in, s, q_out)
        packed += [wp, bp]
        shifts.append(d)

    # head weight reorder: in-kernel (48, N) im2col row is i*8 + cout,
    # PyTorch flatten column is cout*6 + i.
    ow_x = ow[:, :8 * P4L].reshape(NUM_CLASSES, 8, P4L)
    ow_x = ow_x.transpose(0, 2, 1).reshape(NUM_CLASSES, 8 * P4L)
    ow_p = np.concatenate([ow_x, ow[:, 8 * P4L:]], axis=1)
    packed += [fw1, fb1.reshape(-1, 1), ow_p, ob.reshape(-1, 1)]
    return packed, tuple(shifts)


# --------------------------------------------------------------------------------------
# kernel
# --------------------------------------------------------------------------------------
def _make_kernel(bb, shifts):
    def kernel(x_ref, feat_ref, w1_ref, b1_ref, w2_ref, b2_ref, w3_ref, b3_ref,
               w4_ref, b4_ref, sout_ref, fw1_ref, fb1_ref, ow_ref, ob_ref, out_ref):
        f32 = jnp.float32

        def conv_relu_pool(u, w_ref, b_ref, nshift):
            # polyphase conv = ONE wide MXU contraction; AvgPool(2) = top/bottom row add
            n = u.shape[1] - (nshift - 1)
            cols = jnp.concatenate([u[:, d:d + n] for d in range(nshift)], axis=0)
            h = jnp.dot(w_ref[...], cols, preferred_element_type=f32) + b_ref[...]
            h = jnp.maximum(h, 0.0)
            half = h.shape[0] // 2
            return 0.5 * (h[:half] + h[half:])

        u = x_ref[0]                                        # (32, .)  raw input, 32 phases
        u = conv_relu_pool(u, w1_ref, b1_ref, shifts[0])    # (128, .) pool1: 16 ch x 8 ph
        u = conv_relu_pool(u, w2_ref, b2_ref, shifts[1])    # (128, .) pool2: 32 ch x 4 ph
        u = conv_relu_pool(u, w3_ref, b3_ref, shifts[2])    # (32,  .) pool3: 16 ch x 2 ph
        p4 = conv_relu_pool(u, w4_ref, b4_ref, shifts[3])   # (8,   .) pool4:  8 ch x 1 ph

        # head: pool4 + flatten + output_dense1 collapsed into im2col + two matmuls
        ng = p4.shape[1] - (P4L - 1)
        pcols = jnp.concatenate([p4[:, i:i + ng] for i in range(P4L)], axis=0)   # (48, ng)
        g = jnp.dot(pcols, sout_ref[...], preferred_element_type=f32)            # (48, bb)

        f = jnp.maximum(jnp.dot(fw1_ref[...], feat_ref[0], preferred_element_type=f32)
                        + fb1_ref[...], 0.0)                                      # (4, bb)

        comb = jnp.concatenate([g, f], axis=0)                                    # (52, bb)
        out_ref[0] = jnp.dot(ow_ref[...], comb, preferred_element_type=f32) + ob_ref[...]

    return kernel


# --------------------------------------------------------------------------------------
# wrapper
# --------------------------------------------------------------------------------------
def _pick_bb(batch):
    """Generation-aware batch-block size.

    * one grid step whenever the whole batch fits (v5e/v6e have a single TensorCore);
    * on v7x split into >=2 steps only when there is enough work per step;
    * rounded so the packed lane width (bb+1)*16 is a whole multiple of 128.
    """
    try:
        two_tc = "v7" in jax.devices()[0].device_kind.lower()
    except Exception:
        two_tc = False
    target = batch
    if two_tc and batch >= 32:
        target = -(-batch // 2)
    target = min(target, 63)
    return ((target + 1 + 7) // 8) * 8 - 1      # smallest bb >= target with (bb+1) % 8 == 0


def hybrid_cnn_forward(x, feature, params, *, block_batch=None):
    batch = x.shape[0]
    bb = block_batch if block_batch is not None else _pick_bb(batch)
    nb = -(-batch // bb)
    bp = nb * bb
    if bp != batch:
        x = jnp.concatenate([x, jnp.zeros((bp - batch,) + x.shape[1:], x.dtype)], axis=0)
        feature = jnp.concatenate(
            [feature, jnp.zeros((bp - batch, feature.shape[1]), feature.dtype)], axis=0)

    # ---- polyphase input: x[b, 32*i + ph] -> rows ph, lanes i, packed bb samples/lane ----
    xf = x[:, 0, :].astype(jnp.float32)
    xf = jnp.pad(xf, ((0, 0), (0, PH_X * T - L_IN)))                         # (bp, 512)
    x_poly = xf.reshape(bp, T, PH_X).transpose(0, 2, 1)                      # (bp, 32, 16)
    x_poly = (x_poly.reshape(nb, bb, PH_X, T).transpose(0, 2, 1, 3)
              .reshape(nb, PH_X, bb * T))
    x_poly = jnp.pad(x_poly, ((0, 0), (0, 0), (0, EXTRA)))                   # ghost zero segment
    feat_t = jnp.transpose(feature.astype(jnp.float32).reshape(nb, bb, -1), (0, 2, 1))

    consts_np, shifts = _prepare_constants(params)

    # segment-start selector for the head: picks lane b*T (sample b's pooled features)
    n_head = bb * T + EXTRA - (sum(d - 1 for d in shifts) + (P4L - 1))
    sout = np.zeros((n_head, bb), np.float32)
    sout[np.arange(bb) * T, np.arange(bb)] = 1.0

    consts = ([jnp.asarray(c) for c in consts_np[:8]]
              + [jnp.asarray(sout)]
              + [jnp.asarray(c) for c in consts_np[8:]])
    inputs = [x_poly, feat_t] + consts
    n_feat = feature.shape[1]

    def build(single_buffer_consts):
        def const_spec(a):
            nd = a.ndim
            idx = lambda i, _nd=nd: (0,) * _nd
            if single_buffer_consts:
                # constants are fetched once -> no double buffering (saves VMEM)
                return pl.BlockSpec(a.shape, idx, pipeline_mode=pl.Buffered(1))
            return pl.BlockSpec(a.shape, idx)

        in_specs = [
            pl.BlockSpec((1, PH_X, bb * T + EXTRA), lambda i: (i, 0, 0)),
            pl.BlockSpec((1, n_feat, bb), lambda i: (i, 0, 0)),
        ] + [const_spec(a) for a in consts]

        return pl.pallas_call(
            _make_kernel(bb, shifts),
            out_shape=jax.ShapeDtypeStruct((nb, NUM_CLASSES, bb), jnp.float32),
            grid_spec=pltpu.PrefetchScalarGridSpec(
                num_scalar_prefetch=0,
                grid=(nb,),
                in_specs=in_specs,
                out_specs=pl.BlockSpec((1, NUM_CLASSES, bb), lambda i: (i, 0, 0))),
            compiler_params=pltpu.CompilerParams(
                dimension_semantics=("parallel",),
                vmem_limit_bytes=48 * 1024 * 1024),
        )

    try:
        out = build(True)(*inputs)
    except Exception:
        # fallback if this JAX version rejects pl.Buffered(1) block specs
        out = build(False)(*inputs)

    return jnp.transpose(out, (0, 2, 1)).reshape(bp, NUM_CLASSES)[:batch]


# --------------------------------------------------------------------------------------
# pure-JAX reference (PyTorch eval-mode forward) + parameter init
# --------------------------------------------------------------------------------------
def reference_forward(x, feature, params):
    (w1, b1, w2, b2, w3, b3, w4, b4,
     g1, be1, m1, v1, g2, be2, m2, v2, g3, be3, m3, v3,
     fw1, fb1, ow, ob) = params

    def conv1d(a, w, b, stride):
        out = lax.conv_general_dilated(a, w, (stride,), 'VALID',
                                       dimension_numbers=('NCH', 'OIH', 'NCH'),
                                       precision=lax.Precision.HIGHEST)
        return out + b[None, :, None]

    def avgpool2(a):
        bq, c, l = a.shape
        return a[:, :, :(l // 2) * 2].reshape(bq, c, l // 2, 2).mean(axis=-1)

    def bn(a, g, be, m, v):
        return ((a - m[None, :, None]) / jnp.sqrt(v[None, :, None] + EPS)
                * g[None, :, None] + be[None, :, None])

    h = jnp.maximum(conv1d(x, w1, b1, 2), 0.0)
    h = bn(avgpool2(h), g1, be1, m1, v1)
    h = jnp.maximum(conv1d(h, w2, b2, 1), 0.0)
    h = bn(avgpool2(h), g2, be2, m2, v2)
    h = jnp.maximum(conv1d(h, w3, b3, 1), 0.0)
    h = bn(avgpool2(h), g3, be3, m3, v3)
    h = jnp.maximum(conv1d(h, w4, b4, 1), 0.0)
    h = avgpool2(h)
    xf = h.reshape(h.shape[0], -1)
    f = jnp.maximum(feature @ fw1.T + fb1, 0.0)
    comb = jnp.concatenate([xf, f], axis=1)
    return comb @ ow.T + ob


def init_params(key):
    ks = jax.random.split(key, 24)

    def u(k, shape, fan_in):
        bnd = 1.0 / np.sqrt(fan_in)
        return jax.random.uniform(k, shape, jnp.float32, -bnd, bnd)

    w1 = u(ks[0], (16, 1, 32), 32);    b1 = u(ks[1], (16,), 32)
    w2 = u(ks[2], (32, 16, 16), 256);  b2 = u(ks[3], (32,), 256)
    w3 = u(ks[4], (16, 32, 8), 256);   b3 = u(ks[5], (16,), 256)
    w4 = u(ks[6], (8, 16, 4), 64);     b4 = u(ks[7], (8,), 64)
    fw1 = u(ks[8], (4, 20), 20);       fb1 = u(ks[9], (4,), 20)
    ow = u(ks[10], (NUM_CLASSES, 52), 52)
    ob = u(ks[11], (NUM_CLASSES,), 52)

    def bn_params(kg, kb, km, kv, c):
        g = jax.random.uniform(kg, (c,), jnp.float32, 0.5, 1.5)
        be = jax.random.uniform(kb, (c,), jnp.float32, -0.5, 0.5)
        m = jax.random.uniform(km, (c,), jnp.float32, -0.5, 0.5)
        v = jax.random.uniform(kv, (c,), jnp.float32, 0.5, 1.5)
        return g, be, m, v

    g1, be1, m1, v1 = bn_params(ks[12], ks[13], ks[14], ks[15], 16)
    g2, be2, m2, v2 = bn_params(ks[16], ks[17], ks[18], ks[19], 32)
    g3, be3, m3, v3 = bn_params(ks[20], ks[21], ks[22], ks[23], 16)

    return (w1, b1, w2, b2, w3, b3, w4, b4,
            g1, be1, m1, v1, g2, be2, m2, v2, g3, be3, m3, v3,
            fw1, fb1, ow, ob)


if __name__ == "__main__":
    key = jax.random.PRNGKey(0)
    kx, kf, kp, kx2, kf2 = jax.random.split(key, 5)
    params = init_params(kp)

    # primary check: B=2 -> bb=7, grid=(1,)  (single step: packed width 128 lanes)
    x = jax.random.normal(kx, (2, 1, L_IN), jnp.float32)
    feature = jax.random.normal(kf, (2, 20), jnp.float32)
    out = jax.block_until_ready(hybrid_cnn_forward(x, feature, params))
    ref = jax.block_until_ready(reference_forward(x, feature, params))
    assert out.shape == (2, NUM_CLASSES)
    np.testing.assert_allclose(np.asarray(out), np.asarray(ref), rtol=2e-3, atol=2e-3)

    # secondary check: B=13 with an explicit block size -> grid=(2,) + one padded sample
    b2 = 13
    x2 = jax.random.normal(kx2, (b2, 1, L_IN), jnp.float32)
    f2 = jax.random.normal(kf2, (b2, 20), jnp.float32)
    out2 = jax.block_until_ready(hybrid_cnn_forward(x2, f2, params, block_batch=7))
    ref2 = jax.block_until_ready(reference_forward(x2, f2, params))
    np.testing.assert_allclose(np.asarray(out2), np.asarray(ref2), rtol=2e-3, atol=2e-3)

    print("KERNEL_OK")
</pallas_src>

<mosaic_0001>
module attributes {stable_mosaic.version = 11 : i64} {
  func.func @kernel(%arg0: i32, %arg1: memref<1x32x128xf32, #tpu.memory_space<vmem>>, %arg2: memref<1x20x7xf32, #tpu.memory_space<vmem>>, %arg3: memref<256x64xf32, #tpu.memory_space<vmem>>, %arg4: memref<256x1xf32, #tpu.memory_space<vmem>>, %arg5: memref<256x384xf32, #tpu.memory_space<vmem>>, %arg6: memref<256x1xf32, #tpu.memory_space<vmem>>, %arg7: memref<64x384xf32, #tpu.memory_space<vmem>>, %arg8: memref<64x1xf32, #tpu.memory_space<vmem>>, %arg9: memref<16x96xf32, #tpu.memory_space<vmem>>, %arg10: memref<16x1xf32, #tpu.memory_space<vmem>>, %arg11: memref<116x7xf32, #tpu.memory_space<vmem>>, %arg12: memref<4x20xf32, #tpu.memory_space<vmem>>, %arg13: memref<4x1xf32, #tpu.memory_space<vmem>>, %arg14: memref<5x52xf32, #tpu.memory_space<vmem>>, %arg15: memref<5x1xf32, #tpu.memory_space<vmem>>, %arg16: memref<1x5x7xf32, #tpu.memory_space<vmem>>) attributes {dimension_semantics = [#tpu.dimension_semantics<parallel>], iteration_bounds = array<i64: 1>, scalar_prefetch = 0 : i64, scratch_operands = 0 : i64, tpu.core_type = #tpu.core_type<tc>, window_params = [{transform_indices = @transform_0, window_bounds = array<i64: 1, 32, 128>}, {transform_indices = @transform_1, window_bounds = array<i64: 1, 20, 7>}, {pipeline_mode = #tpu.pipeline_mode<synchronous>, transform_indices = @transform_2, window_bounds = array<i64: 256, 64>}, {pipeline_mode = #tpu.pipeline_mode<synchronous>, transform_indices = @transform_3, window_bounds = array<i64: 256, 1>}, {pipeline_mode = #tpu.pipeline_mode<synchronous>, transform_indices = @transform_4, window_bounds = array<i64: 256, 384>}, {pipeline_mode = #tpu.pipeline_mode<synchronous>, transform_indices = @transform_5, window_bounds = array<i64: 256, 1>}, {pipeline_mode = #tpu.pipeline_mode<synchronous>, transform_indices = @transform_6, window_bounds = array<i64: 64, 384>}, {pipeline_mode = #tpu.pipeline_mode<synchronous>, transform_indices = @transform_7, window_bounds = array<i64: 64, 1>}, {pipeline_mode = #tpu.pipeline_mode<synchronous>, transform_indices = @transform_8, window_bounds = array<i64: 16, 96>}, {pipeline_mode = #tpu.pipeline_mode<synchronous>, transform_indices = @transform_9, window_bounds = array<i64: 16, 1>}, {pipeline_mode = #tpu.pipeline_mode<synchronous>, transform_indices = @transform_10, window_bounds = array<i64: 116, 7>}, {pipeline_mode = #tpu.pipeline_mode<synchronous>, transform_indices = @transform_11, window_bounds = array<i64: 4, 20>}, {pipeline_mode = #tpu.pipeline_mode<synchronous>, transform_indices = @transform_12, window_bounds = array<i64: 4, 1>}, {pipeline_mode = #tpu.pipeline_mode<synchronous>, transform_indices = @transform_13, window_bounds = array<i64: 5, 52>}, {pipeline_mode = #tpu.pipeline_mode<synchronous>, transform_indices = @transform_14, window_bounds = array<i64: 5, 1>}, {transform_indices = @transform_15, window_bounds = array<i64: 1, 5, 7>}]} {
    %c0 = arith.constant 0 : index
    %c0_0 = arith.constant 0 : index
    %c0_1 = arith.constant 0 : index
    %0 = vector.load %arg1[%c0, %c0_0, %c0_1] : memref<1x32x128xf32, #tpu.memory_space<vmem>>, vector<1x32x128xf32>
    %1 = vector.shape_cast %0 : vector<1x32x128xf32> to vector<32x128xf32>
    %2 = vector.extract_strided_slice %1 {offsets = [0, 0], sizes = [32, 127], strides = [1, 1]} : vector<32x128xf32> to vector<32x127xf32>
    %3 = vector.extract_strided_slice %1 {offsets = [0, 1], sizes = [32, 127], strides = [1, 1]} : vector<32x128xf32> to vector<32x127xf32>
    %4 = tpu.concatenate %2, %3 in 0 : vector<32x127xf32>, vector<32x127xf32> -> vector<64x127xf32>
    %c0_2 = arith.constant 0 : index
    %c0_3 = arith.constant 0 : index
    %5 = vector.load %arg3[%c0_2, %c0_3] : memref<256x64xf32, #tpu.memory_space<vmem>>, vector<256x64xf32>
    %cst = arith.constant dense<0.000000e+00> : vector<256x127xf32>
    %6 = tpu.matmul %5, %4, %cst {dimension_numbers = #tpu.dot_dimension_numbers<[1], [0], [0], [1], [0, 0, 1, 1], [], []>} : vector<256x64xf32>, vector<64x127xf32>, vector<256x127xf32> -> vector<256x127xf32>
    %c0_4 = arith.constant 0 : index
    %c0_5 = arith.constant 0 : index
    %7 = vector.load %arg4[%c0_4, %c0_5] : memref<256x1xf32, #tpu.memory_space<vmem>>, vector<256x1xf32>
    %8 = vector.broadcast %7 : vector<256x1xf32> to vector<256x127xf32>
    %9 = arith.addf %6, %8 : vector<256x127xf32>
    %cst_6 = arith.constant 0.000000e+00 : f32
    %10 = vector.broadcast %cst_6 : f32 to vector<256x127xf32>
    %11 = arith.maximumf %9, %10 : vector<256x127xf32>
    %12 = vector.extract_strided_slice %11 {offsets = [0, 0], sizes = [128, 127], strides = [1, 1]} : vector<256x127xf32> to vector<128x127xf32>
    %13 = vector.extract_strided_slice %11 {offsets = [128, 0], sizes = [128, 127], strides = [1, 1]} : vector<256x127xf32> to vector<128x127xf32>
    %14 = arith.addf %12, %13 : vector<128x127xf32>
    %cst_7 = arith.constant 5.000000e-01 : f32
    %15 = vector.broadcast %cst_7 : f32 to vector<128x127xf32>
    %16 = arith.mulf %15, %14 : vector<128x127xf32>
    %17 = vector.extract_strided_slice %16 {offsets = [0, 0], sizes = [128, 125], strides = [1, 1]} : vector<128x127xf32> to vector<128x125xf32>
    %18 = vector.extract_strided_slice %16 {offsets = [0, 1], sizes = [128, 125], strides = [1, 1]} : vector<128x127xf32> to vector<128x125xf32>
    %19 = vector.extract_strided_slice %16 {offsets = [0, 2], sizes = [128, 125], strides = [1, 1]} : vector<128x127xf32> to vector<128x125xf32>
    %20 = tpu.concatenate %17, %18, %19 in 0 : vector<128x125xf32>, vector<128x125xf32>, vector<128x125xf32> -> vector<384x125xf32>
    %c0_8 = arith.constant 0 : index
    %c0_9 = arith.constant 0 : index
    %21 = vector.load %arg5[%c0_8, %c0_9] : memref<256x384xf32, #tpu.memory_space<vmem>>, vector<256x384xf32>
    %cst_10 = arith.constant dense<0.000000e+00> : vector<256x125xf32>
    %22 = tpu.matmul %21, %20, %cst_10 {dimension_numbers = #tpu.dot_dimension_numbers<[1], [0], [0], [1], [0, 0, 1, 1], [], []>} : vector<256x384xf32>, vector<384x125xf32>, vector<256x125xf32> -> vector<256x125xf32>
    %c0_11 = arith.constant 0 : index
    %c0_12 = arith.constant 0 : index
    %23 = vector.load %arg6[%c0_11, %c0_12] : memref<256x1xf32, #tpu.memory_space<vmem>>, vector<256x1xf32>
    %24 = vector.broadcast %23 : vector<256x1xf32> to vector<256x125xf32>
    %25 = arith.addf %22, %24 : vector<256x125xf32>
    %cst_13 = arith.constant 0.000000e+00 : f32
    %26 = vector.broadcast %cst_13 : f32 to vector<256x125xf32>
    %27 = arith.maximumf %25, %26 : vector<256x125xf32>
    %28 = vector.extract_strided_slice %27 {offsets = [0, 0], sizes = [128, 125], strides = [1, 1]} : vector<256x125xf32> to vector<128x125xf32>
    %29 = vector.extract_strided_slice %27 {offsets = [128, 0], sizes = [128, 125], strides = [1, 1]} : vector<256x125xf32> to vector<128x125xf32>
    %30 = arith.addf %28, %29 : vector<128x125xf32>
    %cst_14 = arith.constant 5.000000e-01 : f32
    %31 = vector.broadcast %cst_14 : f32 to vector<128x125xf32>
    %32 = arith.mulf %31, %30 : vector<128x125xf32>
    %33 = vector.extract_strided_slice %32 {offsets = [0, 0], sizes = [128, 123], strides = [1, 1]} : vector<128x125xf32> to vector<128x123xf32>
    %34 = vector.extract_strided_slice %32 {offsets = [0, 1], sizes = [128, 123], strides = [1, 1]} : vector<128x125xf32> to vector<128x123xf32>
    %35 = vector.extract_strided_slice %32 {offsets = [0, 2], sizes = [128, 123], strides = [1, 1]} : vector<128x125xf32> to vector<128x123xf32>
    %36 = tpu.concatenate %33, %34, %35 in 0 : vector<128x123xf32>, vector<128x123xf32>, vector<128x123xf32> -> vector<384x123xf32>
    %c0_15 = arith.constant 0 : index
    %c0_16 = arith.constant 0 : index
    %37 = vector.load %arg7[%c0_15, %c0_16] : memref<64x384xf32, #tpu.memory_space<vmem>>, vector<64x384xf32>
    %cst_17 = arith.constant dense<0.000000e+00> : vector<64x123xf32>
    %38 = tpu.matmul %37, %36, %cst_17 {dimension_numbers = #tpu.dot_dimension_numbers<[1], [0], [0], [1], [0, 0, 1, 1], [], []>} : vector<64x384xf32>, vector<384x123xf32>, vector<64x123xf32> -> vector<64x123xf32>
    %c0_18 = arith.constant 0 : index
    %c0_19 = arith.constant 0 : index
    %39 = vector.load %arg8[%c0_18, %c0_19] : memref<64x1xf32, #tpu.memory_space<vmem>>, vector<64x1xf32>
    %40 = vector.broadcast %39 : vector<64x1xf32> to vector<64x123xf32>
    %41 = arith.addf %38, %40 : vector<64x123xf32>
    %cst_20 = arith.constant 0.000000e+00 : f32
    %42 = vector.broadcast %cst_20 : f32 to vector<64x123xf32>
    %43 = arith.maximumf %41, %42 : vector<64x123xf32>
    %44 = vector.extract_strided_slice %43 {offsets = [0, 0], sizes = [32, 123], strides = [1, 1]} : vector<64x123xf32> to vector<32x123xf32>
    %45 = vector.extract_strided_slice %43 {offsets = [32, 0], sizes = [32, 123], strides = [1, 1]} : vector<64x123xf32> to vector<32x123xf32>
    %46 = arith.addf %44, %45 : vector<32x123xf32>
    %cst_21 = arith.constant 5.000000e-01 : f32
    %47 = vector.broadcast %cst_21 : f32 to vector<32x123xf32>
    %48 = arith.mulf %47, %46 : vector<32x123xf32>
    %49 = vector.extract_strided_slice %48 {offsets = [0, 0], sizes = [32, 121], strides = [1, 1]} : vector<32x123xf32> to vector<32x121xf32>
    %50 = vector.extract_strided_slice %48 {offsets = [0, 1], sizes = [32, 121], strides = [1, 1]} : vector<32x123xf32> to vector<32x121xf32>
    %51 = vector.extract_strided_slice %48 {offsets = [0, 2], sizes = [32, 121], strides = [1, 1]} : vector<32x123xf32> to vector<32x121xf32>
    %52 = tpu.concatenate %49, %50, %51 in 0 : vector<32x121xf32>, vector<32x121xf32>, vector<32x121xf32> -> vector<96x121xf32>
    %c0_22 = arith.constant 0 : index
    %c0_23 = arith.constant 0 : index
    %53 = vector.load %arg9[%c0_22, %c0_23] : memref<16x96xf32, #tpu.memory_space<vmem>>, vector<16x96xf32>
    %cst_24 = arith.constant dense<0.000000e+00> : vector<16x121xf32>
    %54 = tpu.matmul %53, %52, %cst_24 {dimension_numbers = #tpu.dot_dimension_numbers<[1], [0], [0], [1], [0, 0, 1, 1], [], []>} : vector<16x96xf32>, vector<96x121xf32>, vector<16x121xf32> -> vector<16x121xf32>
    %c0_25 = arith.constant 0 : index
    %c0_26 = arith.constant 0 : index
    %55 = vector.load %arg10[%c0_25, %c0_26] : memref<16x1xf32, #tpu.memory_space<vmem>>, vector<16x1xf32>
    %56 = vector.broadcast %55 : vector<16x1xf32> to vector<16x121xf32>
    %57 = arith.addf %54, %56 : vector<16x121xf32>
    %cst_27 = arith.constant 0.000000e+00 : f32
    %58 = vector.broadcast %cst_27 : f32 to vector<16x121xf32>
    %59 = arith.maximumf %57, %58 : vector<16x121xf32>
    %60 = vector.extract_strided_slice %59 {offsets = [0, 0], sizes = [8, 121], strides = [1, 1]} : vector<16x121xf32> to vector<8x121xf32>
    %61 = vector.extract_strided_slice %59 {offsets = [8, 0], sizes = [8, 121], strides = [1, 1]} : vector<16x121xf32> to vector<8x121xf32>
    %62 = arith.addf %60, %61 : vector<8x121xf32>
    %cst_28 = arith.constant 5.000000e-01 : f32
    %63 = vector.broadcast %cst_28 : f32 to vector<8x121xf32>
    %64 = arith.mulf %63, %62 : vector<8x121xf32>
    %65 = vector.extract_strided_slice %64 {offsets = [0, 0], sizes = [8, 116], strides = [1, 1]} : vector<8x121xf32> to vector<8x116xf32>
    %66 = vector.extract_strided_slice %64 {offsets = [0, 1], sizes = [8, 116], strides = [1, 1]} : vector<8x121xf32> to vector<8x116xf32>
    %67 = vector.extract_strided_slice %64 {offsets = [0, 2], sizes = [8, 116], strides = [1, 1]} : vector<8x121xf32> to vector<8x116xf32>
    %68 = vector.extract_strided_slice %64 {offsets = [0, 3], sizes = [8, 116], strides = [1, 1]} : vector<8x121xf32> to vector<8x116xf32>
    %69 = vector.extract_strided_slice %64 {offsets = [0, 4], sizes = [8, 116], strides = [1, 1]} : vector<8x121xf32> to vector<8x116xf32>
    %70 = vector.extract_strided_slice %64 {offsets = [0, 5], sizes = [8, 116], strides = [1, 1]} : vector<8x121xf32> to vector<8x116xf32>
    %71 = tpu.concatenate %65, %66, %67, %68, %69, %70 in 0 : vector<8x116xf32>, vector<8x116xf32>, vector<8x116xf32>, vector<8x116xf32>, vector<8x116xf32>, vector<8x116xf32> -> vector<48x116xf32>
    %c0_29 = arith.constant 0 : index
    %c0_30 = arith.constant 0 : index
    %72 = vector.load %arg11[%c0_29, %c0_30] : memref<116x7xf32, #tpu.memory_space<vmem>>, vector<116x7xf32>
    %cst_31 = arith.constant dense<0.000000e+00> : vector<48x7xf32>
    %73 = tpu.matmul %71, %72, %cst_31 {dimension_numbers = #tpu.dot_dimension_numbers<[1], [0], [0], [1], [0, 0, 1, 1], [], []>} : vector<48x116xf32>, vector<116x7xf32>, vector<48x7xf32> -> vector<48x7xf32>
    %c0_32 = arith.constant 0 : index
    %c0_33 = arith.constant 0 : index
    %74 = vector.load %arg12[%c0_32, %c0_33] : memref<4x20xf32, #tpu.memory_space<vmem>>, vector<4x20xf32>
    %c0_34 = arith.constant 0 : index
    %c0_35 = arith.constant 0 : index
    %c0_36 = arith.constant 0 : index
    %75 = vector.load %arg2[%c0_34, %c0_35, %c0_36] : memref<1x20x7xf32, #tpu.memory_space<vmem>>, vector<1x20x7xf32>
    %76 = vector.shape_cast %75 : vector<1x20x7xf32> to vector<20x7xf32>
    %cst_37 = arith.constant dense<0.000000e+00> : vector<4x7xf32>
    %77 = tpu.matmul %74, %76, %cst_37 {dimension_numbers = #tpu.dot_dimension_numbers<[1], [0], [0], [1], [0, 0, 1, 1], [], []>} : vector<4x20xf32>, vector<20x7xf32>, vector<4x7xf32> -> vector<4x7xf32>
    %c0_38 = arith.constant 0 : index
    %c0_39 = arith.constant 0 : index
    %78 = vector.load %arg13[%c0_38, %c0_39] : memref<4x1xf32, #tpu.memory_space<vmem>>, vector<4x1xf32>
    %79 = vector.broadcast %78 : vector<4x1xf32> to vector<4x7xf32>
    %80 = arith.addf %77, %79 : vector<4x7xf32>
    %cst_40 = arith.constant 0.000000e+00 : f32
    %81 = vector.broadcast %cst_40 : f32 to vector<4x7xf32>
    %82 = arith.maximumf %80, %81 : vector<4x7xf32>
    %83 = tpu.concatenate %73, %82 in 0 : vector<48x7xf32>, vector<4x7xf32> -> vector<52x7xf32>
    %c0_41 = arith.constant 0 : index
    %c0_42 = arith.constant 0 : index
    %84 = vector.load %arg14[%c0_41, %c0_42] : memref<5x52xf32, #tpu.memory_space<vmem>>, vector<5x52xf32>
    %cst_43 = arith.constant dense<0.000000e+00> : vector<5x7xf32>
    %85 = tpu.matmul %84, %83, %cst_43 {dimension_numbers = #tpu.dot_dimension_numbers<[1], [0], [0], [1], [0, 0, 1, 1], [], []>} : vector<5x52xf32>, vector<52x7xf32>, vector<5x7xf32> -> vector<5x7xf32>
    %c0_44 = arith.constant 0 : index
    %c0_45 = arith.constant 0 : index
    %86 = vector.load %arg15[%c0_44, %c0_45] : memref<5x1xf32, #tpu.memory_space<vmem>>, vector<5x1xf32>
    %87 = vector.broadcast %86 : vector<5x1xf32> to vector<5x7xf32>
    %88 = arith.addf %85, %87 : vector<5x7xf32>
    %c0_46 = arith.constant 0 : index
    %c0_47 = arith.constant 0 : index
    %c0_48 = arith.constant 0 : index
    %89 = vector.load %arg16[%c0_46, %c0_47, %c0_48] : memref<1x5x7xf32, #tpu.memory_space<vmem>>, vector<1x5x7xf32>
    %90 = vector.shape_cast %89 : vector<1x5x7xf32> to vector<5x7xf32>
    %91 = vector.shape_cast %88 : vector<5x7xf32> to vector<1x5x7xf32>
    tpu.vector_store %arg16[%c0_46, %c0_47, %c0_48], %91 {strides = array<i32>} : memref<1x5x7xf32, #tpu.memory_space<vmem>>, vector<1x5x7xf32>,
    return
  }
  func.func @transform_0(%arg0: i32) -> (i32, i32, i32) {
    %c0_i32 = arith.constant 0 : i32
    %c0_i32_0 = arith.constant 0 : i32
    %c0_i32_1 = arith.constant 0 : i32
    return %arg0, %c0_i32, %c0_i32_0 : i32, i32, i32
  }
  func.func @transform_1(%arg0: i32) -> (i32, i32, i32) {
    %c0_i32 = arith.constant 0 : i32
    %c0_i32_0 = arith.constant 0 : i32
    %c0_i32_1 = arith.constant 0 : i32
    return %arg0, %c0_i32, %c0_i32_0 : i32, i32, i32
  }
  func.func @transform_2(%arg0: i32) -> (i32, i32) {
    %c0_i32 = arith.constant 0 : i32
    %c0_i32_0 = arith.constant 0 : i32
    %c0_i32_1 = arith.constant 0 : i32
    return %c0_i32, %c0_i32_0 : i32, i32
  }
  func.func @transform_3(%arg0: i32) -> (i32, i32) {
    %c0_i32 = arith.constant 0 : i32
    %c0_i32_0 = arith.constant 0 : i32
    %c0_i32_1 = arith.constant 0 : i32
    return %c0_i32, %c0_i32_0 : i32, i32
  }
  func.func @transform_4(%arg0: i32) -> (i32, i32) {
    %c0_i32 = arith.constant 0 : i32
    %c0_i32_0 = arith.constant 0 : i32
    %c0_i32_1 = arith.constant 0 : i32
    return %c0_i32, %c0_i32_0 : i32, i32
  }
  func.func @transform_5(%arg0: i32) -> (i32, i32) {
    %c0_i32 = arith.constant 0 : i32
    %c0_i32_0 = arith.constant 0 : i32
    %c0_i32_1 = arith.constant 0 : i32
    return %c0_i32, %c0_i32_0 : i32, i32
  }
  func.func @transform_6(%arg0: i32) -> (i32, i32) {
    %c0_i32 = arith.constant 0 : i32
    %c0_i32_0 = arith.constant 0 : i32
    %c0_i32_1 = arith.constant 0 : i32
    return %c0_i32, %c0_i32_0 : i32, i32
  }
  func.func @transform_7(%arg0: i32) -> (i32, i32) {
    %c0_i32 = arith.constant 0 : i32
    %c0_i32_0 = arith.constant 0 : i32
    %c0_i32_1 = arith.constant 0 : i32
    return %c0_i32, %c0_i32_0 : i32, i32
  }
  func.func @transform_8(%arg0: i32) -> (i32, i32) {
    %c0_i32 = arith.constant 0 : i32
    %c0_i32_0 = arith.constant 0 : i32
    %c0_i32_1 = arith.constant 0 : i32
    return %c0_i32, %c0_i32_0 : i32, i32
  }
  func.func @transform_9(%arg0: i32) -> (i32, i32) {
    %c0_i32 = arith.constant 0 : i32
    %c0_i32_0 = arith.constant 0 : i32
    %c0_i32_1 = arith.constant 0 : i32
    return %c0_i32, %c0_i32_0 : i32, i32
  }
  func.func @transform_10(%arg0: i32) -> (i32, i32) {
    %c0_i32 = arith.constant 0 : i32
    %c0_i32_0 = arith.constant 0 : i32
    %c0_i32_1 = arith.constant 0 : i32
    return %c0_i32, %c0_i32_0 : i32, i32
  }
  func.func @transform_11(%arg0: i32) -> (i32, i32) {
    %c0_i32 = arith.constant 0 : i32
    %c0_i32_0 = arith.constant 0 : i32
    %c0_i32_1 = arith.constant 0 : i32
    return %c0_i32, %c0_i32_0 : i32, i32
  }
  func.func @transform_12(%arg0: i32) -> (i32, i32) {
    %c0_i32 = arith.constant 0 : i32
    %c0_i32_0 = arith.constant 0 : i32
    %c0_i32_1 = arith.constant 0 : i32
    return %c0_i32, %c0_i32_0 : i32, i32
  }
  func.func @transform_13(%arg0: i32) -> (i32, i32) {
    %c0_i32 = arith.constant 0 : i32
    %c0_i32_0 = arith.constant 0 : i32
    %c0_i32_1 = arith.constant 0 : i32
    return %c0_i32, %c0_i32_0 : i32, i32
  }
  func.func @transform_14(%arg0: i32) -> (i32, i32) {
    %c0_i32 = arith.constant 0 : i32
    %c0_i32_0 = arith.constant 0 : i32
    %c0_i32_1 = arith.constant 0 : i32
    return %c0_i32, %c0_i32_0 : i32, i32
  }
  func.func @transform_15(%arg0: i32) -> (i32, i32, i32) {
    %c0_i32 = arith.constant 0 : i32
    %c0_i32_0 = arith.constant 0 : i32
    %c0_i32_1 = arith.constant 0 : i32
    return %arg0, %c0_i32, %c0_i32_0 : i32, i32, i32
  }
}

module attributes {stable_mosaic.version = 11 : i64} {
  func.func @kernel(%arg0: i32, %arg1: memref<1x32x128xf32, #tpu.memory_space<vmem>>, %arg2: memref<1x20x7xf32, #tpu.memory_space<vmem>>, %arg3: memref<256x64xf32, #tpu.memory_space<vmem>>, %arg4: memref<256x1xf32, #tpu.memory_space<vmem>>, %arg5: memref<256x384xf32, #tpu.memory_space<vmem>>, %arg6: memref<256x1xf32, #tpu.memory_space<vmem>>, %arg7: memref<64x384xf32, #tpu.memory_space<vmem>>, %arg8: memref<64x1xf32, #tpu.memory_space<vmem>>, %arg9: memref<16x96xf32, #tpu.memory_space<vmem>>, %arg10: memref<16x1xf32, #tpu.memory_space<vmem>>, %arg11: memref<116x7xf32, #tpu.memory_space<vmem>>, %arg12: memref<4x20xf32, #tpu.memory_space<vmem>>, %arg13: memref<4x1xf32, #tpu.memory_space<vmem>>, %arg14: memref<5x52xf32, #tpu.memory_space<vmem>>, %arg15: memref<5x1xf32, #tpu.memory_space<vmem>>, %arg16: memref<1x5x7xf32, #tpu.memory_space<vmem>>) attributes {dimension_semantics = [#tpu.dimension_semantics<parallel>], iteration_bounds = array<i64: 1>, scalar_prefetch = 0 : i64, scratch_operands = 0 : i64, tpu.core_type = #tpu.core_type<tc>, window_params = [{transform_indices = @transform_0, window_bounds = array<i64: 1, 32, 128>}, {transform_indices = @transform_1, window_bounds = array<i64: 1, 20, 7>}, {pipeline_mode = #tpu.pipeline_mode<synchronous>, transform_indices = @transform_2, window_bounds = array<i64: 256, 64>}, {pipeline_mode = #tpu.pipeline_mode<synchronous>, transform_indices = @transform_3, window_bounds = array<i64: 256, 1>}, {pipeline_mode = #tpu.pipeline_mode<synchronous>, transform_indices = @transform_4, window_bounds = array<i64: 256, 384>}, {pipeline_mode = #tpu.pipeline_mode<synchronous>, transform_indices = @transform_5, window_bounds = array<i64: 256, 1>}, {pipeline_mode = #tpu.pipeline_mode<synchronous>, transform_indices = @transform_6, window_bounds = array<i64: 64, 384>}, {pipeline_mode = #tpu.pipeline_mode<synchronous>, transform_indices = @transform_7, window_bounds = array<i64: 64, 1>}, {pipeline_mode = #tpu.pipeline_mode<synchronous>, transform_indices = @transform_8, window_bounds = array<i64: 16, 96>}, {pipeline_mode = #tpu.pipeline_mode<synchronous>, transform_indices = @transform_9, window_bounds = array<i64: 16, 1>}, {pipeline_mode = #tpu.pipeline_mode<synchronous>, transform_indices = @transform_10, window_bounds = array<i64: 116, 7>}, {pipeline_mode = #tpu.pipeline_mode<synchronous>, transform_indices = @transform_11, window_bounds = array<i64: 4, 20>}, {pipeline_mode = #tpu.pipeline_mode<synchronous>, transform_indices = @transform_12, window_bounds = array<i64: 4, 1>}, {pipeline_mode = #tpu.pipeline_mode<synchronous>, transform_indices = @transform_13, window_bounds = array<i64: 5, 52>}, {pipeline_mode = #tpu.pipeline_mode<synchronous>, transform_indices = @transform_14, window_bounds = array<i64: 5, 1>}, {transform_indices = @transform_15, window_bounds = array<i64: 1, 5, 7>}]} {
    %c0 = arith.constant 0 : index
    %c0_0 = arith.constant 0 : index
    %c0_1 = arith.constant 0 : index
    %0 = vector.load %arg1[%c0, %c0_0, %c0_1] : memref<1x32x128xf32, #tpu.memory_space<vmem>>, vector<1x32x128xf32>
    %1 = vector.shape_cast %0 : vector<1x32x128xf32> to vector<32x128xf32>
    %2 = vector.extract_strided_slice %1 {offsets = [0, 0], sizes = [32, 127], strides = [1, 1]} : vector<32x128xf32> to vector<32x127xf32>
    %3 = vector.extract_strided_slice %1 {offsets = [0, 1], sizes = [32, 127], strides = [1, 1]} : vector<32x128xf32> to vector<32x127xf32>
    %4 = tpu.concatenate %2, %3 in 0 : vector<32x127xf32>, vector<32x127xf32> -> vector<64x127xf32>
    %c0_2 = arith.constant 0 : index
    %c0_3 = arith.constant 0 : index
    %5 = vector.load %arg3[%c0_2, %c0_3] : memref<256x64xf32, #tpu.memory_space<vmem>>, vector<256x64xf32>
    %cst = arith.constant dense<0.000000e+00> : vector<256x127xf32>
    %6 = tpu.matmul %5, %4, %cst {dimension_numbers = #tpu.dot_dimension_numbers<[1], [0], [0], [1], [0, 0, 1, 1], [], []>} : vector<256x64xf32>, vector<64x127xf32>, vector<256x127xf32> -> vector<256x127xf32>
    %c0_4 = arith.constant 0 : index
    %c0_5 = arith.constant 0 : index
    %7 = vector.load %arg4[%c0_4, %c0_5] : memref<256x1xf32, #tpu.memory_space<vmem>>, vector<256x1xf32>
    %8 = vector.broadcast %7 : vector<256x1xf32> to vector<256x127xf32>
    %9 = arith.addf %6, %8 : vector<256x127xf32>
    %cst_6 = arith.constant 0.000000e+00 : f32
    %10 = vector.broadcast %cst_6 : f32 to vector<256x127xf32>
    %11 = arith.maximumf %9, %10 : vector<256x127xf32>
    %12 = vector.extract_strided_slice %11 {offsets = [0, 0], sizes = [128, 127], strides = [1, 1]} : vector<256x127xf32> to vector<128x127xf32>
    %13 = vector.extract_strided_slice %11 {offsets = [128, 0], sizes = [128, 127], strides = [1, 1]} : vector<256x127xf32> to vector<128x127xf32>
    %14 = arith.addf %12, %13 : vector<128x127xf32>
    %cst_7 = arith.constant 5.000000e-01 : f32
    %15 = vector.broadcast %cst_7 : f32 to vector<128x127xf32>
    %16 = arith.mulf %15, %14 : vector<128x127xf32>
    %17 = vector.extract_strided_slice %16 {offsets = [0, 0], sizes = [128, 125], strides = [1, 1]} : vector<128x127xf32> to vector<128x125xf32>
    %18 = vector.extract_strided_slice %16 {offsets = [0, 1], sizes = [128, 125], strides = [1, 1]} : vector<128x127xf32> to vector<128x125xf32>
    %19 = vector.extract_strided_slice %16 {offsets = [0, 2], sizes = [128, 125], strides = [1, 1]} : vector<128x127xf32> to vector<128x125xf32>
    %20 = tpu.concatenate %17, %18, %19 in 0 : vector<128x125xf32>, vector<128x125xf32>, vector<128x125xf32> -> vector<384x125xf32>
    %c0_8 = arith.constant 0 : index
    %c0_9 = arith.constant 0 : index
    %21 = vector.load %arg5[%c0_8, %c0_9] : memref<256x384xf32, #tpu.memory_space<vmem>>, vector<256x384xf32>
    %cst_10 = arith.constant dense<0.000000e+00> : vector<256x125xf32>
    %22 = tpu.matmul %21, %20, %cst_10 {dimension_numbers = #tpu.dot_dimension_numbers<[1], [0], [0], [1], [0, 0, 1, 1], [], []>} : vector<256x384xf32>, vector<384x125xf32>, vector<256x125xf32> -> vector<256x125xf32>
    %c0_11 = arith.constant 0 : index
    %c0_12 = arith.constant 0 : index
    %23 = vector.load %arg6[%c0_11, %c0_12] : memref<256x1xf32, #tpu.memory_space<vmem>>, vector<256x1xf32>
    %24 = vector.broadcast %23 : vector<256x1xf32> to vector<256x125xf32>
    %25 = arith.addf %22, %24 : vector<256x125xf32>
    %cst_13 = arith.constant 0.000000e+00 : f32
    %26 = vector.broadcast %cst_13 : f32 to vector<256x125xf32>
    %27 = arith.maximumf %25, %26 : vector<256x125xf32>
    %28 = vector.extract_strided_slice %27 {offsets = [0, 0], sizes = [128, 125], strides = [1, 1]} : vector<256x125xf32> to vector<128x125xf32>
    %29 = vector.extract_strided_slice %27 {offsets = [128, 0], sizes = [128, 125], strides = [1, 1]} : vector<256x125xf32> to vector<128x125xf32>
    %30 = arith.addf %28, %29 : vector<128x125xf32>
    %cst_14 = arith.constant 5.000000e-01 : f32
    %31 = vector.broadcast %cst_14 : f32 to vector<128x125xf32>
    %32 = arith.mulf %31, %30 : vector<128x125xf32>
    %33 = vector.extract_strided_slice %32 {offsets = [0, 0], sizes = [128, 123], strides = [1, 1]} : vector<128x125xf32> to vector<128x123xf32>
    %34 = vector.extract_strided_slice %32 {offsets = [0, 1], sizes = [128, 123], strides = [1, 1]} : vector<128x125xf32> to vector<128x123xf32>
    %35 = vector.extract_strided_slice %32 {offsets = [0, 2], sizes = [128, 123], strides = [1, 1]} : vector<128x125xf32> to vector<128x123xf32>
    %36 = tpu.concatenate %33, %34, %35 in 0 : vector<128x123xf32>, vector<128x123xf32>, vector<128x123xf32> -> vector<384x123xf32>
    %c0_15 = arith.constant 0 : index
    %c0_16 = arith.constant 0 : index
    %37 = vector.load %arg7[%c0_15, %c0_16] : memref<64x384xf32, #tpu.memory_space<vmem>>, vector<64x384xf32>
    %cst_17 = arith.constant dense<0.000000e+00> : vector<64x123xf32>
    %38 = tpu.matmul %37, %36, %cst_17 {dimension_numbers = #tpu.dot_dimension_numbers<[1], [0], [0], [1], [0, 0, 1, 1], [], []>} : vector<64x384xf32>, vector<384x123xf32>, vector<64x123xf32> -> vector<64x123xf32>
    %c0_18 = arith.constant 0 : index
    %c0_19 = arith.constant 0 : index
    %39 = vector.load %arg8[%c0_18, %c0_19] : memref<64x1xf32, #tpu.memory_space<vmem>>, vector<64x1xf32>
    %40 = vector.broadcast %39 : vector<64x1xf32> to vector<64x123xf32>
    %41 = arith.addf %38, %40 : vector<64x123xf32>
    %cst_20 = arith.constant 0.000000e+00 : f32
    %42 = vector.broadcast %cst_20 : f32 to vector<64x123xf32>
    %43 = arith.maximumf %41, %42 : vector<64x123xf32>
    %44 = vector.extract_strided_slice %43 {offsets = [0, 0], sizes = [32, 123], strides = [1, 1]} : vector<64x123xf32> to vector<32x123xf32>
    %45 = vector.extract_strided_slice %43 {offsets = [32, 0], sizes = [32, 123], strides = [1, 1]} : vector<64x123xf32> to vector<32x123xf32>
    %46 = arith.addf %44, %45 : vector<32x123xf32>
    %cst_21 = arith.constant 5.000000e-01 : f32
    %47 = vector.broadcast %cst_21 : f32 to vector<32x123xf32>
    %48 = arith.mulf %47, %46 : vector<32x123xf32>
    %49 = vector.extract_strided_slice %48 {offsets = [0, 0], sizes = [32, 121], strides = [1, 1]} : vector<32x123xf32> to vector<32x121xf32>
    %50 = vector.extract_strided_slice %48 {offsets = [0, 1], sizes = [32, 121], strides = [1, 1]} : vector<32x123xf32> to vector<32x121xf32>
    %51 = vector.extract_strided_slice %48 {offsets = [0, 2], sizes = [32, 121], strides = [1, 1]} : vector<32x123xf32> to vector<32x121xf32>
    %52 = tpu.concatenate %49, %50, %51 in 0 : vector<32x121xf32>, vector<32x121xf32>, vector<32x121xf32> -> vector<96x121xf32>
    %c0_22 = arith.constant 0 : index
    %c0_23 = arith.constant 0 : index
    %53 = vector.load %arg9[%c0_22, %c0_23] : memref<16x96xf32, #tpu.memory_space<vmem>>, vector<16x96xf32>
    %cst_24 = arith.constant dense<0.000000e+00> : vector<16x121xf32>
    %54 = tpu.matmul %53, %52, %cst_24 {dimension_numbers = #tpu.dot_dimension_numbers<[1], [0], [0], [1], [0, 0, 1, 1], [], []>} : vector<16x96xf32>, vector<96x121xf32>, vector<16x121xf32> -> vector<16x121xf32>
    %c0_25 = arith.constant 0 : index
    %c0_26 = arith.constant 0 : index
    %55 = vector.load %arg10[%c0_25, %c0_26] : memref<16x1xf32, #tpu.memory_space<vmem>>, vector<16x1xf32>
    %56 = vector.broadcast %55 : vector<16x1xf32> to vector<16x121xf32>
    %57 = arith.addf %54, %56 : vector<16x121xf32>
    %cst_27 = arith.constant 0.000000e+00 : f32
    %58 = vector.broadcast %cst_27 : f32 to vector<16x121xf32>
    %59 = arith.maximumf %57, %58 : vector<16x121xf32>
    %60 = vector.extract_strided_slice %59 {offsets = [0, 0], sizes = [8, 121], strides = [1, 1]} : vector<16x121xf32> to vector<8x121xf32>
    %61 = vector.extract_strided_slice %59 {offsets = [8, 0], sizes = [8, 121], strides = [1, 1]} : vector<16x121xf32> to vector<8x121xf32>
    %62 = arith.addf %60, %61 : vector<8x121xf32>
    %cst_28 = arith.constant 5.000000e-01 : f32
    %63 = vector.broadcast %cst_28 : f32 to vector<8x121xf32>
    %64 = arith.mulf %63, %62 : vector<8x121xf32>
    %65 = vector.extract_strided_slice %64 {offsets = [0, 0], sizes = [8, 116], strides = [1, 1]} : vector<8x121xf32> to vector<8x116xf32>
    %66 = vector.extract_strided_slice %64 {offsets = [0, 1], sizes = [8, 116], strides = [1, 1]} : vector<8x121xf32> to vector<8x116xf32>
    %67 = vector.extract_strided_slice %64 {offsets = [0, 2], sizes = [8, 116], strides = [1, 1]} : vector<8x121xf32> to vector<8x116xf32>
    %68 = vector.extract_strided_slice %64 {offsets = [0, 3], sizes = [8, 116], strides = [1, 1]} : vector<8x121xf32> to vector<8x116xf32>
    %69 = vector.extract_strided_slice %64 {offsets = [0, 4], sizes = [8, 116], strides = [1, 1]} : vector<8x121xf32> to vector<8x116xf32>
    %70 = vector.extract_strided_slice %64 {offsets = [0, 5], sizes = [8, 116], strides = [1, 1]} : vector<8x121xf32> to vector<8x116xf32>
    %71 = tpu.concatenate %65, %66, %67, %68, %69, %70 in 0 : vector<8x116xf32>, vector<8x116xf32>, vector<8x116xf32>, vector<8x116xf32>, vector<8x116xf32>, vector<8x116xf32> -> vector<48x116xf32>
    %c0_29 = arith.constant 0 : index
    %c0_30 = arith.constant 0 : index
    %72 = vector.load %arg11[%c0_29, %c0_30] : memref<116x7xf32, #tpu.memory_space<vmem>>, vector<116x7xf32>
    %cst_31 = arith.constant dense<0.000000e+00> : vector<48x7xf32>
    %73 = tpu.matmul %71, %72, %cst_31 {dimension_numbers = #tpu.dot_dimension_numbers<[1], [0], [0], [1], [0, 0, 1, 1], [], []>} : vector<48x116xf32>, vector<116x7xf32>, vector<48x7xf32> -> vector<48x7xf32>
    %c0_32 = arith.constant 0 : index
    %c0_33 = arith.constant 0 : index
    %74 = vector.load %arg12[%c0_32, %c0_33] : memref<4x20xf32, #tpu.memory_space<vmem>>, vector<4x20xf32>
    %c0_34 = arith.constant 0 : index
    %c0_35 = arith.constant 0 : index
    %c0_36 = arith.constant 0 : index
    %75 = vector.load %arg2[%c0_34, %c0_35, %c0_36] : memref<1x20x7xf32, #tpu.memory_space<vmem>>, vector<1x20x7xf32>
    %76 = vector.shape_cast %75 : vector<1x20x7xf32> to vector<20x7xf32>
    %cst_37 = arith.constant dense<0.000000e+00> : vector<4x7xf32>
    %77 = tpu.matmul %74, %76, %cst_37 {dimension_numbers = #tpu.dot_dimension_numbers<[1], [0], [0], [1], [0, 0, 1, 1], [], []>} : vector<4x20xf32>, vector<20x7xf32>, vector<4x7xf32> -> vector<4x7xf32>
    %c0_38 = arith.constant 0 : index
    %c0_39 = arith.constant 0 : index
    %78 = vector.load %arg13[%c0_38, %c0_39] : memref<4x1xf32, #tpu.memory_space<vmem>>, vector<4x1xf32>
    %79 = vector.broadcast %78 : vector<4x1xf32> to vector<4x7xf32>
    %80 = arith.addf %77, %79 : vector<4x7xf32>
    %cst_40 = arith.constant 0.000000e+00 : f32
    %81 = vector.broadcast %cst_40 : f32 to vector<4x7xf32>
    %82 = arith.maximumf %80, %81 : vector<4x7xf32>
    %83 = tpu.concatenate %73, %82 in 0 : vector<48x7xf32>, vector<4x7xf32> -> vector<52x7xf32>
    %c0_41 = arith.constant 0 : index
    %c0_42 = arith.constant 0 : index
    %84 = vector.load %arg14[%c0_41, %c0_42] : memref<5x52xf32, #tpu.memory_space<vmem>>, vector<5x52xf32>
    %cst_43 = arith.constant dense<0.000000e+00> : vector<5x7xf32>
    %85 = tpu.matmul %84, %83, %cst_43 {dimension_numbers = #tpu.dot_dimension_numbers<[1], [0], [0], [1], [0, 0, 1, 1], [], []>} : vector<5x52xf32>, vector<52x7xf32>, vector<5x7xf32> -> vector<5x7xf32>
    %c0_44 = arith.constant 0 : index
    %c0_45 = arith.constant 0 : index
    %86 = vector.load %arg15[%c0_44, %c0_45] : memref<5x1xf32, #tpu.memory_space<vmem>>, vector<5x1xf32>
    %87 = vector.broadcast %86 : vector<5x1xf32> to vector<5x7xf32>
    %88 = arith.addf %85, %87 : vector<5x7xf32>
    %c0_46 = arith.constant 0 : index
    %c0_47 = arith.constant 0 : index
    %c0_48 = arith.constant 0 : index
    %89 = vector.load %arg16[%c0_46, %c0_47, %c0_48] : memref<1x5x7xf32, #tpu.memory_space<vmem>>, vector<1x5x7xf32>
    %90 = vector.shape_cast %89 : vector<1x5x7xf32> to vector<5x7xf32>
    %91 = vector.shape_cast %88 : vector<5x7xf32> to vector<1x5x7xf32>
    tpu.vector_store %arg16[%c0_46, %c0_47, %c0_48], %91 {strides = array<i32>} : memref<1x5x7xf32, #tpu.memory_space<vmem>>, vector<1x5x7xf32>,
    return
  }
  func.func @transform_0(%arg0: i32) -> (i32, i32, i32) {
    %c0_i32 = arith.constant 0 : i32
    %c0_i32_0 = arith.constant 0 : i32
    %c0_i32_1 = arith.constant 0 : i32
    return %arg0, %c0_i32, %c0_i32_0 : i32, i32, i32
  }
  func.func @transform_1(%arg0: i32) -> (i32, i32, i32) {
    %c0_i32 = arith.constant 0 : i32
    %c0_i32_0 = arith.constant 0 : i32
    %c0_i32_1 = arith.constant 0 : i32
    return %arg0, %c0_i32, %c0_i32_0 : i32, i32, i32
  }
  func.func @transform_2(%arg0: i32) -> (i32, i32) {
    %c0_i32 = arith.constant 0 : i32
    %c0_i32_0 = arith.constant 0 : i32
    %c0_i32_1 = arith.constant 0 : i32
    return %c0_i32, %c0_i32_0 : i32, i32
  }
  func.func @transform_3(%arg0: i32) -> (i32, i32) {
    %c0_i32 = arith.constant 0 : i32
    %c0_i32_0 = arith.constant 0 : i32
    %c0_i32_1 = arith.constant 0 : i32
    return %c0_i32, %c0_i32_0 : i32, i32
  }
  func.func @transform_4(%arg0: i32) -> (i32, i32) {
    %c0_i32 = arith.constant 0 : i32
    %c0_i32_0 = arith.constant 0 : i32
    %c0_i32_1 = arith.constant 0 : i32
    return %c0_i32, %c0_i32_0 : i32, i32
  }
  func.func @transform_5(%arg0: i32) -> (i32, i32) {
    %c0_i32 = arith.constant 0 : i32
    %c0_i32_0 = arith.constant 0 : i32
    %c0_i32_1 = arith.constant 0 : i32
    return %c0_i32, %c0_i32_0 : i32, i32
  }
  func.func @transform_6(%arg0: i32) -> (i32, i32) {
    %c0_i32 = arith.constant 0 : i32
    %c0_i32_0 = arith.constant 0 : i32
    %c0_i32_1 = arith.constant 0 : i32
    return %c0_i32, %c0_i32_0 : i32, i32
  }
  func.func @transform_7(%arg0: i32) -> (i32, i32) {
    %c0_i32 = arith.constant 0 : i32
    %c0_i32_0 = arith.constant 0 : i32
    %c0_i32_1 = arith.constant 0 : i32
    return %c0_i32, %c0_i32_0 : i32, i32
  }
  func.func @transform_8(%arg0: i32) -> (i32, i32) {
    %c0_i32 = arith.constant 0 : i32
    %c0_i32_0 = arith.constant 0 : i32
    %c0_i32_1 = arith.constant 0 : i32
    return %c0_i32, %c0_i32_0 : i32, i32
  }
  func.func @transform_9(%arg0: i32) -> (i32, i32) {
    %c0_i32 = arith.constant 0 : i32
    %c0_i32_0 = arith.constant 0 : i32
    %c0_i32_1 = arith.constant 0 : i32
    return %c0_i32, %c0_i32_0 : i32, i32
  }
  func.func @transform_10(%arg0: i32) -> (i32, i32) {
    %c0_i32 = arith.constant 0 : i32
    %c0_i32_0 = arith.constant 0 : i32
    %c0_i32_1 = arith.constant 0 : i32
    return %c0_i32, %c0_i32_0 : i32, i32
  }
  func.func @transform_11(%arg0: i32) -> (i32, i32) {
    %c0_i32 = arith.constant 0 : i32
    %c0_i32_0 = arith.constant 0 : i32
    %c0_i32_1 = arith.constant 0 : i32
    return %c0_i32, %c0_i32_0 : i32, i32
  }
  func.func @transform_12(%arg0: i32) -> (i32, i32) {
    %c0_i32 = arith.constant 0 : i32
    %c0_i32_0 = arith.constant 0 : i32
    %c0_i32_1 = arith.constant 0 : i32
    return %c0_i32, %c0_i32_0 : i32, i32
  }
  func.func @transform_13(%arg0: i32) -> (i32, i32) {
    %c0_i32 = arith.constant 0 : i32
    %c0_i32_0 = arith.constant 0 : i32
    %c0_i32_1 = arith.constant 0 : i32
    return %c0_i32, %c0_i32_0 : i32, i32
  }
  func.func @transform_14(%arg0: i32) -> (i32, i32) {
    %c0_i32 = arith.constant 0 : i32
    %c0_i32_0 = arith.constant 0 : i32
    %c0_i32_1 = arith.constant 0 : i32
    return %c0_i32, %c0_i32_0 : i32, i32
  }
  func.func @transform_15(%arg0: i32) -> (i32, i32, i32) {
    %c0_i32 = arith.constant 0 : i32
    %c0_i32_0 = arith.constant 0 : i32
    %c0_i32_1 = arith.constant 0 : i32
    return %arg0, %c0_i32, %c0_i32_0 : i32, i32, i32
  }
}

</mosaic_0001>

<bundles_post_ra>
// kernel: tpu_custom_call.1
= control target key start
LH: loop header
LB: loop body
LE: loop exit
PB: predicated region body
PF: predicated region fallthrough
CT: control target
= control target key end

     0   :  { %s2998_s22 = smov 127   ;;  %vm294_vm0 = vcmask 523264   ;;  %v2999_v5 = vmov 0   ;;  %s3001_s16 = smov 126   ;;  %vm2046_vm1 = vcmask 785408   ;;  %vm2171_vm2 = vcmask 1043456   ;;  %s4400_s0 = inlined_call_operand.vmem [shape: f32[1,32,128], index: 0, kind: input, shape index: {}]   ;;  %s4401_s2 = inlined_call_operand.vmem [shape: f32[256,64], index: 2, kind: input, shape index: {}]   ;;  %s4402_s3 = inlined_call_operand.vmem [shape: f32[256,1], index: 3, kind: input, shape index: {}]   ;;  %s4403_s4 = inlined_call_operand.vmem [shape: f32[256,384], index: 4, kind: input, shape index: {}]   ;;  %s4404_s5 = inlined_call_operand.vmem [shape: f32[256,1], index: 5, kind: input, shape index: {}]   ;;  %s4405_s6 = inlined_call_operand.vmem [shape: f32[64,384], index: 6, kind: input, shape index: {}]   ;;  %s4406_s7 = inlined_call_operand.vmem [shape: f32[64,1], index: 7, kind: input, shape index: {}]   ;;  %s4407_s8 = inlined_call_operand.vmem [shape: f32[16,96], index: 8, kind: input, shape index: {}]   ;;  %s4408_s9 = inlined_call_operand.vmem [shape: f32[16,1], index: 9, kind: input, shape index: {}]   ;;  %s4409_s1 = inlined_call_operand.vmem [shape: f32[1,20,7], index: 1, kind: input, shape index: {}]   ;;  %s4410_s11 = inlined_call_operand.vmem [shape: f32[4,20], index: 11, kind: input, shape index: {}]   ;;  %s4411_s10 = inlined_call_operand.vmem [shape: f32[116,7], index: 10, kind: input, shape index: {}]   ;;  %s4412_s12 = inlined_call_operand.vmem [shape: f32[4,1], index: 12, kind: input, shape index: {}]   ;;  %s4413_s14 = inlined_call_operand.vmem [shape: f32[5,1], index: 14, kind: input, shape index: {}]   ;;  %s4414_s13 = inlined_call_operand.vmem [shape: f32[5,52], index: 13, kind: input, shape index: {}]   ;;  %s4415_s15 = inlined_call_operand.vmem [shape: f32[1,5,7], index: 15, kind: output, shape index: {}]  }
   0x1   :  { %v3089_v0 = vld [vmem:[%s4400_s0 + $0x18] sm:$0xff]  ;;  %v3094_v1 = vld [vmem:[%s4400_s0 + $0x8] sm:$0xff]  ;;  %v3103_v2 = vld [vmem:[%s4400_s0 + $0x10] sm:$0xff]  ;;  %2997 = vset.pattern.permute.xlu1 %v2999_v5  ;;  %2996 = vset.pattern.permute.xlu0 %v2999_v5  ;;  %vm3002_vm3 = vmmov 0   ;;  %vm2280_vm4 = vcmask 162816   ;;  %vm2158_vm5 = vcmask 949248  }
   0x2   :  { %64 = vrot.lane.b32.xlu0 %v3089_v0, %s2998_s22  ;;  %60 = vrot.lane.b32.xlu1 %v3094_v1, %s2998_s22  ;;  %v3108_v3 = vld [vmem:[%s4400_s0] sm:$0xff]  ;;  %v133_v6 = vld [vmem:[%s4402_s3 + $0xf8] sm:$0xff]  ;;  %s3004_s23 = smov 125   ;;  %s3005_s25 = smov 123   ;;  %vm2365_vm6 = vcmask 424960   ;;  %vm2442_vm7 = vcmask 53248  }
   0x3   :  { %v70_v4 = vld [vmem:[%s4401_s2] sm:$0xff]  ;;  %v116_v7 = vld [vmem:[%s4402_s3 + $0x70] sm:$0xff]  ;;  %v115_v8 = vld [vmem:[%s4402_s3 + $0x68] sm:$0xff] }
   0x4   :  { %2724 = vmatprep.mubr.msk.f32.mxu0 %vm294_vm0, %v70_v4  ;;  %v114_v9 = vld [vmem:[%s4402_s3 + $0x60] sm:$0xff]  ;;  %v113_v10 = vld [vmem:[%s4402_s3 + $0x58] sm:$0xff]  ;;  %v112_v11 = vld [vmem:[%s4402_s3 + $0x50] sm:$0xff] }
   0x5   :  { %v111_v12 = vld [vmem:[%s4402_s3 + $0x48] sm:$0xff]  ;;  %v117_v13 = vld [vmem:[%s4402_s3 + $0x78] sm:$0xff]  ;;  %v110_v14 = vld [vmem:[%s4402_s3 + $0x40] sm:$0xff] }
   0x6   :  { %62 = vrot.lane.b32.xlu0 %v3103_v2, %s2998_s22  ;;  %58 = vrot.lane.b32.xlu1 %v3108_v3, %s2998_s22  ;;  %v132_v15 = vld [vmem:[%s4402_s3 + $0xf0] sm:$0xff]  ;;  %v109_v16 = vld [vmem:[%s4402_s3 + $0x38] sm:$0xff] }
   0x7   :  { %v131_v17 = vld [vmem:[%s4402_s3 + $0xe8] sm:$0xff]  ;;  %v108_v18 = vld [vmem:[%s4402_s3 + $0x30] sm:$0xff]  ;;  %v130_v19 = vld [vmem:[%s4402_s3 + $0xe0] sm:$0xff] }
   0x8   :  { %v107_v20 = vld [vmem:[%s4402_s3 + $0x28] sm:$0xff]  ;;  %v129_v21 = vld [vmem:[%s4402_s3 + $0xd8] sm:$0xff]  ;;  %v106_v22 = vld [vmem:[%s4402_s3 + $0x20] sm:$0xff] }
   0x9   :  { %v128_v23 = vld [vmem:[%s4402_s3 + $0xd0] sm:$0xff]  ;;  %v105_v24 = vld [vmem:[%s4402_s3 + $0x18] sm:$0xff]  ;;  %v127_v25 = vld [vmem:[%s4402_s3 + $0xc8] sm:$0xff] }
   0xa   :  { %291 = vperm.xlu1 %2997, %v133_v6   ;;  %211 = vperm.xlu0 %2996, %v117_v13   ;;  %v104_v26 = vld [vmem:[%s4402_s3 + $0x10] sm:$0xff]  ;;  %v126_v27 = vld [vmem:[%s4402_s3 + $0xc0] sm:$0xff]  ;;  %v103_v28 = vld [vmem:[%s4402_s3 + $0x8] sm:$0xff] }
   0xb   :  { %v125_v29 = vld [vmem:[%s4402_s3 + $0xb8] sm:$0xff]  ;;  %v102_v30 = vld [vmem:[%s4402_s3] sm:$0xff]  ;;  %v124_v31 = vld [vmem:[%s4402_s3 + $0xb0] sm:$0xff] }
   0xc   :  { %v123_v32 = vld [vmem:[%s4402_s3 + $0xa8] sm:$0xff]  ;;  %v122_v33 = vld [vmem:[%s4402_s3 + $0xa0] sm:$0xff]  ;;  %v121_v34 = vld [vmem:[%s4402_s3 + $0x98] sm:$0xff] }
   0xd   :  { %v120_v35 = vld [vmem:[%s4402_s3 + $0x90] sm:$0xff]  ;;  %v119_v36 = vld [vmem:[%s4402_s3 + $0x88] sm:$0xff]  ;;  %v118_v37 = vld [vmem:[%s4402_s3 + $0x80] sm:$0xff] }
   0xe   :  { %206 = vperm.xlu1 %2997, %v116_v7   ;;  %286 = vperm.xlu0 %2996, %v132_v15   ;;  %v71_v42 = vld [vmem:[%s4401_s2 + $0x8] sm:$0xff]  ;;  %v72_v43 = vld [vmem:[%s4401_s2 + $0x10] sm:$0xff]  ;;  %v73_v44 = vld [vmem:[%s4401_s2 + $0x18] sm:$0xff] }
   0xf   :  { %v74_v45 = vld [vmem:[%s4401_s2 + $0x20] sm:$0xff]  ;;  %v75_v46 = vld [vmem:[%s4401_s2 + $0x28] sm:$0xff]  ;;  %v76_v47 = vld [vmem:[%s4401_s2 + $0x30] sm:$0xff] }
  0x10   :  { %v77_v48 = vld [vmem:[%s4401_s2 + $0x38] sm:$0xff]  ;;  %v78_v49 = vld [vmem:[%s4401_s2 + $0x40] sm:$0xff]  ;;  %v79_v50 = vld [vmem:[%s4401_s2 + $0x48] sm:$0xff] }
  0x11   :  { %v80_v51 = vld [vmem:[%s4401_s2 + $0x50] sm:$0xff]  ;;  %v81_v52 = vld [vmem:[%s4401_s2 + $0x58] sm:$0xff]  ;;  %v82_v53 = vld [vmem:[%s4401_s2 + $0x60] sm:$0xff] }
  0x12   :  { %201 = vperm.xlu1 %2997, %v115_v8   ;;  %281 = vperm.xlu0 %2996, %v131_v17   ;;  %v83_v54 = vld [vmem:[%s4401_s2 + $0x68] sm:$0xff]  ;;  %v84_v55 = vld [vmem:[%s4401_s2 + $0x70] sm:$0xff]  ;;  %v85_v56 = vld [vmem:[%s4401_s2 + $0x78] sm:$0xff] }
  0x13   :  { %v86_v57 = vld [vmem:[%s4401_s2 + $0x80] sm:$0xff]  ;;  %v87_v58 = vld [vmem:[%s4401_s2 + $0x88] sm:$0xff]  ;;  %v88_v59 = vld [vmem:[%s4401_s2 + $0x90] sm:$0xff] }
  0x14   :  { %v89_v60 = vld [vmem:[%s4401_s2 + $0x98] sm:$0xff]  ;;  %v90_v61 = vld [vmem:[%s4401_s2 + $0xa0] sm:$0xff]  ;;  %v91_v62 = vld [vmem:[%s4401_s2 + $0xa8] sm:$0xff] }
  0x15   :  { %v92_v63 = vld [vmem:[%s4401_s2 + $0xb0] sm:$0xff]  ;;  %v97_v4 = vld [vmem:[%s4401_s2 + $0xd8] sm:$0xff]  ;;  %v98_v5 = vld [vmem:[%s4401_s2 + $0xe0] sm:$0xff] }
  0x16   :  { %196 = vperm.xlu1 %2997, %v114_v9   ;;  %276 = vperm.xlu0 %2996, %v130_v19   ;;  %v99_v6 = vld [vmem:[%s4401_s2 + $0xe8] sm:$0xff]  ;;  %v100_v7 = vld [vmem:[%s4401_s2 + $0xf0] sm:$0xff]  ;;  %v101_v8 = vld [vmem:[%s4401_s2 + $0xf8] sm:$0xff]  ;;  %v4416_v9 = vmov 0.0  }
  0x17   :  { %1080 = vmatprep.subr.mxu1 %v4416_v9 }
  0x1a   :  { %191 = vperm.xlu1 %2997, %v113_v10   ;;  %271 = vperm.xlu0 %2996, %v129_v21  }
  0x1e   :  { %186 = vperm.xlu1 %2997, %v112_v11   ;;  %266 = vperm.xlu0 %2996, %v128_v23  }
  0x22   :  { %181 = vperm.xlu1 %2997, %v111_v12   ;;  %261 = vperm.xlu0 %2996, %v127_v25  }
  0x26   :  { %176 = vperm.xlu1 %2997, %v110_v14   ;;  %256 = vperm.xlu0 %2996, %v126_v27  }
  0x2a   :  { %171 = vperm.xlu1 %2997, %v109_v16   ;;  %251 = vperm.xlu0 %2996, %v125_v29  }
  0x2e   :  { %166 = vperm.xlu1 %2997, %v108_v18   ;;  %246 = vperm.xlu0 %2996, %v124_v31  }
  0x32   :  { %161 = vperm.xlu1 %2997, %v107_v20   ;;  %241 = vperm.xlu0 %2996, %v123_v32  }
  0x36   :  { %156 = vperm.xlu1 %2997, %v106_v22   ;;  %236 = vperm.xlu0 %2996, %v122_v33  }
  0x3a   :  { %151 = vperm.xlu1 %2997, %v105_v24   ;;  %231 = vperm.xlu0 %2996, %v121_v34  }
  0x3e   :  { %146 = vperm.xlu1 %2997, %v104_v26   ;;  %226 = vperm.xlu0 %2996, %v120_v35  }
  0x42   :  { %141 = vperm.xlu1 %2997, %v103_v28   ;;  %221 = vperm.xlu0 %2996, %v119_v36  }
  0x46   :  { %136 = vperm.xlu1 %2997, %v102_v30   ;;  %216 = vperm.xlu0 %2996, %v118_v37  }
  0x74   :  { %v65_v38 = vpop.permute.xlu0 %64  ;;  %v61_v39 = vpop.permute.xlu1 %60 }
  0x75   :  { %2708 = vmatprep.subr.mxu0 %v65_v38 }
  0x76   :  { %2709 = vmatpush3.msra.mxu0 %v65_v38 }
  0x78   :  { %v63_v40 = vpop.permute.xlu0 %62  ;;  %v59_v41 = vpop.permute.xlu1 %58 }
  0x79   :  { %2710 = vmatprep.subr.mxu0 %v63_v40 }
  0x7a   :  { %2711 = vmatpush3.msra.mxu0 %v63_v40 }
  0x7b   :  { %2712 = vmatprep.subr.mxu0 %v61_v39 }
  0x7c   :  { %2713 = vmatpush3.msra.mxu0 %v61_v39 }
  0x7d   :  { %2714 = vmatprep.subr.mxu0 %v59_v41 }
  0x7e   :  { %2715 = vmatpush3.msra.mxu0 %v59_v41 }
  0x7f   :  { %2716 = vmatprep.subr.mxu0 %v3089_v0 }
  0x80   :  { %2717 = vmatpush3.msra.mxu0 %v3089_v0  ;;  %v93_v0 = vld [vmem:[%s4401_s2 + $0xb8] sm:$0xff] }
  0x81   :  { %2718 = vmatprep.subr.mxu0 %v3103_v2 }
  0x82   :  { %2719 = vmatpush3.msra.mxu0 %v3103_v2  ;;  %v95_v2 = vld [vmem:[%s4401_s2 + $0xc8] sm:$0xff] }
  0x83   :  { %2720 = vmatprep.subr.mxu0 %v3094_v1 }
  0x84   :  { %2721 = vmatpush3.msra.mxu0 %v3094_v1  ;;  %v94_v1 = vld [vmem:[%s4401_s2 + $0xc0] sm:$0xff] }
  0x85   :  { %2722 = vmatprep.subr.mxu0 %v3108_v3  ;;  %v292_v10 = vpop.permute.xlu1 %291  ;;  %v212_v11 = vpop.permute.xlu0 %211 }
  0x86   :  { %2723 = vmatpush3.msra.mxu0 %v3108_v3  ;;  %v96_v3 = vld [vmem:[%s4401_s2 + $0xd0] sm:$0xff] }
  0x87   :  { %2725 = vmatmul.mubr.msk.f32.vlgmr.msra.gmra.mxu0 %vm294_vm0, %v71_v42 }
  0x88   :  { %2727 = vmatprep.mubr.msk.f32.mxu0 %vm294_vm0, %v72_v43 }
  0x89   :  { %v207_v12 = vpop.permute.xlu1 %206  ;;  %v3347_v13 = vpop.permute.xlu0 %286 }
  0x8b   :  { %2728 = vmatmul.mubr.msk.f32.gmra.mxu0 %vm294_vm0, %v73_v44 }
  0x8c   :  { %2730 = vmatprep.mubr.msk.f32.mxu0 %vm294_vm0, %v74_v45 }
  0x8d   :  { %v202_v17 = vpop.permute.xlu1 %201  ;;  %v282_v18 = vpop.permute.xlu0 %281 }
  0x8f   :  { %2731 = vmatmul.mubr.msk.f32.gmra.mxu0 %vm294_vm0, %v75_v46 }
  0x90   :  { %2733 = vmatprep.mubr.msk.f32.mxu0 %vm294_vm0, %v76_v47 }
  0x91   :  { %v197_v22 = vpop.permute.xlu1 %196  ;;  %v277_v23 = vpop.permute.xlu0 %276 }
  0x93   :  { %2734 = vmatmul.mubr.msk.f32.gmra.mxu0 %vm294_vm0, %v77_v48 }
  0x94   :  { %2736 = vmatprep.mubr.msk.f32.mxu0 %vm294_vm0, %v78_v49 }
  0x95   :  { %v192_v27 = vpop.permute.xlu1 %191  ;;  %v272_v28 = vpop.permute.xlu0 %271 }
  0x97   :  { %2737 = vmatmul.mubr.msk.f32.gmra.mxu0 %vm294_vm0, %v79_v50 }
  0x98   :  { %2739 = vmatprep.mubr.msk.f32.mxu0 %vm294_vm0, %v80_v51 }
  0x99   :  { %v187_v32 = vpop.permute.xlu1 %186  ;;  %v267_v33 = vpop.permute.xlu0 %266 }
  0x9b   :  { %2740 = vmatmul.mubr.msk.f32.gmra.mxu0 %vm294_vm0, %v81_v52 }
  0x9c   :  { %2742 = vmatprep.mubr.msk.f32.mxu0 %vm294_vm0, %v82_v53 }
  0x9d   :  { %v182_v37 = vpop.permute.xlu1 %181  ;;  %v262_v38 = vpop.permute.xlu0 %261 }
  0x9f   :  { %2743 = vmatmul.mubr.msk.f32.gmra.mxu0 %vm294_vm0, %v83_v54 }
  0xa0   :  { %2745 = vmatprep.mubr.msk.f32.mxu0 %vm294_vm0, %v84_v55 }
  0xa1   :  { %v177_v42 = vpop.permute.xlu1 %176  ;;  %v257_v43 = vpop.permute.xlu0 %256 }
  0xa3   :  { %2746 = vmatmul.mubr.msk.f32.gmra.mxu0 %vm294_vm0, %v85_v56 }
  0xa4   :  { %2748 = vmatprep.mubr.msk.f32.mxu0 %vm294_vm0, %v86_v57 }
  0xa5   :  { %v3379_v47 = vpop.permute.xlu1 %171  ;;  %v252_v48 = vpop.permute.xlu0 %251 }
  0xa7   :  { %2749 = vmatmul.mubr.msk.f32.gmra.mxu0 %vm294_vm0, %v87_v58 }
  0xa8   :  { %2751 = vmatprep.mubr.msk.f32.mxu0 %vm294_vm0, %v88_v59 }
  0xa9   :  { %v3385_v52 = vpop.permute.xlu1 %166  ;;  %v3387_v53 = vpop.permute.xlu0 %246 }
  0xab   :  { %2752 = vmatmul.mubr.msk.f32.gmra.mxu0 %vm294_vm0, %v89_v60 }
  0xac   :  { %2754 = vmatprep.mubr.msk.f32.mxu0 %vm294_vm0, %v90_v61 }
  0xad   :  { %v3389_v57 = vpop.permute.xlu1 %161  ;;  %v3391_v58 = vpop.permute.xlu0 %241 }
  0xaf   :  { %2755 = vmatmul.mubr.msk.f32.gmra.mxu0 %vm294_vm0, %v91_v62 }
  0xb0   :  { %2757 = vmatprep.mubr.msk.f32.mxu0 %vm294_vm0, %v92_v63 }
  0xb1   :  { %v3393_v63 = vpop.permute.xlu1 %156 }
  0xb3   :  { %2758 = vmatmul.mubr.msk.f32.gmra.mxu0 %vm294_vm0, %v93_v0 }
  0xb4   :  { %2760 = vmatprep.mubr.msk.f32.mxu0 %vm294_vm0, %v94_v1  ;;  %v3395_v1 = vpop.permute.xlu0 %236 }
  0xb7   :  { %2761 = vmatmul.mubr.msk.f32.gmra.mxu0 %vm294_vm0, %v95_v2 }
  0xb8   :  { %2763 = vmatprep.mubr.msk.f32.mxu0 %vm294_vm0, %v96_v3 }
  0xbb   :  { %2764 = vmatmul.mubr.msk.f32.gmra.mxu0 %vm294_vm0, %v97_v4 }
  0xbc   :  { %2766 = vmatprep.mubr.msk.f32.mxu0 %vm294_vm0, %v98_v5 }
  0xbf   :  { %2767 = vmatmul.mubr.msk.f32.gmra.mxu0 %vm294_vm0, %v99_v6 }
  0xc0   :  { %2769 = vmatprep.mubr.msk.f32.mxu0 %vm294_vm0, %v100_v7 }
  0xc3   :  { %2770 = vmatmul.mubr.msk.f32.gmra.mxu0 %vm294_vm0, %v101_v8 }
 0x147   :  { %v3349_v14 = vpop.f32.mrf.mxu0 }
 0x148   :  { %4419 = vst [vmem:[#allocation2_spill] sm:$0xff] %v3349_v14 }
 0x149   :  { %v3351_v15 = vpop.f32.mrf.mxu0 }
 0x14a   :  { %4420 = vst [vmem:[#allocation3_spill] sm:$0xff] %v3351_v15 }
 0x14b   :  { %v3353_v16 = vpop.f32.mrf.mxu0 }
 0x14d   :  { %v3355_v19 = vpop.f32.mrf.mxu0 }
 0x14e   :  { %4421 = vst [vmem:[#allocation4_spill] sm:$0xff] %v3355_v19 }
 0x14f   :  { %v3357_v20 = vpop.f32.mrf.mxu0 }
 0x151   :  { %v3359_v21 = vpop.f32.mrf.mxu0 }
 0x153   :  { %v3361_v24 = vpop.f32.mrf.mxu0 }
 0x155   :  { %v3363_v25 = vpop.f32.mrf.mxu0 }
 0x157   :  { %v3365_v26 = vpop.f32.mrf.mxu0 }
 0x159   :  { %v3367_v29 = vpop.f32.mrf.mxu0 }
 0x15b   :  { %v2741_v30 = vpop.f32.mrf.mxu0 }
 0x15d   :  { %v507_v31 = vpop.f32.mrf.mxu0 }
 0x15f   :  { %v2744_v34 = vpop.f32.mrf.mxu0 }
 0x160   :  { %v523_v2 = vadd.f32 %v2744_v34, %v202_v17  ;;  %v232_v34 = vpop.permute.xlu0 %231 }
 0x161   :  { %v517_v35 = vpop.f32.mrf.mxu0 }
 0x162   :  { %v518_v7 = vadd.f32 %v517_v35, %v197_v22 }
 0x163   :  { %v2747_v36 = vpop.f32.mrf.mxu0 }
 0x164   :  { %v533_v61 = vadd.f32 %v2747_v36, %v212_v11  ;;  %v513_v11 = vadd.f32 %v2741_v30, %v192_v27  ;;  %v629_v36 = vmax.f32 %v523_v2, 0.0  ;;  %v478_v2 = vadd.f32 %v3359_v21, %v3393_v63 }
 0x165   :  { %v527_v39 = vpop.f32.mrf.mxu0 }
 0x166   :  { %v528_v3 = vadd.f32 %v527_v39, %v207_v12  ;;  %v631_v8 = vmax.f32 %v533_v61, 0.0 }
 0x167   :  { %v3369_v40 = vpop.f32.mrf.mxu0 }
 0x168   :  { %4422 = vst [vmem:[#allocation5_spill] sm:$0xff] %v3369_v40  ;;  %v630_v19 = vmax.f32 %v528_v3, 0.0 }
 0x169   :  { %v3371_v41 = vpop.f32.mrf.mxu0 }
 0x16a   :  { %4423 = vst [vmem:[#allocation6_spill] sm:$0xff] %v3371_v41 }
 0x16b   :  { %v3373_v44 = vpop.f32.mrf.mxu0 }
 0x16c   :  { %v553_v3 = vadd.f32 %v3373_v44, %v232_v34 }
 0x16d   :  { %v3375_v45 = vpop.f32.mrf.mxu0 }
 0x16e   :  { %4424 = vst [vmem:[#allocation7_spill] sm:$0xff] %v3375_v45  ;;  %v3398_v45 = vpop.permute.xlu1 %151 }
 0x16f   :  { %v3377_v46 = vpop.f32.mrf.mxu0 }
 0x171   :  { %v3381_v49 = vpop.f32.mrf.mxu0 }
 0x173   :  { %v2759_v50 = vpop.f32.mrf.mxu0 }
 0x175   :  { %v3383_v51 = vpop.f32.mrf.mxu0  ;;  %v4426_v21 = vld [vmem:[#allocation7_spill] sm:$0xff] }
 0x177   :  { %v2762_v54 = vpop.f32.mrf.mxu0 }
 0x178   :  { %v583_v22 = vadd.f32 %v2762_v54, %v262_v38  ;;  %v493_v38 = vadd.f32 %v3361_v24, %v3379_v47  ;;  %v563_v47 = vadd.f32 %v3377_v46, %v3391_v58 }
 0x179   :  { %v577_v55 = vpop.f32.mrf.mxu0 }
 0x17a   :  { %v578_v27 = vadd.f32 %v577_v55, %v257_v43  ;;  %v483_v55 = vadd.f32 %v3357_v20, %v3389_v57 }
 0x17b   :  { %v2765_v56 = vpop.f32.mrf.mxu0 }
 0x17c   :  { %v593_v15 = vadd.f32 %v2765_v56, %v272_v28 }
 0x17d   :  { %v587_v59 = vpop.f32.mrf.mxu0 }
 0x17e   :  { %v643_v35 = vmax.f32 %v593_v15, 0.0 }
 0x17f   :  { %v2768_v60 = vpop.f32.mrf.mxu0 }
 0x180   :  { %v603_v0 = vadd.f32 %v2768_v60, %v282_v18  ;;  %v588_v18 = vadd.f32 %v587_v59, %v267_v33  ;;  %v641_v33 = vmax.f32 %v583_v22, 0.0  ;;  %v623_v59 = vmax.f32 %v493_v38, 0.0 }
 0x181   :  { %v597_v62 = vpop.f32.mrf.mxu0 }
 0x182   :  { %v598_v5 = vadd.f32 %v597_v62, %v277_v23  ;;  %v645_v41 = vmax.f32 %v603_v0, 0.0  ;;  %v508_v23 = vadd.f32 %v507_v31, %v187_v32  ;;  %v642_v30 = vmax.f32 %v588_v18, 0.0  ;;  %v147_v32 = vpop.permute.xlu1 %146 }
 0x183   :  { %v2771_v4 = vpop.f32.mrf.mxu0  ;;  %v4425_v31 = vmov 0.0   ;;  %v620_v18 = vmax.f32 %v478_v2, 0.0  ;;  %v897_v2 = vld [vmem:[%s4404_s5 + $0x48] sm:$0xff] }
 0x184   :  { %v613_v6 = vadd.f32 %v2771_v4, %v292_v10  ;;  %v644_v60 = vmax.f32 %v598_v5, 0.0  ;;  %v628_v10 = vmax.f32 %v518_v7, 0.0  ;;  %v661_v39 = vadd.f32 %v645_v41, %v629_v36  ;;  %v227_v41 = vpop.permute.xlu0 %226 }
 0x185   :  { %v607_v9 = vpop.f32.mrf.mxu0  ;;  %v626_v15 = vmax.f32 %v508_v23, 0.0  ;;  %v637_v4 = vmax.f32 %v563_v47, 0.0  ;;  %v473_v5 = vadd.f32 %v3353_v16, %v3398_v45  ;;  %v548_v63 = vadd.f32 %v4426_v21, %v227_v41  ;;  %v4428_v45 = vld [vmem:[#allocation5_spill] sm:$0xff]  ;;  %v4429_v23 = vld [vmem:[#allocation2_spill] sm:$0xff]  ;;  %v909_v21 = vld [vmem:[%s4404_s5 + $0xa8] sm:$0xff] }
 0x186   :  { %v647_v14 = vmax.f32 %v613_v6, 0.0  ;;  %v608_v40 = vadd.f32 %v607_v9, %v3347_v13  ;;  %v503_v9 = vadd.f32 %v3365_v26, %v182_v37  ;;  %v627_v13 = vmax.f32 %v513_v11, 0.0  ;;  %v4427_v11 = vld [vmem:[#allocation4_spill] sm:$0xff] }
 0x187   :  { %v660_v61 = vadd.f32 %v644_v60, %v628_v10  ;;  %v3410_v37 = vmul.f32 0.5, %v661_v39  ;;  %v658_v43 = vadd.f32 %v642_v30, %v626_v15  ;;  %v621_v6 = vmax.f32 %v483_v55, 0.0  ;;  %v4430_v39 = vld [vmem:[#allocation6_spill] sm:$0xff]  ;;  %v793_v30 = vld [vmem:[%s4403_s4 + $0x8] sm:$0xff] }
 0x188   :  { %v663_v17 = vadd.f32 %v647_v14, %v631_v8  ;;  %v646_v12 = vmax.f32 %v608_v40, 0.0  ;;  %v498_v14 = vadd.f32 %v3367_v29, %v177_v42  ;;  %v659_v26 = vadd.f32 %v643_v35, %v627_v13  ;;  %v222_v57 = vpop.permute.xlu0 %221  ;;  %1144 = vmatprep.mubr.f32.mxu1 %v793_v30  ;;  %v917_v55 = vld [vmem:[%s4404_s5 + $0xe8] sm:$0xff] }
 0x189   :  { %v625_v40 = vmax.f32 %v503_v9, 0.0  ;;  %v568_v29 = vadd.f32 %v3383_v51, %v3387_v53  ;;  %v640_v42 = vmax.f32 %v578_v27, 0.0  ;;  %v3440_v0 = vmul.f32 0.5, %v658_v43 }
 0x18a   :  { %v3400_v28 = vmul.f32 0.5, %v663_v17  ;;  %v662_v56 = vadd.f32 %v646_v12, %v630_v19  ;;  %v573_v19 = vadd.f32 %v2759_v50, %v252_v48  ;;  %v3420_v48 = vmul.f32 0.5, %v660_v61  ;;  %v4431_v61 = vld [vmem:[#allocation3_spill] sm:$0xff] }
 0x18b   :  { %v488_v50 = vadd.f32 %v3363_v25, %v3385_v52  ;;  %v624_v24 = vmax.f32 %v498_v14, 0.0  ;;  %v657_v51 = vadd.f32 %v641_v33, %v625_v40  ;;  %v3430_v53 = vmul.f32 0.5, %v659_v26  ;;  %v142_v25 = vpop.permute.xlu1 %141 }
 0x18c   :  { %v3403_v62 = vmul.f32 0.5, %v662_v56  ;;  %726 = vrot.lane.b32.xlu1 %v3400_v28, %s2998_s22  ;;  %1081 = vmatpush1.msra.mxu1 %v3400_v28  ;;  %v639_v54 = vmax.f32 %v573_v19, 0.0  ;;  %v558_v52 = vadd.f32 %v3381_v49, %v3395_v1  ;;  %v638_v46 = vmax.f32 %v568_v29, 0.0  ;;  %v217_v35 = vpop.permute.xlu0 %216 }
 0x18d   :  { %1082 = vmatprep.subr.mxu1 %v4425_v31  ;;  %v656_v58 = vadd.f32 %v640_v42, %v624_v24  ;;  %v622_v20 = vmax.f32 %v488_v50, 0.0  ;;  %v3449_v1 = vmul.f32 0.5, %v657_v51  ;;  %v468_v36 = vadd.f32 %v4427_v11, %v147_v32  ;;  %v918_v51 = vld [vmem:[%s4404_s5 + $0xf0] sm:$0xff] }
 0x18e   :  { %724 = vrot.lane.b32.xlu0 %v3403_v62, %s2998_s22  ;;  %1083 = vmatpush1.msra.mxu1 %v3403_v62  ;;  %v655_v49 = vadd.f32 %v639_v54, %v623_v59  ;;  %v636_v7 = vmax.f32 %v558_v52, 0.0  ;;  %v543_v60 = vadd.f32 %v4428_v45, %v222_v57  ;;  %v635_v17 = vmax.f32 %v553_v3, 0.0  ;;  %v900_v59 = vld [vmem:[%s4404_s5 + $0x60] sm:$0xff]  ;;  %v899_v52 = vld [vmem:[%s4404_s5 + $0x58] sm:$0xff]  ;;  %v890_v11 = vld [vmem:[%s4404_s5 + $0x10] sm:$0xff] }
 0x18f   :  { %1084 = vmatprep.subr.mxu1 %v4425_v31  ;;  %v654_v8 = vadd.f32 %v638_v46, %v622_v20  ;;  %v3458_v44 = vmul.f32 0.5, %v656_v58  ;;  %v137_v16 = vpop.permute.xlu1 %136  ;;  %v653_v12 = vadd.f32 %v637_v4, %v621_v6  ;;  %v463_v10 = vadd.f32 %v4429_v23, %v142_v25  ;;  %v916_v25 = vld [vmem:[%s4404_s5 + $0xe0] sm:$0xff]  ;;  %v915_v46 = vld [vmem:[%s4404_s5 + $0xd8] sm:$0xff]  ;;  %v898_v58 = vld [vmem:[%s4404_s5 + $0x50] sm:$0xff] }
 0x190   :  { %722 = vrot.lane.b32.xlu1 %v3410_v37, %s2998_s22  ;;  %1085 = vmatpush1.msra.mxu1 %v3410_v37  ;;  %v671_v34 = vmul.f32 0.5, %v655_v49  ;;  %v619_v22 = vmax.f32 %v473_v5, 0.0  ;;  %v538_v56 = vadd.f32 %v4430_v39, %v217_v35  ;;  %v634_v9 = vmax.f32 %v548_v63, 0.0  ;;  %v913_v20 = vld [vmem:[%s4404_s5 + $0xc8] sm:$0xff]  ;;  %v896_v57 = vld [vmem:[%s4404_s5 + $0x40] sm:$0xff]  ;;  %v895_v4 = vld [vmem:[%s4404_s5 + $0x38] sm:$0xff] }
 0x191   :  { %1086 = vmatprep.subr.mxu1 %v4425_v31  ;;  %v652_v13 = vadd.f32 %v636_v7, %v620_v18  ;;  %v670_v27 = vmul.f32 0.5, %v654_v8  ;;  %v458_v14 = vadd.f32 %v4431_v61, %v137_v16  ;;  %v618_v15 = vmax.f32 %v468_v36, 0.0  ;;  %v912_v3 = vld [vmem:[%s4404_s5 + $0xc0] sm:$0xff]  ;;  %v911_v49 = vld [vmem:[%s4404_s5 + $0xb8] sm:$0xff]  ;;  %v910_v5 = vld [vmem:[%s4404_s5 + $0xb0] sm:$0xff] }
 0x192   :  { %720 = vrot.lane.b32.xlu0 %v3420_v48, %s2998_s22  ;;  %1087 = vmatpush1.msra.mxu1 %v3420_v48  ;;  %v633_v32 = vmax.f32 %v543_v60, 0.0  ;;  %v651_v19 = vadd.f32 %v635_v17, %v619_v22  ;;  %v669_v33 = vmul.f32 0.5, %v653_v12  ;;  %v617_v26 = vmax.f32 %v463_v10, 0.0  ;;  %v893_v6 = vld [vmem:[%s4404_s5 + $0x28] sm:$0xff]  ;;  %v892_v63 = vld [vmem:[%s4404_s5 + $0x20] sm:$0xff]  ;;  %v891_v8 = vld [vmem:[%s4404_s5 + $0x18] sm:$0xff] }
 0x193   :  { %1088 = vmatprep.subr.mxu1 %v4425_v31  ;;  %v632_v38 = vmax.f32 %v538_v56, 0.0  ;;  %v650_v40 = vadd.f32 %v634_v9, %v618_v15  ;;  %v668_v41 = vmul.f32 0.5, %v652_v13  ;;  %v616_v29 = vmax.f32 %v458_v14, 0.0  ;;  %v908_v7 = vld [vmem:[%s4404_s5 + $0xa0] sm:$0xff]  ;;  %v906_v18 = vld [vmem:[%s4404_s5 + $0x90] sm:$0xff]  ;;  %v889_v45 = vld [vmem:[%s4404_s5 + $0x8] sm:$0xff] }
 0x194   :  { %718 = vrot.lane.b32.xlu1 %v3430_v53, %s2998_s22  ;;  %1089 = vmatpush1.msra.mxu1 %v3430_v53  ;;  %v649_v42 = vadd.f32 %v633_v32, %v617_v26  ;;  %v667_v43 = vmul.f32 0.5, %v651_v19  ;;  %v905_v17 = vld [vmem:[%s4404_s5 + $0x88] sm:$0xff]  ;;  %v904_v10 = vld [vmem:[%s4404_s5 + $0x80] sm:$0xff]  ;;  %v795_v26 = vld [vmem:[%s4403_s4 + $0x18] sm:$0xff] }
 0x195   :  { %1090 = vmatprep.subr.mxu1 %v4425_v31  ;;  %v648_v50 = vadd.f32 %v632_v38, %v616_v29  ;;  %v666_v24 = vmul.f32 0.5, %v650_v40  ;;  %v792_v15 = vld [vmem:[%s4403_s4] sm:$0xff]  ;;  %v799_v40 = vld [vmem:[%s4403_s4 + $0x38] sm:$0xff]  ;;  %v798_v29 = vld [vmem:[%s4403_s4 + $0x30] sm:$0xff] }
 0x196   :  { %716 = vrot.lane.b32.xlu0 %v3440_v0, %s2998_s22  ;;  %1091 = vmatpush1.msra.mxu1 %v3440_v0  ;;  %v665_v47 = vmul.f32 0.5, %v649_v42  ;;  %v796_v19 = vld [vmem:[%s4403_s4 + $0x20] sm:$0xff] }
 0x197   :  { %1092 = vmatprep.subr.mxu1 %v4425_v31  ;;  %v664_v54 = vmul.f32 0.5, %v648_v50 }
 0x198   :  { %714 = vrot.lane.b32.xlu1 %v3449_v1, %s2998_s22  ;;  %1093 = vmatpush1.msra.mxu1 %v3449_v1 }
 0x199   :  { %1094 = vmatprep.subr.mxu1 %v4425_v31 }
 0x19a   :  { %712 = vrot.lane.b32.xlu0 %v3458_v44, %s2998_s22  ;;  %1095 = vmatpush1.msra.mxu1 %v3458_v44 }
 0x19b   :  { %1096 = vmatprep.subr.mxu1 %v4425_v31 }
 0x19c   :  { %710 = vrot.lane.b32.xlu1 %v671_v34, %s2998_s22  ;;  %1097 = vmatpush1.msra.mxu1 %v671_v34 }
 0x19d   :  { %1098 = vmatprep.subr.mxu1 %v4425_v31 }
 0x19e   :  { %708 = vrot.lane.b32.xlu0 %v670_v27, %s2998_s22  ;;  %1099 = vmatpush1.msra.mxu1 %v670_v27 }
 0x19f   :  { %1100 = vmatprep.subr.mxu1 %v4425_v31 }
 0x1a0   :  { %706 = vrot.lane.b32.xlu1 %v669_v33, %s2998_s22  ;;  %1101 = vmatpush1.msra.mxu1 %v669_v33 }
 0x1a1   :  { %1102 = vmatprep.subr.mxu1 %v4425_v31 }
 0x1a2   :  { %704 = vrot.lane.b32.xlu0 %v668_v41, %s2998_s22  ;;  %1103 = vmatpush1.msra.mxu1 %v668_v41 }
 0x1a3   :  { %1104 = vmatprep.subr.mxu1 %v4425_v31 }
 0x1a4   :  { %702 = vrot.lane.b32.xlu1 %v667_v43, %s2998_s22  ;;  %1105 = vmatpush1.msra.mxu1 %v667_v43 }
 0x1a5   :  { %1106 = vmatprep.subr.mxu1 %v4425_v31 }
 0x1a6   :  { %700 = vrot.lane.b32.xlu0 %v666_v24, %s2998_s22  ;;  %1107 = vmatpush1.msra.mxu1 %v666_v24 }
 0x1a7   :  { %1108 = vmatprep.subr.mxu1 %v4425_v31 }
 0x1a8   :  { %698 = vrot.lane.b32.xlu1 %v665_v47, %s2998_s22  ;;  %1109 = vmatpush1.msra.mxu1 %v665_v47 }
 0x1a9   :  { %1110 = vmatprep.subr.mxu1 %v4425_v31 }
 0x1aa   :  { %696 = vrot.lane.b32.xlu0 %v664_v54, %s2998_s22  ;;  %1111 = vmatpush1.msra.mxu1 %v664_v54 }
 0x1ab   :  { %1112 = vmatprep.subr.mxu1 %v4425_v31 }
 0x1ac   :  { %774 = vrot.lane.b32.xlu1 %v3400_v28, %s3001_s16  ;;  %v794_v28 = vld [vmem:[%s4403_s4 + $0x10] sm:$0xff] }
 0x1ad   :  { %2804 = vmatprep.mubr.f32.mxu0 %v794_v28 }
 0x1ae   :  { %772 = vrot.lane.b32.xlu0 %v3403_v62, %s3001_s16  ;;  %v903_v62 = vld [vmem:[%s4404_s5 + $0x78] sm:$0xff] }
 0x1b0   :  { %770 = vrot.lane.b32.xlu1 %v3410_v37, %s3001_s16  ;;  %v919_v37 = vld [vmem:[%s4404_s5 + $0xf8] sm:$0xff] }
 0x1b2   :  { %768 = vrot.lane.b32.xlu0 %v3420_v48, %s3001_s16  ;;  %v902_v48 = vld [vmem:[%s4404_s5 + $0x70] sm:$0xff] }
 0x1b4   :  { %766 = vrot.lane.b32.xlu1 %v3430_v53, %s3001_s16  ;;  %v901_v53 = vld [vmem:[%s4404_s5 + $0x68] sm:$0xff] }
 0x1b6   :  { %764 = vrot.lane.b32.xlu0 %v3440_v0, %s3001_s16  ;;  %v914_v0 = vld [vmem:[%s4404_s5 + $0xd0] sm:$0xff] }
 0x1b8   :  { %762 = vrot.lane.b32.xlu1 %v3449_v1, %s3001_s16  ;;  %v894_v1 = vld [vmem:[%s4404_s5 + $0x30] sm:$0xff] }
 0x1ba   :  { %760 = vrot.lane.b32.xlu0 %v3458_v44, %s3001_s16  ;;  %v907_v44 = vld [vmem:[%s4404_s5 + $0x98] sm:$0xff] }
 0x1bc   :  { %758 = vrot.lane.b32.xlu1 %v671_v34, %s3001_s16  ;;  %v888_v34 = vld [vmem:[%s4404_s5] sm:$0xff] }
 0x1be   :  { %756 = vrot.lane.b32.xlu0 %v670_v27, %s3001_s16 }
 0x1c0   :  { %754 = vrot.lane.b32.xlu1 %v669_v33, %s3001_s16 }
 0x1c2   :  { %752 = vrot.lane.b32.xlu0 %v668_v41, %s3001_s16 }
 0x1c4   :  { %750 = vrot.lane.b32.xlu1 %v667_v43, %s3001_s16  ;;  %v802_v43 = vld [vmem:[%s4403_s4 + $0x50] sm:$0xff] }
 0x1c6   :  { %748 = vrot.lane.b32.xlu0 %v666_v24, %s3001_s16  ;;  %v801_v24 = vld [vmem:[%s4403_s4 + $0x48] sm:$0xff] }
 0x1c8   :  { %746 = vrot.lane.b32.xlu1 %v665_v47, %s3001_s16 }
 0x1ca   :  { %744 = vrot.lane.b32.xlu0 %v664_v54, %s3001_s16  ;;  %v805_v54 = vld [vmem:[%s4403_s4 + $0x68] sm:$0xff] }
 0x1cc   :  { %997 = vperm.xlu1 %2997, %v903_v62   ;;  %v804_v62 = vld [vmem:[%s4403_s4 + $0x60] sm:$0xff] }
 0x1ce   :  { %1077 = vperm.xlu0 %2996, %v919_v37  }
 0x1d0   :  { %992 = vperm.xlu1 %2997, %v902_v48   ;;  %v808_v48 = vld [vmem:[%s4403_s4 + $0x80] sm:$0xff] }
 0x1d2   :  { %1072 = vperm.xlu0 %2996, %v918_v51  }
 0x1d4   :  { %987 = vperm.xlu1 %2997, %v901_v53   ;;  %v807_v53 = vld [vmem:[%s4403_s4 + $0x78] sm:$0xff] }
 0x1d6   :  { %1067 = vperm.xlu0 %2996, %v917_v55  }
 0x1d8   :  { %982 = vperm.xlu1 %2997, %v900_v59   ;;  %v811_v59 = vld [vmem:[%s4403_s4 + $0x98] sm:$0xff] }
 0x1da   :  { %1062 = vperm.xlu0 %2996, %v916_v25  }
 0x1dc   :  { %977 = vperm.xlu1 %2997, %v899_v52   ;;  %v810_v52 = vld [vmem:[%s4403_s4 + $0x90] sm:$0xff] }
 0x1de   :  { %1057 = vperm.xlu0 %2996, %v915_v46  }
 0x1e0   :  { %972 = vperm.xlu1 %2997, %v898_v58   ;;  %v814_v58 = vld [vmem:[%s4403_s4 + $0xb0] sm:$0xff] }
 0x1e2   :  { %1052 = vperm.xlu0 %2996, %v914_v0  }
 0x1e4   :  { %967 = vperm.xlu1 %2997, %v897_v2   ;;  %v813_v2 = vld [vmem:[%s4403_s4 + $0xa8] sm:$0xff] }
 0x1e6   :  { %1047 = vperm.xlu0 %2996, %v913_v20  }
 0x1e8   :  { %962 = vperm.xlu1 %2997, %v896_v57   ;;  %v817_v57 = vld [vmem:[%s4403_s4 + $0xc8] sm:$0xff] }
 0x1ea   :  { %1042 = vperm.xlu0 %2996, %v912_v3  }
 0x1ec   :  { %957 = vperm.xlu1 %2997, %v895_v4   ;;  %v816_v4 = vld [vmem:[%s4403_s4 + $0xc0] sm:$0xff] }
 0x1ee   :  { %1037 = vperm.xlu0 %2996, %v911_v49  }
 0x1f0   :  { %952 = vperm.xlu1 %2997, %v894_v1   ;;  %v797_v1 = vld [vmem:[%s4403_s4 + $0x28] sm:$0xff] }
 0x1f2   :  { %1032 = vperm.xlu0 %2996, %v910_v5   ;;  %v820_v5 = vld [vmem:[%s4403_s4 + $0xe0] sm:$0xff] }
 0x1f4   :  { %947 = vperm.xlu1 %2997, %v893_v6   ;;  %v800_v6 = vld [vmem:[%s4403_s4 + $0x40] sm:$0xff] }
 0x1f6   :  { %1027 = vperm.xlu0 %2996, %v909_v21   ;;  %v819_v21 = vld [vmem:[%s4403_s4 + $0xd8] sm:$0xff] }
 0x1f8   :  { %942 = vperm.xlu1 %2997, %v892_v63   ;;  %v803_v63 = vld [vmem:[%s4403_s4 + $0x58] sm:$0xff] }
 0x1fa   :  { %1022 = vperm.xlu0 %2996, %v908_v7   ;;  %v823_v7 = vld [vmem:[%s4403_s4 + $0xf8] sm:$0xff] }
 0x1fc   :  { %937 = vperm.xlu1 %2997, %v891_v8   ;;  %v806_v8 = vld [vmem:[%s4403_s4 + $0x70] sm:$0xff] }
 0x1fe   :  { %1017 = vperm.xlu0 %2996, %v907_v44   ;;  %v727_v36 = vpop.permute.xlu1 %726  ;;  %v822_v44 = vld [vmem:[%s4403_s4 + $0xf0] sm:$0xff] }
 0x1ff   :  { %1113 = vmatpush2.msra.mxu1 %v727_v36  ;;  %v826_v36 = vld [vmem:[%s4403_s4 + $0x110] sm:$0xff] }
 0x200   :  { %v725_v16 = vpop.permute.xlu0 %724  ;;  %932 = vperm.xlu1 %2997, %v890_v11   ;;  %1114 = vmatprep.subr.mxu1 %v4425_v31  ;;  %v809_v11 = vld [vmem:[%s4403_s4 + $0x88] sm:$0xff] }
 0x201   :  { %1115 = vmatpush2.msra.mxu1 %v725_v16  ;;  %v825_v16 = vld [vmem:[%s4403_s4 + $0x108] sm:$0xff] }
 0x202   :  { %1012 = vperm.xlu0 %2996, %v906_v18   ;;  %1116 = vmatprep.subr.mxu1 %v4425_v31  ;;  %v723_v60 = vpop.permute.xlu1 %722  ;;  %v812_v18 = vld [vmem:[%s4403_s4 + $0xa0] sm:$0xff] }
 0x203   :  { %1117 = vmatpush2.msra.mxu1 %v723_v60  ;;  %v829_v60 = vld [vmem:[%s4403_s4 + $0x128] sm:$0xff] }
 0x204   :  { %v721_v12 = vpop.permute.xlu0 %720  ;;  %927 = vperm.xlu1 %2997, %v889_v45   ;;  %1118 = vmatprep.subr.mxu1 %v4425_v31  ;;  %v815_v45 = vld [vmem:[%s4403_s4 + $0xb8] sm:$0xff] }
 0x205   :  { %1119 = vmatpush2.msra.mxu1 %v721_v12  ;;  %v828_v12 = vld [vmem:[%s4403_s4 + $0x120] sm:$0xff] }
 0x206   :  { %1007 = vperm.xlu0 %2996, %v905_v17   ;;  %1120 = vmatprep.subr.mxu1 %v4425_v31  ;;  %v719_v23 = vpop.permute.xlu1 %718  ;;  %v818_v17 = vld [vmem:[%s4403_s4 + $0xd0] sm:$0xff] }
 0x207   :  { %1121 = vmatpush2.msra.mxu1 %v719_v23  ;;  %v832_v23 = vld [vmem:[%s4403_s4 + $0x140] sm:$0xff] }
 0x208   :  { %v717_v22 = vpop.permute.xlu0 %716  ;;  %922 = vperm.xlu1 %2997, %v888_v34   ;;  %1122 = vmatprep.subr.mxu1 %v4425_v31  ;;  %v821_v34 = vld [vmem:[%s4403_s4 + $0xe8] sm:$0xff] }
 0x209   :  { %1123 = vmatpush2.msra.mxu1 %v717_v22  ;;  %v831_v22 = vld [vmem:[%s4403_s4 + $0x138] sm:$0xff] }
 0x20a   :  { %1002 = vperm.xlu0 %2996, %v904_v10   ;;  %1124 = vmatprep.subr.mxu1 %v4425_v31  ;;  %v715_v35 = vpop.permute.xlu1 %714  ;;  %v824_v10 = vld [vmem:[%s4403_s4 + $0x100] sm:$0xff] }
 0x20b   :  { %1125 = vmatpush2.msra.mxu1 %v715_v35  ;;  %v827_v35 = vld [vmem:[%s4403_s4 + $0x118] sm:$0xff] }
 0x20c   :  { %v713_v39 = vpop.permute.xlu0 %712  ;;  %1126 = vmatprep.subr.mxu1 %v4425_v31 }
 0x20d   :  { %1127 = vmatpush2.msra.mxu1 %v713_v39  ;;  %v835_v39 = vld [vmem:[%s4403_s4 + $0x158] sm:$0xff] }
 0x20e   :  { %1128 = vmatprep.subr.mxu1 %v4425_v31  ;;  %v711_v56 = vpop.permute.xlu1 %710 }
 0x20f   :  { %1129 = vmatpush2.msra.mxu1 %v711_v56  ;;  %v830_v56 = vld [vmem:[%s4403_s4 + $0x130] sm:$0xff] }
 0x210   :  { %v709_v9 = vpop.permute.xlu0 %708  ;;  %1130 = vmatprep.subr.mxu1 %v4425_v31 }
 0x211   :  { %1131 = vmatpush2.msra.mxu1 %v709_v9  ;;  %v834_v9 = vld [vmem:[%s4403_s4 + $0x150] sm:$0xff] }
 0x212   :  { %1132 = vmatprep.subr.mxu1 %v4425_v31  ;;  %v707_v13 = vpop.permute.xlu1 %706 }
 0x213   :  { %1133 = vmatpush2.msra.mxu1 %v707_v13  ;;  %v833_v13 = vld [vmem:[%s4403_s4 + $0x148] sm:$0xff] }
 0x214   :  { %v705_v27 = vpop.permute.xlu0 %704  ;;  %1134 = vmatprep.subr.mxu1 %v4425_v31 }
 0x215   :  { %1135 = vmatpush2.msra.mxu1 %v705_v27  ;;  %v838_v27 = vld [vmem:[%s4403_s4 + $0x170] sm:$0xff] }
 0x216   :  { %1136 = vmatprep.subr.mxu1 %v4425_v31  ;;  %v703_v30 = vpop.permute.xlu1 %702 }
 0x217   :  { %1137 = vmatpush2.msra.mxu1 %v703_v30  ;;  %v836_v30 = vld [vmem:[%s4403_s4 + $0x160] sm:$0xff] }
 0x218   :  { %v701_v61 = vpop.permute.xlu0 %700  ;;  %1138 = vmatprep.subr.mxu1 %v4425_v31 }
 0x219   :  { %1139 = vmatpush2.msra.mxu1 %v701_v61  ;;  %v837_v61 = vld [vmem:[%s4403_s4 + $0x168] sm:$0xff] }
 0x21a   :  { %1140 = vmatprep.subr.mxu1 %v4425_v31  ;;  %v699_v14 = vpop.permute.xlu1 %698 }
 0x21b   :  { %1141 = vmatpush2.msra.mxu1 %v699_v14  ;;  %v839_v14 = vld [vmem:[%s4403_s4 + $0x178] sm:$0xff] }
 0x21c   :  { %v697_v32 = vpop.permute.xlu0 %696  ;;  %1142 = vmatprep.subr.mxu1 %v4425_v31 }
 0x21d   :  { %1143 = vmatpush2.msra.mxu1 %v697_v32  ;;  %v842_v32 = vld [vmem:[%s4403_s4 + $0x190] sm:$0xff] }
 0x21e   :  { %1145 = vmatmul.mubr.f32.vlgmr.msra.gmra.mxu1 %v792_v15  ;;  %v775_v33 = vpop.permute.xlu1 %774  ;;  %v841_v15 = vld [vmem:[%s4403_s4 + $0x188] sm:$0xff] }
 0x21f   :  { %2772 = vmatprep.subr.mxu0 %v775_v33  ;;  %1149 = vmatprep.mubr.f32.mxu1 %v796_v19  ;;  %v840_v19 = vld [vmem:[%s4403_s4 + $0x180] sm:$0xff] }
 0x220   :  { %v773_v38 = vpop.permute.xlu0 %772  ;;  %2773 = vmatpush3.msra.mxu0 %v775_v33  ;;  %v845_v33 = vld [vmem:[%s4403_s4 + $0x1a8] sm:$0xff] }
 0x221   :  { %2774 = vmatprep.subr.mxu0 %v773_v38 }
 0x222   :  { %1150 = vmatmul.mubr.f32.gmra.mxu1 %v795_v26  ;;  %2775 = vmatpush3.msra.mxu0 %v773_v38  ;;  %v771_v41 = vpop.permute.xlu1 %770  ;;  %v844_v26 = vld [vmem:[%s4403_s4 + $0x1a0] sm:$0xff] }
 0x223   :  { %2776 = vmatprep.subr.mxu0 %v771_v41  ;;  %1154 = vmatprep.mubr.f32.mxu1 %v799_v40  ;;  %v848_v38 = vld [vmem:[%s4403_s4 + $0x1c0] sm:$0xff]  ;;  %v843_v40 = vld [vmem:[%s4403_s4 + $0x198] sm:$0xff] }
 0x224   :  { %v769_v42 = vpop.permute.xlu0 %768  ;;  %2777 = vmatpush3.msra.mxu0 %v771_v41  ;;  %v847_v41 = vld [vmem:[%s4403_s4 + $0x1b8] sm:$0xff] }
 0x225   :  { %2778 = vmatprep.subr.mxu0 %v769_v42 }
 0x226   :  { %1155 = vmatmul.mubr.f32.gmra.mxu1 %v798_v29  ;;  %2779 = vmatpush3.msra.mxu0 %v769_v42  ;;  %v767_v50 = vpop.permute.xlu1 %766  ;;  %v851_v29 = vld [vmem:[%s4403_s4 + $0x1d8] sm:$0xff]  ;;  %v854_v42 = vld [vmem:[%s4403_s4 + $0x1f0] sm:$0xff] }
 0x227   :  { %2780 = vmatprep.subr.mxu0 %v767_v50  ;;  %1159 = vmatprep.mubr.f32.mxu1 %v802_v43  ;;  %v846_v43 = vld [vmem:[%s4403_s4 + $0x1b0] sm:$0xff] }
 0x228   :  { %v765_v47 = vpop.permute.xlu0 %764  ;;  %2781 = vmatpush3.msra.mxu0 %v767_v50  ;;  %v850_v50 = vld [vmem:[%s4403_s4 + $0x1d0] sm:$0xff] }
 0x229   :  { %2782 = vmatprep.subr.mxu0 %v765_v47 }
 0x22a   :  { %1160 = vmatmul.mubr.f32.gmra.mxu1 %v801_v24  ;;  %2783 = vmatpush3.msra.mxu0 %v765_v47  ;;  %v763_v28 = vpop.permute.xlu1 %762  ;;  %v857_v24 = vld [vmem:[%s4403_s4 + $0x208] sm:$0xff]  ;;  %v860_v47 = vld [vmem:[%s4403_s4 + $0x220] sm:$0xff] }
 0x22b   :  { %2784 = vmatprep.subr.mxu0 %v763_v28  ;;  %1164 = vmatprep.mubr.f32.mxu1 %v805_v54  ;;  %v849_v54 = vld [vmem:[%s4403_s4 + $0x1c8] sm:$0xff] }
 0x22c   :  { %v761_v37 = vpop.permute.xlu0 %760  ;;  %2785 = vmatpush3.msra.mxu0 %v763_v28  ;;  %v853_v28 = vld [vmem:[%s4403_s4 + $0x1e8] sm:$0xff] }
 0x22d   :  { %2786 = vmatprep.subr.mxu0 %v761_v37 }
 0x22e   :  { %1165 = vmatmul.mubr.f32.gmra.mxu1 %v804_v62  ;;  %2787 = vmatpush3.msra.mxu0 %v761_v37  ;;  %v759_v51 = vpop.permute.xlu1 %758  ;;  %v863_v62 = vld [vmem:[%s4403_s4 + $0x238] sm:$0xff]  ;;  %v866_v37 = vld [vmem:[%s4403_s4 + $0x250] sm:$0xff] }
 0x22f   :  { %2788 = vmatprep.subr.mxu0 %v759_v51  ;;  %1169 = vmatprep.mubr.f32.mxu1 %v808_v48  ;;  %v852_v48 = vld [vmem:[%s4403_s4 + $0x1e0] sm:$0xff] }
 0x230   :  { %v757_v55 = vpop.permute.xlu0 %756  ;;  %2789 = vmatpush3.msra.mxu0 %v759_v51  ;;  %v856_v51 = vld [vmem:[%s4403_s4 + $0x200] sm:$0xff] }
 0x231   :  { %2790 = vmatprep.subr.mxu0 %v757_v55 }
 0x232   :  { %1170 = vmatmul.mubr.f32.gmra.mxu1 %v807_v53  ;;  %2791 = vmatpush3.msra.mxu0 %v757_v55  ;;  %v755_v25 = vpop.permute.xlu1 %754  ;;  %v869_v53 = vld [vmem:[%s4403_s4 + $0x268] sm:$0xff]  ;;  %v872_v55 = vld [vmem:[%s4403_s4 + $0x280] sm:$0xff] }
 0x233   :  { %2792 = vmatprep.subr.mxu0 %v755_v25  ;;  %1174 = vmatprep.mubr.f32.mxu1 %v811_v59  ;;  %v855_v59 = vld [vmem:[%s4403_s4 + $0x1f8] sm:$0xff] }
 0x234   :  { %v753_v46 = vpop.permute.xlu0 %752  ;;  %2793 = vmatpush3.msra.mxu0 %v755_v25  ;;  %v859_v25 = vld [vmem:[%s4403_s4 + $0x218] sm:$0xff] }
 0x235   :  { %2794 = vmatprep.subr.mxu0 %v753_v46 }
 0x236   :  { %1175 = vmatmul.mubr.f32.gmra.mxu1 %v810_v52  ;;  %2795 = vmatpush3.msra.mxu0 %v753_v46  ;;  %v751_v0 = vpop.permute.xlu1 %750  ;;  %v875_v52 = vld [vmem:[%s4403_s4 + $0x298] sm:$0xff]  ;;  %v878_v46 = vld [vmem:[%s4403_s4 + $0x2b0] sm:$0xff] }
 0x237   :  { %2796 = vmatprep.subr.mxu0 %v751_v0  ;;  %1179 = vmatprep.mubr.f32.mxu1 %v814_v58  ;;  %v858_v58 = vld [vmem:[%s4403_s4 + $0x210] sm:$0xff] }
 0x238   :  { %v749_v20 = vpop.permute.xlu0 %748  ;;  %2797 = vmatpush3.msra.mxu0 %v751_v0  ;;  %v862_v0 = vld [vmem:[%s4403_s4 + $0x230] sm:$0xff] }
 0x239   :  { %2798 = vmatprep.subr.mxu0 %v749_v20 }
 0x23a   :  { %1180 = vmatmul.mubr.f32.gmra.mxu1 %v813_v2  ;;  %2799 = vmatpush3.msra.mxu0 %v749_v20  ;;  %v747_v3 = vpop.permute.xlu1 %746  ;;  %v881_v2 = vld [vmem:[%s4403_s4 + $0x2c8] sm:$0xff]  ;;  %v884_v20 = vld [vmem:[%s4403_s4 + $0x2e0] sm:$0xff] }
 0x23b   :  { %2800 = vmatprep.subr.mxu0 %v747_v3  ;;  %1184 = vmatprep.mubr.f32.mxu1 %v817_v57  ;;  %v861_v57 = vld [vmem:[%s4403_s4 + $0x228] sm:$0xff] }
 0x23c   :  { %v745_v49 = vpop.permute.xlu0 %744  ;;  %2801 = vmatpush3.msra.mxu0 %v747_v3  ;;  %v865_v3 = vld [vmem:[%s4403_s4 + $0x248] sm:$0xff] }
 0x23d   :  { %2802 = vmatprep.subr.mxu0 %v745_v49 }
 0x23e   :  { %1185 = vmatmul.mubr.f32.gmra.mxu1 %v816_v4  ;;  %2803 = vmatpush3.msra.mxu0 %v745_v49  ;;  %v887_v4 = vld [vmem:[%s4403_s4 + $0x2f8] sm:$0xff]  ;;  %v864_v49 = vld [vmem:[%s4403_s4 + $0x240] sm:$0xff] }
 0x23f   :  { %2805 = vmatmul.mubr.f32.vlgmr.msra.gmra.mxu0 %v797_v1  ;;  %1189 = vmatprep.mubr.f32.mxu1 %v820_v5  ;;  %v868_v1 = vld [vmem:[%s4403_s4 + $0x260] sm:$0xff]  ;;  %v867_v5 = vld [vmem:[%s4403_s4 + $0x258] sm:$0xff] }
 0x240   :  { %2807 = vmatprep.mubr.f32.mxu0 %v800_v6  ;;  %v871_v6 = vld [vmem:[%s4403_s4 + $0x278] sm:$0xff] }
 0x242   :  { %1190 = vmatmul.mubr.f32.gmra.mxu1 %v819_v21  ;;  %v870_v21 = vld [vmem:[%s4403_s4 + $0x270] sm:$0xff] }
 0x243   :  { %2808 = vmatmul.mubr.f32.gmra.mxu0 %v803_v63  ;;  %1194 = vmatprep.mubr.f32.mxu1 %v823_v7  ;;  %v874_v63 = vld [vmem:[%s4403_s4 + $0x290] sm:$0xff]  ;;  %v873_v7 = vld [vmem:[%s4403_s4 + $0x288] sm:$0xff] }
 0x244   :  { %2810 = vmatprep.mubr.f32.mxu0 %v806_v8  ;;  %v877_v8 = vld [vmem:[%s4403_s4 + $0x2a8] sm:$0xff] }
 0x246   :  { %1195 = vmatmul.mubr.f32.gmra.mxu1 %v822_v44  ;;  %v876_v44 = vld [vmem:[%s4403_s4 + $0x2a0] sm:$0xff] }
 0x247   :  { %2811 = vmatmul.mubr.f32.gmra.mxu0 %v809_v11  ;;  %1199 = vmatprep.mubr.f32.mxu1 %v826_v36  ;;  %v880_v11 = vld [vmem:[%s4403_s4 + $0x2c0] sm:$0xff]  ;;  %v879_v36 = vld [vmem:[%s4403_s4 + $0x2b8] sm:$0xff] }
 0x248   :  { %2813 = vmatprep.mubr.f32.mxu0 %v812_v18  ;;  %v883_v18 = vld [vmem:[%s4403_s4 + $0x2d8] sm:$0xff] }
 0x24a   :  { %1200 = vmatmul.mubr.f32.gmra.mxu1 %v825_v16  ;;  %v882_v16 = vld [vmem:[%s4403_s4 + $0x2d0] sm:$0xff] }
 0x24b   :  { %2814 = vmatmul.mubr.f32.gmra.mxu0 %v815_v45  ;;  %1204 = vmatprep.mubr.f32.mxu1 %v829_v60  ;;  %v886_v45 = vld [vmem:[%s4403_s4 + $0x2f0] sm:$0xff]  ;;  %v885_v60 = vld [vmem:[%s4403_s4 + $0x2e8] sm:$0xff] }
 0x24c   :  { %2816 = vmatprep.mubr.f32.mxu0 %v818_v17  ;;  %v3912_v17 = vpop.permute.xlu1 %997 }
 0x24e   :  { %1205 = vmatmul.mubr.f32.gmra.mxu1 %v828_v12 }
 0x24f   :  { %2817 = vmatmul.mubr.f32.gmra.mxu0 %v821_v34  ;;  %1209 = vmatprep.mubr.f32.mxu1 %v832_v23 }
 0x250   :  { %2819 = vmatprep.mubr.f32.mxu0 %v824_v10  ;;  %v3914_v12 = vpop.permute.xlu1 %992 }
 0x252   :  { %1210 = vmatmul.mubr.f32.gmra.mxu1 %v831_v22 }
 0x253   :  { %2820 = vmatmul.mubr.f32.gmra.mxu0 %v827_v35  ;;  %1214 = vmatprep.mubr.f32.mxu1 %v835_v39  ;;  %v3924_v35 = vpop.permute.xlu0 %1077 }
 0x254   :  { %2822 = vmatprep.mubr.f32.mxu0 %v830_v56  ;;  %v3916_v34 = vpop.permute.xlu1 %987 }
 0x256   :  { %1215 = vmatmul.mubr.f32.gmra.mxu1 %v834_v9 }
 0x257   :  { %2823 = vmatmul.mubr.f32.gmra.mxu0 %v833_v13  ;;  %1219 = vmatprep.mubr.f32.mxu1 %v838_v27  ;;  %v3928_v56 = vpop.permute.xlu0 %1072 }
 0x258   :  { %2825 = vmatprep.mubr.f32.mxu0 %v836_v30  ;;  %v3918_v23 = vpop.permute.xlu1 %982 }
 0x25a   :  { %1220 = vmatmul.mubr.f32.gmra.mxu1 %v837_v61 }
 0x25b   :  { %2826 = vmatmul.mubr.f32.gmra.mxu0 %v839_v14  ;;  %1224 = vmatprep.mubr.f32.mxu1 %v841_v15  ;;  %v3932_v13 = vpop.permute.xlu0 %1067 }
 0x25c   :  { %2828 = vmatprep.mubr.f32.mxu0 %v842_v32  ;;  %v3920_v10 = vpop.permute.xlu1 %977 }
 0x25e   :  { %1225 = vmatmul.mubr.f32.gmra.mxu1 %v840_v19 }
 0x25f   :  { %2829 = vmatmul.mubr.f32.gmra.mxu0 %v845_v33  ;;  %1229 = vmatprep.mubr.f32.mxu1 %v844_v26  ;;  %v3934_v30 = vpop.permute.xlu0 %1062 }
 0x260   :  { %2831 = vmatprep.mubr.f32.mxu0 %v848_v38  ;;  %v3922_v22 = vpop.permute.xlu1 %972 }
 0x262   :  { %1230 = vmatmul.mubr.f32.gmra.mxu1 %v843_v40 }
 0x263   :  { %1234 = vmatprep.mubr.f32.mxu1 %v847_v41  ;;  %2832 = vmatmul.mubr.f32.gmra.mxu0 %v851_v29  ;;  %v3936_v14 = vpop.permute.xlu0 %1057 }
 0x264   :  { %2834 = vmatprep.mubr.f32.mxu0 %v854_v42  ;;  %v3926_v39 = vpop.permute.xlu1 %967 }
 0x266   :  { %1235 = vmatmul.mubr.f32.gmra.mxu1 %v846_v43 }
 0x267   :  { %1239 = vmatprep.mubr.f32.mxu1 %v850_v50  ;;  %2835 = vmatmul.mubr.f32.gmra.mxu0 %v857_v24  ;;  %v3938_v33 = vpop.permute.xlu0 %1052 }
 0x268   :  { %2837 = vmatprep.mubr.f32.mxu0 %v860_v47  ;;  %v3930_v9 = vpop.permute.xlu1 %962 }
 0x26a   :  { %1240 = vmatmul.mubr.f32.gmra.mxu1 %v849_v54 }
 0x26b   :  { %1244 = vmatprep.mubr.f32.mxu1 %v853_v28  ;;  %2838 = vmatmul.mubr.f32.gmra.mxu0 %v863_v62  ;;  %v3940_v29 = vpop.permute.xlu0 %1047 }
 0x26c   :  { %2840 = vmatprep.mubr.f32.mxu0 %v866_v37  ;;  %v958_v27 = vpop.permute.xlu1 %957 }
 0x26e   :  { %1245 = vmatmul.mubr.f32.gmra.mxu1 %v852_v48 }
 0x26f   :  { %1249 = vmatprep.mubr.f32.mxu1 %v856_v51  ;;  %2841 = vmatmul.mubr.f32.gmra.mxu0 %v869_v53  ;;  %v3942_v47 = vpop.permute.xlu0 %1042 }
 0x270   :  { %2843 = vmatprep.mubr.f32.mxu0 %v872_v55  ;;  %v953_v61 = vpop.permute.xlu1 %952 }
 0x272   :  { %1250 = vmatmul.mubr.f32.gmra.mxu1 %v855_v59 }
 0x273   :  { %1254 = vmatprep.mubr.f32.mxu1 %v859_v25  ;;  %2844 = vmatmul.mubr.f32.gmra.mxu0 %v875_v52  ;;  %v3944_v48 = vpop.permute.xlu0 %1037 }
 0x274   :  { %2846 = vmatprep.mubr.f32.mxu0 %v878_v46  ;;  %v948_v19 = vpop.permute.xlu1 %947 }
 0x276   :  { %1255 = vmatmul.mubr.f32.gmra.mxu1 %v858_v58 }
 0x277   :  { %1259 = vmatprep.mubr.f32.mxu1 %v862_v0  ;;  %2847 = vmatmul.mubr.f32.gmra.mxu0 %v881_v2  ;;  %v3946_v25 = vpop.permute.xlu0 %1032 }
 0x278   :  { %2849 = vmatprep.mubr.f32.mxu0 %v884_v20  ;;  %v943_v41 = vpop.permute.xlu1 %942 }
 0x27a   :  { %1260 = vmatmul.mubr.f32.gmra.mxu1 %v861_v57 }
 0x27b   :  { %1264 = vmatprep.mubr.f32.mxu1 %v865_v3  ;;  %2850 = vmatmul.mubr.f32.gmra.mxu0 %v887_v4  ;;  %v3950_v57 = vpop.permute.xlu0 %1027 }
 0x27c   :  { %v938_v24 = vpop.permute.xlu1 %937  ;;  %4432 = vst [vmem:[#allocation7_spill] sm:$0xff] %v3950_v57 }
 0x27e   :  { %1265 = vmatmul.mubr.f32.gmra.mxu1 %v864_v49 }
 0x27f   :  { %1269 = vmatprep.mubr.f32.mxu1 %v868_v1 }
 0x280   :  { %v933_v37 = vpop.permute.xlu1 %932 }
 0x282   :  { %1270 = vmatmul.mubr.f32.gmra.mxu1 %v867_v5 }
 0x283   :  { %1274 = vmatprep.mubr.f32.mxu1 %v871_v6 }
 0x284   :  { %v928_v59 = vpop.permute.xlu1 %927 }
 0x286   :  { %1275 = vmatmul.mubr.f32.gmra.mxu1 %v870_v21 }
 0x287   :  { %1279 = vmatprep.mubr.f32.mxu1 %v874_v63 }
 0x288   :  { %v923_v2 = vpop.permute.xlu1 %922 }
 0x28a   :  { %1280 = vmatmul.mubr.f32.gmra.mxu1 %v873_v7 }
 0x28b   :  { %1284 = vmatprep.mubr.f32.mxu1 %v877_v8 }
 0x28e   :  { %1285 = vmatmul.mubr.f32.gmra.mxu1 %v876_v44 }
 0x28f   :  { %1289 = vmatprep.mubr.f32.mxu1 %v880_v11 }
 0x292   :  { %1290 = vmatmul.mubr.f32.gmra.mxu1 %v879_v36  ;;  %v3958_v36 = vpop.permute.xlu0 %1022 }
 0x293   :  { %1294 = vmatprep.mubr.f32.mxu1 %v883_v18 }
 0x296   :  { %1295 = vmatmul.mubr.f32.gmra.mxu1 %v882_v16 }
 0x297   :  { %1299 = vmatprep.mubr.f32.mxu1 %v886_v45 }
 0x29a   :  { %1300 = vmatmul.mubr.f32.gmra.mxu1 %v885_v60 }
 0x2de   :  { %v1146_v15 = vpop.f32.mrf.mxu1 }
 0x2df   :  { %v1147_v3 = vadd.f32 %v1146_v15, %v923_v2 }
 0x2e0   :  { %v1148_v32 = vpop.f32.mrf.mxu1 }
 0x2e2   :  { %v1151_v26 = vpop.f32.mrf.mxu1 }
 0x2e3   :  { %v1152_v58 = vadd.f32 %v1151_v26, %v928_v59 }
 0x2e4   :  { %v1153_v38 = vpop.f32.mrf.mxu1 }
 0x2e6   :  { %v1156_v40 = vpop.f32.mrf.mxu1 }
 0x2e7   :  { %v1157_v7 = vadd.f32 %v1156_v40, %v933_v37 }
 0x2e8   :  { %v1158_v42 = vpop.f32.mrf.mxu1 }
 0x2ea   :  { %v1161_v43 = vpop.f32.mrf.mxu1 }
 0x2eb   :  { %v1162_v5 = vadd.f32 %v1161_v43, %v938_v24  ;;  %v1018_v24 = vpop.permute.xlu0 %1017 }
 0x2ec   :  { %v1163_v50 = vpop.f32.mrf.mxu1 }
 0x2ee   :  { %v1166_v54 = vpop.f32.mrf.mxu1 }
 0x2ef   :  { %v1167_v15 = vadd.f32 %v1166_v54, %v943_v41 }
 0x2f0   :  { %v1168_v28 = vpop.f32.mrf.mxu1 }
 0x2f2   :  { %v1171_v62 = vpop.f32.mrf.mxu1 }
 0x2f3   :  { %v1172_v18 = vadd.f32 %v1171_v62, %v948_v19 }
 0x2f4   :  { %v1173_v51 = vpop.f32.mrf.mxu1 }
 0x2f6   :  { %v1176_v53 = vpop.f32.mrf.mxu1 }
 0x2f7   :  { %v1177_v28 = vadd.f32 %v1176_v53, %v953_v61 }
 0x2f8   :  { %v1178_v55 = vpop.f32.mrf.mxu1 }
 0x2fa   :  { %v1181_v52 = vpop.f32.mrf.mxu1 }
 0x2fb   :  { %v1182_v42 = vadd.f32 %v1181_v52, %v958_v27  ;;  %v1013_v27 = vpop.permute.xlu0 %1012 }
 0x2fc   :  { %v1183_v46 = vpop.f32.mrf.mxu1 }
 0x2fe   :  { %v3948_v0 = vpop.f32.mrf.mxu1 }
 0x2ff   :  { %v2806_v20 = vpop.f32.mrf.mxu0 }
 0x300   :  { %v3952_v4 = vadd.f32 %v2806_v20, %v1152_v58  ;;  %v1188_v49 = vpop.f32.mrf.mxu1  ;;  %v1008_v20 = vpop.permute.xlu0 %1007 }
 0x301   :  { %v1371_v1 = vpop.f32.mrf.mxu0 }
 0x302   :  { %v1372_v6 = vadd.f32 %v1371_v1, %v1147_v3  ;;  %v3954_v21 = vpop.f32.mrf.mxu1 }
 0x303   :  { %v2809_v63 = vpop.f32.mrf.mxu0 }
 0x304   :  { %v3956_v8 = vadd.f32 %v2809_v63, %v1162_v5  ;;  %v1193_v44 = vpop.f32.mrf.mxu1 }
 0x305   :  { %v1381_v11 = vpop.f32.mrf.mxu0  ;;  %v1003_v44 = vpop.permute.xlu0 %1002 }
 0x306   :  { %v3960_v16 = vadd.f32 %v1381_v11, %v1157_v7  ;;  %v3962_v45 = vpop.f32.mrf.mxu1 }
 0x307   :  { %v2812_v60 = vpop.f32.mrf.mxu0 }
 0x308   :  { %v3964_v32 = vadd.f32 %v2812_v60, %v1172_v18  ;;  %v1198_v26 = vpop.f32.mrf.mxu1 }
 0x309   :  { %v1391_v38 = vpop.f32.mrf.mxu0 }
 0x30a   :  { %4433 = vst [vmem:[#allocation4_spill] sm:$0xff] %v3964_v32  ;;  %v3966_v43 = vadd.f32 %v1391_v38, %v1167_v15  ;;  %v3968_v40 = vpop.f32.mrf.mxu1  ;;  %v1531_v32 = vmax.f32 %v3952_v4, 0.0 }
 0x30b   :  { %v2815_v50 = vpop.f32.mrf.mxu0 }
 0x30c   :  { %4434 = vst [vmem:[#allocation5_spill] sm:$0xff] %v3966_v43  ;;  %v3970_v37 = vadd.f32 %v2815_v50, %v1182_v42  ;;  %v1203_v19 = vpop.f32.mrf.mxu1 }
 0x30d   :  { %v1401_v62 = vpop.f32.mrf.mxu0  ;;  %v1530_v19 = vmax.f32 %v1372_v6, 0.0 }
 0x30e   :  { %4435 = vst [vmem:[#allocation2_spill] sm:$0xff] %v3970_v37  ;;  %v3972_v51 = vadd.f32 %v1401_v62, %v1177_v28  ;;  %v3974_v55 = vpop.f32.mrf.mxu1 }
 0x30f   :  { %v3976_v41 = vpop.f32.mrf.mxu0 }
 0x310   :  { %4436 = vst [vmem:[#allocation6_spill] sm:$0xff] %v3972_v51  ;;  %v1208_v54 = vpop.f32.mrf.mxu1 }
 0x311   :  { %v3978_v59 = vpop.f32.mrf.mxu0 }
 0x312   :  { %v3980_v52 = vpop.f32.mrf.mxu1 }
 0x313   :  { %v3982_v46 = vpop.f32.mrf.mxu0 }
 0x314   :  { %v1213_v58 = vpop.f32.mrf.mxu1 }
 0x315   :  { %v3984_v61 = vpop.f32.mrf.mxu0 }
 0x316   :  { %v3986_v53 = vpop.f32.mrf.mxu1 }
 0x317   :  { %v3988_v2 = vpop.f32.mrf.mxu0 }
 0x318   :  { %v1218_v3 = vpop.f32.mrf.mxu1 }
 0x319   :  { %v3990_v49 = vpop.f32.mrf.mxu0 }
 0x31a   :  { %v3992_v1 = vpop.f32.mrf.mxu1 }
 0x31b   :  { %v3994_v5 = vpop.f32.mrf.mxu0 }
 0x31c   :  { %v1223_v63 = vpop.f32.mrf.mxu1 }
 0x31d   :  { %v3996_v7 = vpop.f32.mrf.mxu0 }
 0x31e   :  { %v1226_v11 = vpop.f32.mrf.mxu1 }
 0x31f   :  { %v1227_v18 = vadd.f32 %v1226_v11, %v1003_v44  ;;  %v2830_v60 = vpop.f32.mrf.mxu0 }
 0x320   :  { %v1228_v15 = vpop.f32.mrf.mxu1 }
 0x321   :  { %v1451_v26 = vpop.f32.mrf.mxu0 }
 0x322   :  { %v1452_v38 = vadd.f32 %v1451_v26, %v1227_v18  ;;  %v1231_v42 = vpop.f32.mrf.mxu1 }
 0x323   :  { %v1232_v50 = vadd.f32 %v1231_v42, %v1008_v20  ;;  %v2833_v28 = vpop.f32.mrf.mxu0  ;;  %v1532_v20 = vmax.f32 %v3960_v16, 0.0 }
 0x324   :  { %v1546_v62 = vmax.f32 %v1452_v38, 0.0  ;;  %v1233_v54 = vpop.f32.mrf.mxu1 }
 0x325   :  { %v1457_v58 = vadd.f32 %v2830_v60, %v1232_v50  ;;  %v1461_v63 = vpop.f32.mrf.mxu0 }
 0x326   :  { %v3998_v3 = vadd.f32 %v1546_v62, %v1530_v19  ;;  %v1236_v31 = vpop.f32.mrf.mxu1  ;;  %v1533_v19 = vmax.f32 %v3956_v8, 0.0 }
 0x327   :  { %v1547_v37 = vmax.f32 %v1457_v58, 0.0  ;;  %v1237_v43 = vadd.f32 %v1236_v31, %v1013_v27 }
 0x328   :  { %4437 = vst [vmem:[#allocation3_spill] sm:$0xff] %v3998_v3  ;;  %v1238_v44 = vpop.f32.mrf.mxu1 }
 0x329   :  { %v4001_v11 = vadd.f32 %v1547_v37, %v1531_v32  ;;  %v1462_v15 = vadd.f32 %v1461_v63, %v1237_v43  ;;  %v4013_v43 = vpop.f32.mrf.mxu0 }
 0x32a   :  { %v1241_v18 = vpop.f32.mrf.mxu1  ;;  %4442 = vst [vmem:[#allocation12_spill] sm:$0xff] %v4013_v43 }
 0x32b   :  { %4438 = vst [vmem:[#allocation8_spill] sm:$0xff] %v4001_v11  ;;  %v1548_v26 = vmax.f32 %v1462_v15, 0.0  ;;  %v1242_v6 = vadd.f32 %v1241_v18, %v1018_v24  ;;  %v4015_v27 = vpop.f32.mrf.mxu0 }
 0x32c   :  { %v1243_v38 = vpop.f32.mrf.mxu1 }
 0x32d   :  { %v4004_v42 = vadd.f32 %v1548_v26, %v1532_v20  ;;  %v1467_v60 = vadd.f32 %v2833_v28, %v1242_v6  ;;  %v4017_v54 = vpop.f32.mrf.mxu0 }
 0x32e   :  { %v4006_v50 = vpop.f32.mrf.mxu1  ;;  %4443 = vst [vmem:[#allocation13_spill] sm:$0xff] %v4017_v54 }
 0x32f   :  { %4439 = vst [vmem:[#allocation9_spill] sm:$0xff] %v4004_v42  ;;  %v1549_v4 = vmax.f32 %v1467_v60, 0.0  ;;  %v4021_v63 = vpop.f32.mrf.mxu0 }
 0x330   :  { %v1248_v62 = vpop.f32.mrf.mxu1 }
 0x331   :  { %v4009_v31 = vadd.f32 %v1549_v4, %v1533_v19  ;;  %v4023_v44 = vpop.f32.mrf.mxu0 }
 0x332   :  { %v4011_v32 = vpop.f32.mrf.mxu1 }
 0x333   :  { %4440 = vst [vmem:[#allocation10_spill] sm:$0xff] %v4009_v31  ;;  %4441 = vst [vmem:[#allocation11_spill] sm:$0xff] %v4011_v32  ;;  %v1491_v20 = vpop.f32.mrf.mxu0 }
 0x334   :  { %v1253_v37 = vpop.f32.mrf.mxu1 }
 0x335   :  { %v2845_v38 = vpop.f32.mrf.mxu0 }
 0x336   :  { %v1256_v16 = vpop.f32.mrf.mxu1 }
 0x337   :  { %v1501_v19 = vpop.f32.mrf.mxu0 }
 0x338   :  { %v1258_v24 = vpop.f32.mrf.mxu1 }
 0x339   :  { %v2848_v37 = vpop.f32.mrf.mxu0 }
 0x33a   :  { %v4019_v28 = vpop.f32.mrf.mxu1 }
 0x33b   :  { %v1511_v31 = vpop.f32.mrf.mxu0 }
 0x33c   :  { %v1263_v58 = vpop.f32.mrf.mxu1 }
 0x33d   :  { %v2851_v3 = vpop.f32.mrf.mxu0 }
 0x33e   :  { %v1266_v8 = vpop.f32.mrf.mxu1 }
 0x33f   :  { %v1521_v54 = vpop.f32.mrf.mxu0 }
 0x340   :  { %v1268_v15 = vpop.f32.mrf.mxu1 }
 0x341   :  { %v1217_v15 = vadd.f32 %v3986_v53, %v3914_v12  ;;  %v1187_v12 = vadd.f32 %v3948_v0, %v3930_v9 }
 0x342   :  { %v1271_v18 = vpop.f32.mrf.mxu1 }
 0x344   :  { %v1273_v26 = vpop.f32.mrf.mxu1 }
 0x345   :  { %v1222_v26 = vadd.f32 %v3992_v1, %v3912_v17 }
 0x346   :  { %v1276_v6 = vpop.f32.mrf.mxu1 }
 0x347   :  { %v1277_v51 = vadd.f32 %v1276_v6, %v3938_v33  ;;  %v1447_v33 = vadd.f32 %v3994_v5, %v1222_v26  ;;  %v4446_v26 = vld [vmem:[#allocation13_spill] sm:$0xff] }
 0x348   :  { %v1278_v60 = vpop.f32.mrf.mxu1 }
 0x349   :  { %v1207_v60 = vadd.f32 %v3974_v55, %v3918_v23  ;;  %v1197_v23 = vadd.f32 %v3962_v45, %v3922_v22  ;;  %v1212_v55 = vadd.f32 %v3980_v52, %v3916_v34  ;;  %v1202_v22 = vadd.f32 %v3968_v40, %v3920_v10 }
 0x34a   :  { %v1281_v4 = vpop.f32.mrf.mxu1  ;;  %v1192_v40 = vadd.f32 %v3954_v21, %v3926_v39 }
 0x34b   :  { %v1432_v53 = vadd.f32 %v3990_v49, %v1207_v60  ;;  %v1422_v34 = vadd.f32 %v3984_v61, %v1197_v23  ;;  %v1437_v45 = vadd.f32 %v3988_v2, %v1212_v55  ;;  %v1412_v61 = vadd.f32 %v3978_v59, %v1187_v12  ;;  %v4448_v55 = vld [vmem:[#allocation12_spill] sm:$0xff] }
 0x34c   :  { %v1283_v62 = vpop.f32.mrf.mxu1  ;;  %v1427_v2 = vadd.f32 %v3982_v46, %v1202_v22 }
 0x34d   :  { %v1442_v62 = vadd.f32 %v3996_v7, %v1217_v15  ;;  %v1542_v52 = vmax.f32 %v1432_v53, 0.0 }
 0x34e   :  { %v1286_v24 = vpop.f32.mrf.mxu1 }
 0x34f   :  { %v1287_v42 = vadd.f32 %v1286_v24, %v3934_v30  ;;  %v1544_v7 = vmax.f32 %v1442_v62, 0.0 }
 0x350   :  { %v1288_v11 = vpop.f32.mrf.mxu1 }
 0x351   :  { %v1512_v32 = vadd.f32 %v1511_v31, %v1287_v42  ;;  %v1502_v42 = vadd.f32 %v1501_v19, %v1277_v51 }
 0x352   :  { %v1291_v58 = vpop.f32.mrf.mxu1 }
 0x353   :  { %v1292_v57 = vadd.f32 %v1291_v58, %v3932_v13  ;;  %v1267_v13 = vadd.f32 %v1266_v8, %v3942_v47  ;;  %v1558_v9 = vmax.f32 %v1512_v32, 0.0  ;;  %v1257_v47 = vadd.f32 %v1256_v16, %v3946_v25 }
 0x354   :  { %v1293_v43 = vpop.f32.mrf.mxu1  ;;  %v1556_v32 = vmax.f32 %v1502_v42, 0.0  ;;  %v1540_v25 = vmax.f32 %v1422_v34, 0.0  ;;  %v1543_v16 = vmax.f32 %v1437_v45, 0.0 }
 0x355   :  { %v1517_v0 = vadd.f32 %v2848_v37, %v1292_v57  ;;  %v1492_v8 = vadd.f32 %v1491_v20, %v1267_v13  ;;  %v1272_v57 = vadd.f32 %v1271_v18, %v3940_v29  ;;  %v1482_v29 = vadd.f32 %v4021_v63, %v1257_v47 }
 0x356   :  { %v1296_v11 = vpop.f32.mrf.mxu1  ;;  %v1262_v20 = vadd.f32 %v4019_v28, %v3944_v48  ;;  %v1572_v21 = vadd.f32 %v1556_v32, %v1540_v25  ;;  %v1541_v63 = vmax.f32 %v1427_v2, 0.0  ;;  %v4444_v48 = vld [vmem:[#allocation7_spill] sm:$0xff]  ;;  %v1737_v25 = vld [vmem:[%s4406_s7 + $0x38] sm:$0xff] }
 0x357   :  { %v1297_v30 = vadd.f32 %v1296_v11, %v3928_v56  ;;  %v1282_v56 = vadd.f32 %v1281_v4, %v3936_v14  ;;  %v1559_v19 = vmax.f32 %v1517_v0, 0.0  ;;  %v1497_v39 = vadd.f32 %v4023_v44, %v1272_v57  ;;  %v4445_v28 = vld [vmem:[#allocation11_spill] sm:$0xff]  ;;  %v4450_v0 = vld [vmem:[#allocation2_spill] sm:$0xff]  ;;  %v4452_v57 = vld [vmem:[#allocation9_spill] sm:$0xff] }
 0x358   :  { %v1298_v17 = vpop.f32.mrf.mxu1  ;;  %v1252_v44 = vadd.f32 %v4445_v28, %v4444_v48  ;;  %v1552_v15 = vmax.f32 %v1482_v29, 0.0  ;;  %v1487_v60 = vadd.f32 %v4446_v26, %v1262_v20  ;;  %v4121_v32 = vmul.f32 0.5, %v4452_v57  ;;  %v1732_v29 = vld [vmem:[%s4406_s7 + $0x10] sm:$0xff]  ;;  %v1731_v20 = vld [vmem:[%s4406_s7 + $0x8] sm:$0xff] }
 0x359   :  { %v1522_v1 = vadd.f32 %v1521_v54, %v1297_v30  ;;  %v1545_v54 = vmax.f32 %v1447_v33, 0.0  ;;  %v1507_v6 = vadd.f32 %v2845_v38, %v1282_v56  ;;  %v1554_v38 = vmax.f32 %v1492_v8, 0.0  ;;  %v1707_v8 = vld [vmem:[%s4405_s6 + $0x8] sm:$0xff] }
 0x35a   :  { %v1301_v31 = vpop.f32.mrf.mxu1  ;;  %v1575_v37 = vadd.f32 %v1559_v19, %v1543_v16  ;;  %v1555_v11 = vmax.f32 %v1497_v39, 0.0  ;;  %v4080_v30 = vmul.f32 0.5, %v1572_v21  ;;  %v1477_v33 = vadd.f32 %v4448_v55, %v1252_v44  ;;  %1842 = vmatprep.mubr.f32.mxu0 %v1707_v8  ;;  %v1733_v16 = vld [vmem:[%s4406_s7 + $0x18] sm:$0xff]  ;;  %v1730_v39 = vld [vmem:[%s4406_s7] sm:$0xff]  ;;  %v1712_v55 = vld [vmem:[%s4405_s6 + $0x30] sm:$0xff] }
 0x35b   :  { %v1560_v49 = vmax.f32 %v1522_v1, 0.0  ;;  %v1302_v43 = vadd.f32 %v1301_v31, %v3924_v35  ;;  %v1574_v35 = vadd.f32 %v1558_v9, %v1542_v52  ;;  %v1557_v59 = vmax.f32 %v1507_v6, 0.0  ;;  %v4449_v31 = vld [vmem:[#allocation5_spill] sm:$0xff] }
 0x35c   :  { %v1303_v5 = vpop.f32.mrf.mxu1  ;;  %v4082_v12 = vmul.f32 0.5, %v1575_v37  ;;  %v1534_v9 = vmax.f32 %v4449_v31, 0.0  ;;  %v1551_v22 = vmax.f32 %v1477_v33, 0.0  ;;  %v1716_v33 = vld [vmem:[%s4405_s6 + $0x50] sm:$0xff] }
 0x35d   :  { %v1576_v51 = vadd.f32 %v1560_v49, %v1544_v7  ;;  %v1527_v14 = vadd.f32 %v2851_v3, %v1302_v43  ;;  %v1247_v3 = vadd.f32 %v4006_v50, %v3958_v36  ;;  %v4067_v46 = vmul.f32 0.5, %v1574_v35  ;;  %v4451_v5 = vld [vmem:[#allocation4_spill] sm:$0xff]  ;;  %v4453_v35 = vld [vmem:[#allocation3_spill] sm:$0xff] }
 0x35e   :  { %v1538_v36 = vmax.f32 %v1412_v61, 0.0  ;;  %v1417_v50 = vadd.f32 %v3976_v41, %v1192_v40  ;;  %v1573_v41 = vadd.f32 %v1557_v59, %v1541_v63  ;;  %v1553_v7 = vmax.f32 %v1487_v60, 0.0  ;;  %v4455_v61 = vld [vmem:[#allocation8_spill] sm:$0xff] }
 0x35f   :  { %v4053_v4 = vmul.f32 0.5, %v1576_v51  ;;  %v1561_v10 = vmax.f32 %v1527_v14, 0.0  ;;  %v1472_v58 = vadd.f32 %v4015_v27, %v1247_v3  ;;  %v4447_v27 = vld [vmem:[#allocation6_spill] sm:$0xff]  ;;  %v1537_v49 = vmax.f32 %v4450_v0, 0.0  ;;  %v1736_v3 = vld [vmem:[%s4406_s7 + $0x30] sm:$0xff] }
 0x360   :  { %v1570_v62 = vadd.f32 %v1554_v38, %v1538_v36  ;;  %v1536_v53 = vmax.f32 %v4447_v27, 0.0  ;;  %v1539_v17 = vmax.f32 %v1417_v50, 0.0  ;;  %v4092_v56 = vmul.f32 0.5, %v1573_v41  ;;  %v1734_v38 = vld [vmem:[%s4406_s7 + $0x20] sm:$0xff]  ;;  %v1709_v27 = vld [vmem:[%s4405_s6 + $0x18] sm:$0xff] }
 0x361   :  { %v1577_v18 = vadd.f32 %v1561_v10, %v1545_v54  ;;  %1638 = vrot.lane.b32.xlu0 %v4053_v4, %s2998_s22  ;;  %v1550_v23 = vmax.f32 %v1472_v58, 0.0  ;;  %v1569_v45 = vadd.f32 %v1553_v7, %v1537_v49  ;;  %v1535_v54 = vmax.f32 %v4451_v5, 0.0  ;;  %v4454_v10 = vld [vmem:[#allocation10_spill] sm:$0xff]  ;;  %v1728_v5 = vld [vmem:[%s4405_s6 + $0xb0] sm:$0xff] }
 0x362   :  { %v1568_v1 = vadd.f32 %v1552_v15, %v1536_v53  ;;  %v4090_v13 = vmul.f32 0.5, %v1570_v62  ;;  %v1571_v42 = vadd.f32 %v1555_v11, %v1539_v17  ;;  %v4130_v19 = vmul.f32 0.5, %v4453_v35  ;;  %v1706_v11 = vld [vmem:[%s4405_s6] sm:$0xff]  ;;  %v1713_v53 = vld [vmem:[%s4405_s6 + $0x38] sm:$0xff] }
 0x363   :  { %v4069_v24 = vmul.f32 0.5, %v1577_v18  ;;  %v1566_v43 = vadd.f32 %v1550_v23, %v1534_v9  ;;  %v1567_v51 = vadd.f32 %v1551_v22, %v1535_v54  ;;  %v4111_v14 = vmul.f32 0.5, %v1569_v45  ;;  %v1735_v18 = vld [vmem:[%s4406_s7 + $0x28] sm:$0xff]  ;;  %v1718_v9 = vld [vmem:[%s4405_s6 + $0x60] sm:$0xff]  ;;  %v1721_v22 = vld [vmem:[%s4405_s6 + $0x78] sm:$0xff] }
 0x364   :  { %v4100_v34 = vmul.f32 0.5, %v1568_v1  ;;  %v4102_v52 = vmul.f32 0.5, %v1571_v42  ;;  %v4133_v40 = vmul.f32 0.5, %v4454_v10  ;;  %v4140_v2 = vmul.f32 0.5, %v4455_v61  ;;  %v1719_v42 = vld [vmem:[%s4405_s6 + $0x68] sm:$0xff]  ;;  %v1722_v0 = vld [vmem:[%s4405_s6 + $0x80] sm:$0xff] }
 0x365   :  { %1640 = vrot.lane.b32.xlu1 %v4069_v24, %s2998_s22  ;;  %1634 = vrot.lane.b32.xlu0 %v4067_v46, %s2998_s22  ;;  %v4109_v47 = vmul.f32 0.5, %v1566_v43  ;;  %v4123_v6 = vmul.f32 0.5, %v1567_v51  ;;  %v1727_v51 = vld [vmem:[%s4405_s6 + $0xa8] sm:$0xff]  ;;  %v1717_v35 = vld [vmem:[%s4405_s6 + $0x58] sm:$0xff] }
 0x366   :  { %v1723_v10 = vld [vmem:[%s4405_s6 + $0x88] sm:$0xff]  ;;  %v1729_v61 = vld [vmem:[%s4405_s6 + $0xb8] sm:$0xff] }
 0x369   :  { %1636 = vrot.lane.b32.xlu1 %v4082_v12, %s2998_s22  ;;  %1630 = vrot.lane.b32.xlu0 %v4080_v30, %s2998_s22 }
 0x36d   :  { %1632 = vrot.lane.b32.xlu1 %v4092_v56, %s2998_s22  ;;  %1626 = vrot.lane.b32.xlu0 %v4090_v13, %s2998_s22 }
 0x371   :  { %1628 = vrot.lane.b32.xlu1 %v4102_v52, %s2998_s22  ;;  %1622 = vrot.lane.b32.xlu0 %v4100_v34, %s2998_s22 }
 0x375   :  { %1624 = vrot.lane.b32.xlu1 %v4111_v14, %s2998_s22  ;;  %1618 = vrot.lane.b32.xlu0 %v4109_v47, %s2998_s22 }
 0x379   :  { %1620 = vrot.lane.b32.xlu1 %v4123_v6, %s2998_s22  ;;  %1614 = vrot.lane.b32.xlu0 %v4121_v32, %s2998_s22 }
 0x37d   :  { %1616 = vrot.lane.b32.xlu1 %v4133_v40, %s2998_s22  ;;  %1610 = vrot.lane.b32.xlu0 %v4130_v19, %s2998_s22 }
 0x381   :  { %1612 = vrot.lane.b32.xlu1 %v4140_v2, %s2998_s22  ;;  %1686 = vrot.lane.b32.xlu0 %v4053_v4, %s3001_s16 }
 0x385   :  { %1688 = vrot.lane.b32.xlu1 %v4069_v24, %s3001_s16  ;;  %1682 = vrot.lane.b32.xlu0 %v4067_v46, %s3001_s16 }
 0x389   :  { %1684 = vrot.lane.b32.xlu1 %v4082_v12, %s3001_s16  ;;  %1678 = vrot.lane.b32.xlu0 %v4080_v30, %s3001_s16 }
 0x38d   :  { %1680 = vrot.lane.b32.xlu1 %v4092_v56, %s3001_s16  ;;  %1674 = vrot.lane.b32.xlu0 %v4090_v13, %s3001_s16 }
 0x391   :  { %1676 = vrot.lane.b32.xlu1 %v4102_v52, %s3001_s16  ;;  %1670 = vrot.lane.b32.xlu0 %v4100_v34, %s3001_s16 }
 0x395   :  { %1672 = vrot.lane.b32.xlu1 %v4111_v14, %s3001_s16  ;;  %1666 = vrot.lane.b32.xlu0 %v4109_v47, %s3001_s16 }
 0x399   :  { %1668 = vrot.lane.b32.xlu1 %v4123_v6, %s3001_s16  ;;  %1662 = vrot.lane.b32.xlu0 %v4121_v32, %s3001_s16 }
 0x39d   :  { %1664 = vrot.lane.b32.xlu1 %v4133_v40, %s3001_s16  ;;  %1658 = vrot.lane.b32.xlu0 %v4130_v19, %s3001_s16 }
 0x3a1   :  { %1660 = vrot.lane.b32.xlu1 %v4140_v2, %s3001_s16  ;;  %1775 = vperm.xlu0 %2996, %v1737_v25  }
 0x3a5   :  { %1755 = vperm.xlu1 %2997, %v1733_v16   ;;  %1770 = vperm.xlu0 %2996, %v1736_v3  }
 0x3a9   :  { %1750 = vperm.xlu1 %2997, %v1732_v29   ;;  %1765 = vperm.xlu0 %2996, %v1735_v18  }
 0x3ad   :  { %1745 = vperm.xlu1 %2997, %v1731_v20   ;;  %1760 = vperm.xlu0 %2996, %v1734_v38  }
 0x3b1   :  { %1740 = vperm.xlu1 %2997, %v1730_v39  }
 0x3d3   :  { %v1639_v21 = vpop.permute.xlu0 %1638 }
 0x3d7   :  { %v1635_v59 = vpop.permute.xlu0 %1634  ;;  %v1641_v37 = vpop.permute.xlu1 %1640 }
 0x3d8   :  { %2581 = vmatprep.subr.mxu0 %v1641_v37 }
 0x3d9   :  { %2582 = vmatpush3.msra.mxu0 %v4069_v24 }
 0x3da   :  { %2583 = vmatprep.subr.mxu0 %v1639_v21 }
 0x3db   :  { %v1631_v36 = vpop.permute.xlu0 %1630  ;;  %2584 = vmatpush3.msra.mxu0 %v4053_v4  ;;  %v1637_v50 = vpop.permute.xlu1 %1636 }
 0x3dc   :  { %2585 = vmatprep.subr.mxu0 %v1637_v50 }
 0x3dd   :  { %2586 = vmatpush3.msra.mxu0 %v4082_v12 }
 0x3de   :  { %2587 = vmatprep.subr.mxu0 %v1635_v59 }
 0x3df   :  { %v1627_v63 = vpop.permute.xlu0 %1626  ;;  %2588 = vmatpush3.msra.mxu0 %v4067_v46  ;;  %v1633_v58 = vpop.permute.xlu1 %1632 }
 0x3e0   :  { %2589 = vmatprep.subr.mxu0 %v1633_v58 }
 0x3e1   :  { %2590 = vmatpush3.msra.mxu0 %v4092_v56 }
 0x3e2   :  { %2591 = vmatprep.subr.mxu0 %v1631_v36 }
 0x3e3   :  { %v1623_v48 = vpop.permute.xlu0 %1622  ;;  %2592 = vmatpush3.msra.mxu0 %v4080_v30  ;;  %v1629_v24 = vpop.permute.xlu1 %1628  ;;  %v1710_v30 = vld [vmem:[%s4405_s6 + $0x20] sm:$0xff] }
 0x3e4   :  { %2593 = vmatprep.subr.mxu0 %v1629_v24 }
 0x3e5   :  { %2594 = vmatpush3.msra.mxu0 %v4102_v52  ;;  %v1724_v52 = vld [vmem:[%s4405_s6 + $0x90] sm:$0xff] }
 0x3e6   :  { %2595 = vmatprep.subr.mxu0 %v1627_v63 }
 0x3e7   :  { %v1619_v4 = vpop.permute.xlu0 %1618  ;;  %2596 = vmatpush3.msra.mxu0 %v4090_v13  ;;  %v1625_v28 = vpop.permute.xlu1 %1624  ;;  %v1715_v13 = vld [vmem:[%s4405_s6 + $0x48] sm:$0xff] }
 0x3e8   :  { %2597 = vmatprep.subr.mxu0 %v1625_v28 }
 0x3e9   :  { %2598 = vmatpush3.msra.mxu0 %v4111_v14  ;;  %v1708_v14 = vld [vmem:[%s4405_s6 + $0x10] sm:$0xff] }
 0x3ea   :  { %2599 = vmatprep.subr.mxu0 %v1623_v48 }
 0x3eb   :  { %v1615_v46 = vpop.permute.xlu0 %1614  ;;  %2600 = vmatpush3.msra.mxu0 %v4100_v34  ;;  %v1621_v44 = vpop.permute.xlu1 %1620  ;;  %v1725_v34 = vld [vmem:[%s4405_s6 + $0x98] sm:$0xff] }
 0x3ec   :  { %2601 = vmatprep.subr.mxu0 %v1621_v44 }
 0x3ed   :  { %2602 = vmatpush3.msra.mxu0 %v4123_v6  ;;  %v1714_v6 = vld [vmem:[%s4405_s6 + $0x40] sm:$0xff] }
 0x3ee   :  { %2603 = vmatprep.subr.mxu0 %v1619_v4 }
 0x3ef   :  { %v1611_v15 = vpop.permute.xlu0 %1610  ;;  %2604 = vmatpush3.msra.mxu0 %v4109_v47  ;;  %v1617_v26 = vpop.permute.xlu1 %1616 }
 0x3f0   :  { %2605 = vmatprep.subr.mxu0 %v1617_v26 }
 0x3f1   :  { %2606 = vmatpush3.msra.mxu0 %v4133_v40  ;;  %v1726_v40 = vld [vmem:[%s4405_s6 + $0xa0] sm:$0xff] }
 0x3f2   :  { %2607 = vmatprep.subr.mxu0 %v1615_v46 }
 0x3f3   :  { %v1687_v60 = vpop.permute.xlu0 %1686  ;;  %2608 = vmatpush3.msra.mxu0 %v4121_v32  ;;  %v1613_v62 = vpop.permute.xlu1 %1612  ;;  %v1711_v32 = vld [vmem:[%s4405_s6 + $0x28] sm:$0xff] }
 0x3f4   :  { %2609 = vmatprep.subr.mxu0 %v1613_v62 }
 0x3f5   :  { %2610 = vmatpush3.msra.mxu0 %v4140_v2 }
 0x3f6   :  { %2611 = vmatprep.subr.mxu0 %v1611_v15 }
 0x3f7   :  { %v1683_v41 = vpop.permute.xlu0 %1682  ;;  %2612 = vmatpush3.msra.mxu0 %v4130_v19  ;;  %v1689_v12 = vpop.permute.xlu1 %1688  ;;  %v1720_v19 = vld [vmem:[%s4405_s6 + $0x70] sm:$0xff] }
 0x3f8   :  { %1843 = vmatmul.mubr.f32.vlgmr.msra.gmra.mxu0 %v1706_v11  ;;  %2852 = vmatprep.subr.mxu0 %v1689_v12 }
 0x3f9   :  { %2853 = vmatpush3.msra.mxu0 %v1689_v12  ;;  %1847 = vmatprep.mubr.f32.mxu0 %v1710_v30 }
 0x3fa   :  { %2854 = vmatprep.subr.mxu0 %v1687_v60 }
 0x3fb   :  { %v1679_v17 = vpop.permute.xlu0 %1678  ;;  %2855 = vmatpush3.msra.mxu0 %v1687_v60  ;;  %v1685_v23 = vpop.permute.xlu1 %1684 }
 0x3fc   :  { %1848 = vmatmul.mubr.f32.gmra.mxu0 %v1709_v27  ;;  %2856 = vmatprep.subr.mxu0 %v1685_v23 }
 0x3fd   :  { %2857 = vmatpush3.msra.mxu0 %v1685_v23  ;;  %1852 = vmatprep.mubr.f32.mxu0 %v1713_v53 }
 0x3fe   :  { %2858 = vmatprep.subr.mxu0 %v1683_v41 }
 0x3ff   :  { %v1675_v1 = vpop.permute.xlu0 %1674  ;;  %2859 = vmatpush3.msra.mxu0 %v1683_v41  ;;  %v1681_v7 = vpop.permute.xlu1 %1680 }
 0x400   :  { %1853 = vmatmul.mubr.f32.gmra.mxu0 %v1712_v55  ;;  %2860 = vmatprep.subr.mxu0 %v1681_v7 }
 0x401   :  { %2861 = vmatpush3.msra.mxu0 %v1681_v7  ;;  %1857 = vmatprep.mubr.f32.mxu0 %v1716_v33 }
 0x402   :  { %2862 = vmatprep.subr.mxu0 %v1679_v17 }
 0x403   :  { %v1671_v56 = vpop.permute.xlu0 %1670  ;;  %2863 = vmatpush3.msra.mxu0 %v1679_v17  ;;  %v1677_v31 = vpop.permute.xlu1 %1676 }
 0x404   :  { %1858 = vmatmul.mubr.f32.gmra.mxu0 %v1715_v13  ;;  %2864 = vmatprep.subr.mxu0 %v1677_v31 }
 0x405   :  { %2865 = vmatpush3.msra.mxu0 %v1677_v31  ;;  %1862 = vmatprep.mubr.f32.mxu0 %v1719_v42 }
 0x406   :  { %2866 = vmatprep.subr.mxu0 %v1675_v1 }
 0x407   :  { %2867 = vmatpush3.msra.mxu0 %v1675_v1  ;;  %v1673_v49 = vpop.permute.xlu1 %1672  ;;  %v1667_v43 = vpop.permute.xlu0 %1666 }
 0x408   :  { %1863 = vmatmul.mubr.f32.gmra.mxu0 %v1718_v9  ;;  %2868 = vmatprep.subr.mxu0 %v1673_v49 }
 0x409   :  { %2869 = vmatpush3.msra.mxu0 %v1673_v49  ;;  %1867 = vmatprep.mubr.f32.mxu0 %v1722_v0 }
 0x40a   :  { %2870 = vmatprep.subr.mxu0 %v1671_v56 }
 0x40b   :  { %2871 = vmatpush3.msra.mxu0 %v1671_v56  ;;  %v1669_v45 = vpop.permute.xlu1 %1668  ;;  %v1663_v54 = vpop.permute.xlu0 %1662 }
 0x40c   :  { %1868 = vmatmul.mubr.f32.gmra.mxu0 %v1721_v22  ;;  %2872 = vmatprep.subr.mxu0 %v1669_v45 }
 0x40d   :  { %2873 = vmatpush3.msra.mxu0 %v1669_v45  ;;  %1872 = vmatprep.mubr.f32.mxu0 %v1725_v34 }
 0x40e   :  { %2874 = vmatprep.subr.mxu0 %v1667_v43 }
 0x40f   :  { %2875 = vmatpush3.msra.mxu0 %v1667_v43  ;;  %v1665_v47 = vpop.permute.xlu1 %1664  ;;  %v1659_v57 = vpop.permute.xlu0 %1658 }
 0x410   :  { %1873 = vmatmul.mubr.f32.gmra.mxu0 %v1724_v52  ;;  %2876 = vmatprep.subr.mxu0 %v1665_v47 }
 0x411   :  { %2877 = vmatpush3.msra.mxu0 %v1665_v47  ;;  %1877 = vmatprep.mubr.f32.mxu0 %v1728_v5 }
 0x412   :  { %2878 = vmatprep.subr.mxu0 %v1663_v54 }
 0x413   :  { %2879 = vmatpush3.msra.mxu0 %v1663_v54  ;;  %v1661_v8 = vpop.permute.xlu1 %1660 }
 0x414   :  { %1878 = vmatmul.mubr.f32.gmra.mxu0 %v1727_v51  ;;  %2880 = vmatprep.subr.mxu0 %v1661_v8 }
 0x415   :  { %2881 = vmatpush3.msra.mxu0 %v1661_v8  ;;  %2884 = vmatprep.mubr.f32.mxu0 %v1708_v14 }
 0x416   :  { %2882 = vmatprep.subr.mxu0 %v1659_v57 }
 0x417   :  { %2883 = vmatpush3.msra.mxu0 %v1659_v57 }
 0x418   :  { %2885 = vmatmul.mubr.f32.vlgmr.msra.gmra.mxu0 %v1711_v32 }
 0x419   :  { %2887 = vmatprep.mubr.f32.mxu0 %v1714_v6 }
 0x41c   :  { %2888 = vmatmul.mubr.f32.gmra.mxu0 %v1717_v35  ;;  %v1776_v36 = vpop.permute.xlu0 %1775 }
 0x41d   :  { %2890 = vmatprep.mubr.f32.mxu0 %v1720_v19 }
 0x420   :  { %2891 = vmatmul.mubr.f32.gmra.mxu0 %v1723_v10  ;;  %v1756_v63 = vpop.permute.xlu1 %1755  ;;  %v1771_v24 = vpop.permute.xlu0 %1770 }
 0x421   :  { %2893 = vmatprep.mubr.f32.mxu0 %v1726_v40 }
 0x424   :  { %2894 = vmatmul.mubr.f32.gmra.mxu0 %v1729_v61  ;;  %v1751_v28 = vpop.permute.xlu1 %1750  ;;  %v1766_v15 = vpop.permute.xlu0 %1765 }
 0x428   :  { %v1746_v60 = vpop.permute.xlu1 %1745  ;;  %v1761_v7 = vpop.permute.xlu0 %1760 }
 0x42c   :  { %v1741_v31 = vpop.permute.xlu1 %1740 }
 0x4b8   :  { %v2613_v2 = vpop.f32.mrf.mxu0 }
 0x4ba   :  { %v2614_v25 = vpop.f32.mrf.mxu0 }
 0x4bb   :  { %v2615_v17 = vadd.f32 %v2614_v25, %v2613_v2 }
 0x4bc   :  { %v2616_v16 = vpop.f32.mrf.mxu0 }
 0x4bd   :  { %v1845_v34 = vadd.f32 %v2615_v17, %v1741_v31  ;;  %v2150_v17 = vld [vmem:[%s4411_s10 + $0x38] sm:$0xff] }
 0x4be   :  { %v2617_v3 = vpop.f32.mrf.mxu0 }
 0x4bf   :  { %v2618_v30 = vadd.f32 %v2617_v3, %v2616_v16 }
 0x4c0   :  { %v2619_v29 = vpop.f32.mrf.mxu0 }
 0x4c1   :  { %v1850_v13 = vadd.f32 %v2618_v30, %v1746_v60  ;;  %v2270_v60 = vld [vmem:[%s4410_s11] sm:$0xf] }
 0x4c2   :  { %v2620_v18 = vpop.f32.mrf.mxu0  ;;  %v2155_v30 = vld [vmem:[%s4411_s10 + $0x60] sm:$0xff] }
 0x4c3   :  { %v2621_v41 = vadd.f32 %v2620_v18, %v2619_v29 }
 0x4c4   :  { %v2622_v20 = vpop.f32.mrf.mxu0 }
 0x4c5   :  { %v1855_v42 = vadd.f32 %v2621_v41, %v1751_v28  ;;  %v2033_v28 = vld [vmem:[%s4407_s8 + $0x8] sm:$0xff]  ;;  %v2154_v41 = vld [vmem:[%s4411_s10 + $0x58] sm:$0xff] }
 0x4c6   :  { %v2623_v38 = vpop.f32.mrf.mxu0 }
 0x4c7   :  { %v2624_v62 = vadd.f32 %v2623_v38, %v2622_v20 }
 0x4c8   :  { %v2625_v39 = vpop.f32.mrf.mxu0 }
 0x4c9   :  { %v1860_v33 = vadd.f32 %v2624_v62, %v1756_v63  ;;  %v2157_v62 = vld [vmem:[%s4411_s10 + $0x70] sm:$0xf] }
 0x4ca   :  { %v2626_v21 = vpop.f32.mrf.mxu0  ;;  %2923 = vmatprep.subr.msk.mxu0 %vm2171_vm2, %v2157_v62 }
 0x4cb   :  { %v2627_v27 = vadd.f32 %v2626_v21, %v2625_v39  ;;  %v2032_v39 = vld [vmem:[%s4407_s8] sm:$0xff]  ;;  %2924 = vmatpush3.msk.msra.mxu0 %vm2171_vm2, %v2157_v62 }
 0x4cc   :  { %v2628_v59 = vpop.f32.mrf.mxu0  ;;  %2920 = vmatprep.mubr.msk.f32.mxu1 %vm2046_vm1, %v2032_v39  ;;  %v2034_v21 = vld [vmem:[%s4408_s9] sm:$0xff] }
 0x4cd   :  { %v1865_v49 = vadd.f32 %v2627_v27, %v1761_v7  ;;  %v2152_v27 = vld [vmem:[%s4411_s10 + $0x48] sm:$0xff]  ;;  %v2145_v7 = vld [vmem:[%s4411_s10 + $0x10] sm:$0xff] }
 0x4ce   :  { %v2629_v37 = vpop.f32.mrf.mxu0 }
 0x4cf   :  { %v2630_v11 = vadd.f32 %v2629_v37, %v2628_v59  ;;  %v2035_v59 = vld [vmem:[%s4408_s9 + $0x8] sm:$0xff] }
 0x4d0   :  { %v2631_v50 = vpop.f32.mrf.mxu0 }
 0x4d1   :  { %v1870_v1 = vadd.f32 %v2630_v11, %v1766_v15  ;;  %v2272_v15 = vld [vmem:[%s4409_s1 + $0x8] sm:$0xff] }
 0x4d2   :  { %v2632_v58 = vpop.f32.mrf.mxu0  ;;  %v2156_v11 = vld [vmem:[%s4411_s10 + $0x68] sm:$0xff] }
 0x4d3   :  { %v2633_v55 = vadd.f32 %v2632_v58, %v2631_v50  ;;  %2925 = vmatprep.subr.mxu0 %v2156_v11 }
 0x4d4   :  { %v2634_v48 = vpop.f32.mrf.mxu0  ;;  %2926 = vmatpush3.msra.mxu0 %v2156_v11 }
 0x4d5   :  { %v1875_v47 = vadd.f32 %v2633_v55, %v1771_v24  ;;  %2927 = vmatprep.subr.mxu0 %v2155_v30  ;;  %v2148_v55 = vld [vmem:[%s4411_s10 + $0x28] sm:$0xff] }
 0x4d6   :  { %v2635_v4 = vpop.f32.mrf.mxu0  ;;  %2928 = vmatpush3.msra.mxu0 %v2155_v30 }
 0x4d7   :  { %v2636_v53 = vadd.f32 %v2635_v4, %v2634_v48  ;;  %2929 = vmatprep.subr.mxu0 %v2154_v41 }
 0x4d8   :  { %v2886_v46 = vpop.f32.mrf.mxu0  ;;  %2930 = vmatpush3.msra.mxu0 %v2154_v41 }
 0x4d9   :  { %v1880_v43 = vadd.f32 %v2636_v53, %v1776_v36  ;;  %v1955_v22 = vadd.f32 %v2886_v46, %v1850_v13  ;;  %v2273_v46 = vld [vmem:[%s4409_s1 + $0x10] sm:$0xf]  ;;  %v2151_v53 = vld [vmem:[%s4411_s10 + $0x40] sm:$0xff]  ;;  %v2144_v13 = vld [vmem:[%s4411_s10 + $0x8] sm:$0xff] }
 0x4da   :  { %v1949_v44 = vpop.f32.mrf.mxu0 }
 0x4db   :  { %v1950_v51 = vadd.f32 %v1949_v44, %v1845_v34  ;;  %v1989_v35 = vmax.f32 %v1955_v22, 0.0  ;;  %v4456_v44 = vmov 0.0  }
 0x4dc   :  { %v2889_v26 = vpop.f32.mrf.mxu0 }
 0x4dd   :  { %v1965_v9 = vadd.f32 %v2889_v26, %v1860_v33  ;;  %v1988_v2 = vmax.f32 %v1950_v51, 0.0  ;;  %v2271_v26 = vld [vmem:[%s4409_s1] sm:$0xff] }
 0x4de   :  { %v1959_v12 = vpop.f32.mrf.mxu0  ;;  %v2147_v33 = vld [vmem:[%s4411_s10 + $0x20] sm:$0xff] }
 0x4df   :  { %v1960_v52 = vadd.f32 %v1959_v12, %v1855_v42  ;;  %v1991_v8 = vmax.f32 %v1965_v9, 0.0  ;;  %v2153_v12 = vld [vmem:[%s4411_s10 + $0x50] sm:$0xff]  ;;  %v2143_v42 = vld [vmem:[%s4411_s10] sm:$0xff] }
 0x4e0   :  { %v2892_v23 = vpop.f32.mrf.mxu0  ;;  %2931 = vmatprep.subr.mxu0 %v2153_v12  ;;  %v2359_v51 = vld [vmem:[%s4413_s14] sm:$0x1f] }
 0x4e1   :  { %v1975_v0 = vadd.f32 %v2892_v23, %v1870_v1  ;;  %v1990_v19 = vmax.f32 %v1960_v52, 0.0  ;;  %2932 = vmatpush3.msra.mxu0 %v2153_v12  ;;  %v2149_v23 = vld [vmem:[%s4411_s10 + $0x30] sm:$0xff]  ;;  %v2146_v1 = vld [vmem:[%s4411_s10 + $0x18] sm:$0xff]  ;;  %s3003_s10 = smov 124  }
 0x4e2   :  { %v1969_v56 = vpop.f32.mrf.mxu0  ;;  %2933 = vmatprep.subr.mxu0 %v2152_v27 }
 0x4e3   :  { %v1970_v5 = vadd.f32 %v1969_v56, %v1865_v49  ;;  %v1993_v57 = vmax.f32 %v1975_v0, 0.0  ;;  %2934 = vmatpush3.msra.mxu0 %v2152_v27 }
 0x4e4   :  { %v2895_v45 = vpop.f32.mrf.mxu0  ;;  %2935 = vmatprep.subr.mxu0 %v2151_v53 }
 0x4e5   :  { %v1985_v54 = vadd.f32 %v2895_v45, %v1880_v43  ;;  %v1992_v10 = vmax.f32 %v1970_v5, 0.0  ;;  %v1997_v25 = vadd.f32 %v1993_v57, %v1989_v35  ;;  %2936 = vmatpush3.msra.mxu0 %v2151_v53 }
 0x4e6   :  { %v1979_v14 = vpop.f32.mrf.mxu0  ;;  %2937 = vmatprep.subr.mxu0 %v2150_v17 }
 0x4e7   :  { %v1995_v32 = vmax.f32 %v1985_v54, 0.0  ;;  %v1980_v6 = vadd.f32 %v1979_v14, %v1875_v47  ;;  %v1996_v29 = vadd.f32 %v1992_v10, %v1988_v2  ;;  %v2001_v20 = vmul.f32 0.5, %v1997_v25  ;;  %2938 = vmatpush3.msra.mxu0 %v2150_v17  ;;  %v2274_v47 = vld [vmem:[%s4412_s12] sm:$0xf] }
 0x4e8   :  { %2939 = vmatprep.subr.mxu0 %v2149_v23 }
 0x4e9   :  { %v1999_v40 = vadd.f32 %v1995_v32, %v1991_v8  ;;  %v1994_v61 = vmax.f32 %v1980_v6, 0.0  ;;  %v2000_v38 = vmul.f32 0.5, %v1996_v29  ;;  %2940 = vmatpush3.msra.mxu0 %v2149_v23  ;;  %v2358_v29 = vld [vmem:[%s4414_s13] sm:$0x1f] }
 0x4ea   :  { %2941 = vmatprep.subr.mxu0 %v2148_v55 }
 0x4eb   :  { %v2003_v16 = vmul.f32 0.5, %v1999_v40  ;;  %v1998_v3 = vadd.f32 %v1994_v61, %v1990_v19  ;;  %2942 = vmatpush3.msra.mxu0 %v2148_v55 }
 0x4ec   :  { %2943 = vmatprep.subr.mxu0 %v2147_v33 }
 0x4ed   :  { %v2002_v18 = vmul.f32 0.5, %v1998_v3  ;;  %2026 = vrot.lane.b32.xlu1 %v2003_v16, %s3001_s16  ;;  %2944 = vmatpush3.msra.mxu0 %v2147_v33 }
 0x4ee   :  { %2945 = vmatprep.subr.mxu0 %v2146_v1 }
 0x4ef   :  { %2024 = vrot.lane.b32.xlu0 %v2002_v18, %s3001_s16  ;;  %2946 = vmatpush3.msra.mxu0 %v2146_v1 }
 0x4f0   :  { %2947 = vmatprep.subr.mxu0 %v2145_v7 }
 0x4f1   :  { %2022 = vrot.lane.b32.xlu1 %v2001_v20, %s3001_s16  ;;  %2948 = vmatpush3.msra.mxu0 %v2145_v7 }
 0x4f2   :  { %2949 = vmatprep.subr.mxu0 %v2144_v13 }
 0x4f3   :  { %2020 = vrot.lane.b32.xlu0 %v2000_v38, %s3001_s16  ;;  %2950 = vmatpush3.msra.mxu0 %v2144_v13 }
 0x4f4   :  { %2951 = vmatprep.subr.mxu0 %v2143_v42 }
 0x4f5   :  { %2014 = vrot.lane.b32.xlu1 %v2003_v16, %s2998_s22  ;;  %2952 = vmatpush3.msra.mxu0 %v2143_v42 }
 0x4f7   :  { %2012 = vrot.lane.b32.xlu0 %v2002_v18, %s2998_s22 }
 0x4f9   :  { %2010 = vrot.lane.b32.xlu1 %v2001_v20, %s2998_s22 }
 0x4fb   :  { %2008 = vrot.lane.b32.xlu0 %v2000_v38, %s2998_s22 }
 0x4fd   :  { %2038 = vperm.xlu1 %2997, %v2034_v21  }
 0x4ff   :  { %2043 = vperm.xlu0 %2996, %v2035_v59  }
 0x55f   :  { %v2027_v37 = vpop.permute.xlu1 %2026 }
 0x560   :  { %2896 = vmatprep.subr.mxu1 %v2027_v37 }
 0x561   :  { %v2025_v36 = vpop.permute.xlu0 %2024  ;;  %2897 = vmatpush3.msra.mxu1 %v2027_v37 }
 0x562   :  { %2898 = vmatprep.subr.mxu1 %v2025_v36 }
 0x563   :  { %2899 = vmatpush3.msra.mxu1 %v2025_v36  ;;  %v2023_v50 = vpop.permute.xlu1 %2022 }
 0x564   :  { %2900 = vmatprep.subr.mxu1 %v2023_v50 }
 0x565   :  { %v2021_v63 = vpop.permute.xlu0 %2020  ;;  %2901 = vmatpush3.msra.mxu1 %v2023_v50 }
 0x566   :  { %2902 = vmatprep.subr.mxu1 %v2021_v63 }
 0x567   :  { %2903 = vmatpush3.msra.mxu1 %v2021_v63  ;;  %v2015_v58 = vpop.permute.xlu1 %2014 }
 0x568   :  { %2904 = vmatprep.subr.mxu1 %v2015_v58 }
 0x569   :  { %v2013_v48 = vpop.permute.xlu0 %2012  ;;  %2905 = vmatpush3.msra.mxu1 %v2015_v58 }
 0x56a   :  { %2906 = vmatprep.subr.mxu1 %v2013_v48 }
 0x56b   :  { %2907 = vmatpush3.msra.mxu1 %v2013_v48  ;;  %v2011_v24 = vpop.permute.xlu1 %2010 }
 0x56c   :  { %2908 = vmatprep.subr.mxu1 %v2011_v24 }
 0x56d   :  { %v2009_v4 = vpop.permute.xlu0 %2008  ;;  %2909 = vmatpush3.msra.mxu1 %v2011_v24 }
 0x56e   :  { %2910 = vmatprep.subr.mxu1 %v2009_v4 }
 0x56f   :  { %2911 = vmatpush3.msra.mxu1 %v2009_v4 }
 0x570   :  { %2912 = vmatprep.subr.mxu1 %v2003_v16 }
 0x571   :  { %2913 = vmatpush3.msra.mxu1 %v2003_v16 }
 0x572   :  { %2914 = vmatprep.subr.mxu1 %v2002_v18 }
 0x573   :  { %2915 = vmatpush3.msra.mxu1 %v2002_v18 }
 0x574   :  { %2916 = vmatprep.subr.mxu1 %v2001_v20 }
 0x575   :  { %2917 = vmatpush3.msra.mxu1 %v2001_v20 }
 0x576   :  { %2918 = vmatprep.subr.mxu1 %v2000_v38 }
 0x577   :  { %2919 = vmatpush3.msra.mxu1 %v2000_v38 }
 0x578   :  { %2921 = vmatmul.mubr.msk.f32.vlgmr.msra.gmra.mxu1 %vm2046_vm1, %v2033_v28  ;;  %2962 = vmatprep.subr.mxu1 %v4456_v44  ;;  %v2039_v0 = vpop.permute.xlu1 %2038 }
 0x579   :  { %2963 = vmatpush3.msk.msra.mxu1 %vm2171_vm2, %v2273_v46  ;;  %2968 = vmatprep.mubr.msk.f32.mxu1 %vm3002_vm3, %v4456_v44 }
 0x57a   :  { %2964 = vmatprep.subr.mxu1 %v4456_v44  ;;  %v2044_v56 = vpop.permute.xlu0 %2043 }
 0x57b   :  { %2965 = vmatpush3.msra.mxu1 %v2272_v15 }
 0x57c   :  { %2966 = vmatprep.subr.mxu1 %v4456_v44 }
 0x57d   :  { %2967 = vmatpush3.msra.mxu1 %v2271_v26 }
 0x57e   :  { %2969 = vmatmul.mubr.msk.f32.vlgmr.msra.gmra.mxu1 %vm2280_vm4, %v2270_v60  ;;  %2971 = vmatprep.subr.mxu1 %v4456_v44 }
 0x57f   :  { %2985 = vmatprep.mubr.msk.f32.mxu1 %vm3002_vm3, %v4456_v44 }
 0x638   :  { %v2922_v31 = vpop.f32.mrf.mxu1 }
 0x639   :  { %v2125_v9 = vadd.f32 %v2922_v31, %v2044_v56 }
 0x63a   :  { %v2119_v49 = vpop.f32.mrf.mxu1 }
 0x63b   :  { %v2120_v43 = vadd.f32 %v2119_v49, %v2039_v0  ;;  %v2129_v22 = vmax.f32 %v2125_v9, 0.0 }
 0x63d   :  { %v2128_v34 = vmax.f32 %v2120_v43, 0.0 }
 0x63e   :  { %v2353_v45 = vpop.f32.mrf.mxu1 }
 0x63f   :  { %v2130_v52 = vadd.f32 %v2129_v22, %v2128_v34 }
 0x640   :  { %v2970_v5 = vpop.f32.mrf.mxu1 }
 0x641   :  { %v2131_v54 = vmul.f32 0.5, %v2130_v52 }
 0x643   :  { %2135 = vrot.lane.b32.xlu0 %v2131_v54, %s3001_s16  ;;  %2133 = vrot.lane.b32.xlu1 %v2131_v54, %s2998_s22 }
 0x644   :  { %2953 = vmatprep.mubr.msk.f32.mxu0 %vm2158_vm5, %v2131_v54 }
 0x647   :  { %2139 = vrot.lane.b32.xlu0 %v2131_v54, %s3003_s10  ;;  %2137 = vrot.lane.b32.xlu1 %v2131_v54, %s3004_s23 }
 0x64b   :  { %2277 = vperm.xlu0 %2996, %v2274_v47   ;;  %2141 = vrot.lane.b32.xlu1 %v2131_v54, %s3005_s25 }
 0x64f   :  { %2362 = vperm.xlu1 %2997, %v2359_v51  }
 0x6b5   :  { %v2136_v14 = vpop.permute.xlu0 %2135  ;;  %v2134_v8 = vpop.permute.xlu1 %2133 }
 0x6b6   :  { %2954 = vmatmul.mubr.msk.f32.vlgmr.msra.gmra.mxu0 %vm2158_vm5, %v2134_v8 }
 0x6b7   :  { %2956 = vmatprep.mubr.msk.f32.mxu0 %vm2158_vm5, %v2136_v14 }
 0x6b9   :  { %v2140_v57 = vpop.permute.xlu0 %2139  ;;  %v2138_v32 = vpop.permute.xlu1 %2137 }
 0x6ba   :  { %2957 = vmatmul.mubr.msk.f32.gmra.mxu0 %vm2158_vm5, %v2138_v32 }
 0x6bb   :  { %2959 = vmatprep.mubr.msk.f32.mxu0 %vm2158_vm5, %v2140_v57 }
 0x6bd   :  { %v2142_v6 = vpop.permute.xlu1 %2141 }
 0x6be   :  { %2960 = vmatmul.mubr.msk.f32.gmra.mxu0 %vm2158_vm5, %v2142_v6 }
 0x6c6   :  { %v2278_v35 = vpop.permute.xlu0 %2277 }
 0x6c7   :  { %v2354_v19 = vadd.f32 %v2353_v45, %v2278_v35 }
 0x6c9   :  { %v2357_v10 = vmax.f32 %v2354_v19, 0.0 }
 0x6ca   :  { %v2363_v18 = vpop.permute.xlu1 %2362 }
 0x6cb   :  { %2972 = vmatpush3.msk.msra.mxu1 %vm2171_vm2, %v2357_v10 }
 0x6cc   :  { %2973 = vmatprep.subr.mxu1 %v4456_v44 }
 0x776   :  { %v2955_v40 = vpop.f32.mrf.mxu0 }
 0x778   :  { %v2241_v61 = vpop.f32.mrf.mxu0 }
 0x77a   :  { %v2958_v2 = vpop.f32.mrf.mxu0 }
 0x77c   :  { %v2251_v25 = vpop.f32.mrf.mxu0 }
 0x77e   :  { %v2961_v16 = vpop.f32.mrf.mxu0 }
 0x77f   :  { %2974 = vmatpush3.msra.mxu1 %v2961_v16 }
 0x780   :  { %v2261_v3 = vpop.f32.mrf.mxu0  ;;  %2975 = vmatprep.subr.mxu1 %v4456_v44 }
 0x781   :  { %2976 = vmatpush3.msra.mxu1 %v2261_v3 }
 0x782   :  { %2977 = vmatprep.subr.mxu1 %v4456_v44 }
 0x783   :  { %2978 = vmatpush3.msra.mxu1 %v2958_v2 }
 0x784   :  { %2979 = vmatprep.subr.mxu1 %v4456_v44 }
 0x785   :  { %2980 = vmatpush3.msra.mxu1 %v2251_v25 }
 0x786   :  { %2981 = vmatprep.subr.mxu1 %v4456_v44 }
 0x787   :  { %2982 = vmatpush3.msra.mxu1 %v2955_v40 }
 0x788   :  { %2983 = vmatprep.subr.mxu1 %v4456_v44 }
 0x789   :  { %2984 = vmatpush3.msra.mxu1 %v2241_v61 }
 0x78a   :  { %2986 = vmatmul.mubr.msk.f32.vlgmr.msra.gmra.mxu1 %vm2365_vm6, %v2358_v29 }
 0x84a   :  { %v2438_v20 = vpop.f32.mrf.mxu1 }
 0x84b   :  { %v2439_v38 = vadd.f32 %v2438_v20, %v2363_v18 }
 0x84c   :  { %v2987_v39 = vpop.f32.mrf.mxu1 }
 0x84d   :  { %2443 = vst.msk [vmem:[%s4415_s15] sm:$0x1f] %vm2442_vm7, %v2439_v38 }

// kernel: tpu_custom_call.1
= control target key start
LH: loop header
LB: loop body
LE: loop exit
PB: predicated region body
PF: predicated region fallthrough
CT: control target
= control target key end

     0   :  { %s2998_s22 = smov 127   ;;  %vm294_vm0 = vcmask 523264   ;;  %v2999_v5 = vmov 0   ;;  %s3001_s16 = smov 126   ;;  %vm2046_vm1 = vcmask 785408   ;;  %vm2171_vm2 = vcmask 1043456   ;;  %s4400_s0 = inlined_call_operand.vmem [shape: f32[1,32,128], index: 0, kind: input, shape index: {}]   ;;  %s4401_s2 = inlined_call_operand.vmem [shape: f32[256,64], index: 2, kind: input, shape index: {}]   ;;  %s4402_s3 = inlined_call_operand.vmem [shape: f32[256,1], index: 3, kind: input, shape index: {}]   ;;  %s4403_s4 = inlined_call_operand.vmem [shape: f32[256,384], index: 4, kind: input, shape index: {}]   ;;  %s4404_s5 = inlined_call_operand.vmem [shape: f32[256,1], index: 5, kind: input, shape index: {}]   ;;  %s4405_s6 = inlined_call_operand.vmem [shape: f32[64,384], index: 6, kind: input, shape index: {}]   ;;  %s4406_s7 = inlined_call_operand.vmem [shape: f32[64,1], index: 7, kind: input, shape index: {}]   ;;  %s4407_s8 = inlined_call_operand.vmem [shape: f32[16,96], index: 8, kind: input, shape index: {}]   ;;  %s4408_s9 = inlined_call_operand.vmem [shape: f32[16,1], index: 9, kind: input, shape index: {}]   ;;  %s4409_s1 = inlined_call_operand.vmem [shape: f32[1,20,7], index: 1, kind: input, shape index: {}]   ;;  %s4410_s11 = inlined_call_operand.vmem [shape: f32[4,20], index: 11, kind: input, shape index: {}]   ;;  %s4411_s10 = inlined_call_operand.vmem [shape: f32[116,7], index: 10, kind: input, shape index: {}]   ;;  %s4412_s12 = inlined_call_operand.vmem [shape: f32[4,1], index: 12, kind: input, shape index: {}]   ;;  %s4413_s14 = inlined_call_operand.vmem [shape: f32[5,1], index: 14, kind: input, shape index: {}]   ;;  %s4414_s13 = inlined_call_operand.vmem [shape: f32[5,52], index: 13, kind: input, shape index: {}]   ;;  %s4415_s15 = inlined_call_operand.vmem [shape: f32[1,5,7], index: 15, kind: output, shape index: {}]  }
   0x1   :  { %v3089_v0 = vld [vmem:[%s4400_s0 + $0x18] sm:$0xff]  ;;  %v3094_v1 = vld [vmem:[%s4400_s0 + $0x8] sm:$0xff]  ;;  %v3103_v2 = vld [vmem:[%s4400_s0 + $0x10] sm:$0xff]  ;;  %2997 = vset.pattern.permute.xlu1 %v2999_v5  ;;  %2996 = vset.pattern.permute.xlu0 %v2999_v5  ;;  %vm3002_vm3 = vmmov 0   ;;  %vm2280_vm4 = vcmask 162816   ;;  %vm2158_vm5 = vcmask 949248  }
   0x2   :  { %64 = vrot.lane.b32.xlu0 %v3089_v0, %s2998_s22  ;;  %60 = vrot.lane.b32.xlu1 %v3094_v1, %s2998_s22  ;;  %v3108_v3 = vld [vmem:[%s4400_s0] sm:$0xff]  ;;  %v133_v6 = vld [vmem:[%s4402_s3 + $0xf8] sm:$0xff]  ;;  %s3004_s23 = smov 125   ;;  %s3005_s25 = smov 123   ;;  %vm2365_vm6 = vcmask 424960   ;;  %vm2442_vm7 = vcmask 53248  }
   0x3   :  { %v70_v4 = vld [vmem:[%s4401_s2] sm:$0xff]  ;;  %v116_v7 = vld [vmem:[%s4402_s3 + $0x70] sm:$0xff]  ;;  %v115_v8 = vld [vmem:[%s4402_s3 + $0x68] sm:$0xff] }
   0x4   :  { %2724 = vmatprep.mubr.msk.f32.mxu0 %vm294_vm0, %v70_v4  ;;  %v114_v9 = vld [vmem:[%s4402_s3 + $0x60] sm:$0xff]  ;;  %v113_v10 = vld [vmem:[%s4402_s3 + $0x58] sm:$0xff]  ;;  %v112_v11 = vld [vmem:[%s4402_s3 + $0x50] sm:$0xff] }
   0x5   :  { %v111_v12 = vld [vmem:[%s4402_s3 + $0x48] sm:$0xff]  ;;  %v117_v13 = vld [vmem:[%s4402_s3 + $0x78] sm:$0xff]  ;;  %v110_v14 = vld [vmem:[%s4402_s3 + $0x40] sm:$0xff] }
   0x6   :  { %62 = vrot.lane.b32.xlu0 %v3103_v2, %s2998_s22  ;;  %58 = vrot.lane.b32.xlu1 %v3108_v3, %s2998_s22  ;;  %v132_v15 = vld [vmem:[%s4402_s3 + $0xf0] sm:$0xff]  ;;  %v109_v16 = vld [vmem:[%s4402_s3 + $0x38] sm:$0xff] }
   0x7   :  { %v131_v17 = vld [vmem:[%s4402_s3 + $0xe8] sm:$0xff]  ;;  %v108_v18 = vld [vmem:[%s4402_s3 + $0x30] sm:$0xff]  ;;  %v130_v19 = vld [vmem:[%s4402_s3 + $0xe0] sm:$0xff] }
   0x8   :  { %v107_v20 = vld [vmem:[%s4402_s3 + $0x28] sm:$0xff]  ;;  %v129_v21 = vld [vmem:[%s4402_s3 + $0xd8] sm:$0xff]  ;;  %v106_v22 = vld [vmem:[%s4402_s3 + $0x20] sm:$0xff] }
   0x9   :  { %v128_v23 = vld [vmem:[%s4402_s3 + $0xd0] sm:$0xff]  ;;  %v105_v24 = vld [vmem:[%s4402_s3 + $0x18] sm:$0xff]  ;;  %v127_v25 = vld [vmem:[%s4402_s3 + $0xc8] sm:$0xff] }
   0xa   :  { %291 = vperm.xlu1 %2997, %v133_v6   ;;  %211 = vperm.xlu0 %2996, %v117_v13   ;;  %v104_v26 = vld [vmem:[%s4402_s3 + $0x10] sm:$0xff]  ;;  %v126_v27 = vld [vmem:[%s4402_s3 + $0xc0] sm:$0xff]  ;;  %v103_v28 = vld [vmem:[%s4402_s3 + $0x8] sm:$0xff] }
   0xb   :  { %v125_v29 = vld [vmem:[%s4402_s3 + $0xb8] sm:$0xff]  ;;  %v102_v30 = vld [vmem:[%s4402_s3] sm:$0xff]  ;;  %v124_v31 = vld [vmem:[%s4402_s3 + $0xb0] sm:$0xff] }
   0xc   :  { %v123_v32 = vld [vmem:[%s4402_s3 + $0xa8] sm:$0xff]  ;;  %v122_v33 = vld [vmem:[%s4402_s3 + $0xa0] sm:$0xff]  ;;  %v121_v34 = vld [vmem:[%s4402_s3 + $0x98] sm:$0xff] }
   0xd   :  { %v120_v35 = vld [vmem:[%s4402_s3 + $0x90] sm:$0xff]  ;;  %v119_v36 = vld [vmem:[%s4402_s3 + $0x88] sm:$0xff]  ;;  %v118_v37 = vld [vmem:[%s4402_s3 + $0x80] sm:$0xff] }
   0xe   :  { %206 = vperm.xlu1 %2997, %v116_v7   ;;  %286 = vperm.xlu0 %2996, %v132_v15   ;;  %v71_v42 = vld [vmem:[%s4401_s2 + $0x8] sm:$0xff]  ;;  %v72_v43 = vld [vmem:[%s4401_s2 + $0x10] sm:$0xff]  ;;  %v73_v44 = vld [vmem:[%s4401_s2 + $0x18] sm:$0xff] }
   0xf   :  { %v74_v45 = vld [vmem:[%s4401_s2 + $0x20] sm:$0xff]  ;;  %v75_v46 = vld [vmem:[%s4401_s2 + $0x28] sm:$0xff]  ;;  %v76_v47 = vld [vmem:[%s4401_s2 + $0x30] sm:$0xff] }
  0x10   :  { %v77_v48 = vld [vmem:[%s4401_s2 + $0x38] sm:$0xff]  ;;  %v78_v49 = vld [vmem:[%s4401_s2 + $0x40] sm:$0xff]  ;;  %v79_v50 = vld [vmem:[%s4401_s2 + $0x48] sm:$0xff] }
  0x11   :  { %v80_v51 = vld [vmem:[%s4401_s2 + $0x50] sm:$0xff]  ;;  %v81_v52 = vld [vmem:[%s4401_s2 + $0x58] sm:$0xff]  ;;  %v82_v53 = vld [vmem:[%s4401_s2 + $0x60] sm:$0xff] }
  0x12   :  { %201 = vperm.xlu1 %2997, %v115_v8   ;;  %281 = vperm.xlu0 %2996, %v131_v17   ;;  %v83_v54 = vld [vmem:[%s4401_s2 + $0x68] sm:$0xff]  ;;  %v84_v55 = vld [vmem:[%s4401_s2 + $0x70] sm:$0xff]  ;;  %v85_v56 = vld [vmem:[%s4401_s2 + $0x78] sm:$0xff] }
  0x13   :  { %v86_v57 = vld [vmem:[%s4401_s2 + $0x80] sm:$0xff]  ;;  %v87_v58 = vld [vmem:[%s4401_s2 + $0x88] sm:$0xff]  ;;  %v88_v59 = vld [vmem:[%s4401_s2 + $0x90] sm:$0xff] }
  0x14   :  { %v89_v60 = vld [vmem:[%s4401_s2 + $0x98] sm:$0xff]  ;;  %v90_v61 = vld [vmem:[%s4401_s2 + $0xa0] sm:$0xff]  ;;  %v91_v62 = vld [vmem:[%s4401_s2 + $0xa8] sm:$0xff] }
  0x15   :  { %v92_v63 = vld [vmem:[%s4401_s2 + $0xb0] sm:$0xff]  ;;  %v97_v4 = vld [vmem:[%s4401_s2 + $0xd8] sm:$0xff]  ;;  %v98_v5 = vld [vmem:[%s4401_s2 + $0xe0] sm:$0xff] }
  0x16   :  { %196 = vperm.xlu1 %2997, %v114_v9   ;;  %276 = vperm.xlu0 %2996, %v130_v19   ;;  %v99_v6 = vld [vmem:[%s4401_s2 + $0xe8] sm:$0xff]  ;;  %v100_v7 = vld [vmem:[%s4401_s2 + $0xf0] sm:$0xff]  ;;  %v101_v8 = vld [vmem:[%s4401_s2 + $0xf8] sm:$0xff]  ;;  %v4416_v9 = vmov 0.0  }
  0x17   :  { %1080 = vmatprep.subr.mxu1 %v4416_v9 }
  0x1a   :  { %191 = vperm.xlu1 %2997, %v113_v10   ;;  %271 = vperm.xlu0 %2996, %v129_v21  }
  0x1e   :  { %186 = vperm.xlu1 %2997, %v112_v11   ;;  %266 = vperm.xlu0 %2996, %v128_v23  }
  0x22   :  { %181 = vperm.xlu1 %2997, %v111_v12   ;;  %261 = vperm.xlu0 %2996, %v127_v25  }
  0x26   :  { %176 = vperm.xlu1 %2997, %v110_v14   ;;  %256 = vperm.xlu0 %2996, %v126_v27  }
  0x2a   :  { %171 = vperm.xlu1 %2997, %v109_v16   ;;  %251 = vperm.xlu0 %2996, %v125_v29  }
  0x2e   :  { %166 = vperm.xlu1 %2997, %v108_v18   ;;  %246 = vperm.xlu0 %2996, %v124_v31  }
  0x32   :  { %161 = vperm.xlu1 %2997, %v107_v20   ;;  %241 = vperm.xlu0 %2996, %v123_v32  }
  0x36   :  { %156 = vperm.xlu1 %2997, %v106_v22   ;;  %236 = vperm.xlu0 %2996, %v122_v33  }
  0x3a   :  { %151 = vperm.xlu1 %2997, %v105_v24   ;;  %231 = vperm.xlu0 %2996, %v121_v34  }
  0x3e   :  { %146 = vperm.xlu1 %2997, %v104_v26   ;;  %226 = vperm.xlu0 %2996, %v120_v35  }
  0x42   :  { %141 = vperm.xlu1 %2997, %v103_v28   ;;  %221 = vperm.xlu0 %2996, %v119_v36  }
  0x46   :  { %136 = vperm.xlu1 %2997, %v102_v30   ;;  %216 = vperm.xlu0 %2996, %v118_v37  }
  0x74   :  { %v65_v38 = vpop.permute.xlu0 %64  ;;  %v61_v39 = vpop.permute.xlu1 %60 }
  0x75   :  { %2708 = vmatprep.subr.mxu0 %v65_v38 }
  0x76   :  { %2709 = vmatpush3.msra.mxu0 %v65_v38 }
  0x78   :  { %v63_v40 = vpop.permute.xlu0 %62  ;;  %v59_v41 = vpop.permute.xlu1 %58 }
  0x79   :  { %2710 = vmatprep.subr.mxu0 %v63_v40 }
  0x7a   :  { %2711 = vmatpush3.msra.mxu0 %v63_v40 }
  0x7b   :  { %2712 = vmatprep.subr.mxu0 %v61_v39 }
  0x7c   :  { %2713 = vmatpush3.msra.mxu0 %v61_v39 }
  0x7d   :  { %2714 = vmatprep.subr.mxu0 %v59_v41 }
  0x7e   :  { %2715 = vmatpush3.msra.mxu0 %v59_v41 }
  0x7f   :  { %2716 = vmatprep.subr.mxu0 %v3089_v0 }
  0x80   :  { %2717 = vmatpush3.msra.mxu0 %v3089_v0  ;;  %v93_v0 = vld [vmem:[%s4401_s2 + $0xb8] sm:$0xff] }
  0x81   :  { %2718 = vmatprep.subr.mxu0 %v3103_v2 }
  0x82   :  { %2719 = vmatpush3.msra.mxu0 %v3103_v2  ;;  %v95_v2 = vld [vmem:[%s4401_s2 + $0xc8] sm:$0xff] }
  0x83   :  { %2720 = vmatprep.subr.mxu0 %v3094_v1 }
  0x84   :  { %2721 = vmatpush3.msra.mxu0 %v3094_v1  ;;  %v94_v1 = vld [vmem:[%s4401_s2 + $0xc0] sm:$0xff] }
  0x85   :  { %2722 = vmatprep.subr.mxu0 %v3108_v3  ;;  %v292_v10 = vpop.permute.xlu1 %291  ;;  %v212_v11 = vpop.permute.xlu0 %211 }
  0x86   :  { %2723 = vmatpush3.msra.mxu0 %v3108_v3  ;;  %v96_v3 = vld [vmem:[%s4401_s2 + $0xd0] sm:$0xff] }
  0x87   :  { %2725 = vmatmul.mubr.msk.f32.vlgmr.msra.gmra.mxu0 %vm294_vm0, %v71_v42 }
  0x88   :  { %2727 = vmatprep.mubr.msk.f32.mxu0 %vm294_vm0, %v72_v43 }
  0x89   :  { %v207_v12 = vpop.permute.xlu1 %206  ;;  %v3347_v13 = vpop.permute.xlu0 %286 }
  0x8b   :  { %2728 = vmatmul.mubr.msk.f32.gmra.mxu0 %vm294_vm0, %v73_v44 }
  0x8c   :  { %2730 = vmatprep.mubr.msk.f32.mxu0 %vm294_vm0, %v74_v45 }
  0x8d   :  { %v202_v17 = vpop.permute.xlu1 %201  ;;  %v282_v18 = vpop.permute.xlu0 %281 }
  0x8f   :  { %2731 = vmatmul.mubr.msk.f32.gmra.mxu0 %vm294_vm0, %v75_v46 }
  0x90   :  { %2733 = vmatprep.mubr.msk.f32.mxu0 %vm294_vm0, %v76_v47 }
  0x91   :  { %v197_v22 = vpop.permute.xlu1 %196  ;;  %v277_v23 = vpop.permute.xlu0 %276 }
  0x93   :  { %2734 = vmatmul.mubr.msk.f32.gmra.mxu0 %vm294_vm0, %v77_v48 }
  0x94   :  { %2736 = vmatprep.mubr.msk.f32.mxu0 %vm294_vm0, %v78_v49 }
  0x95   :  { %v192_v27 = vpop.permute.xlu1 %191  ;;  %v272_v28 = vpop.permute.xlu0 %271 }
  0x97   :  { %2737 = vmatmul.mubr.msk.f32.gmra.mxu0 %vm294_vm0, %v79_v50 }
  0x98   :  { %2739 = vmatprep.mubr.msk.f32.mxu0 %vm294_vm0, %v80_v51 }
  0x99   :  { %v187_v32 = vpop.permute.xlu1 %186  ;;  %v267_v33 = vpop.permute.xlu0 %266 }
  0x9b   :  { %2740 = vmatmul.mubr.msk.f32.gmra.mxu0 %vm294_vm0, %v81_v52 }
  0x9c   :  { %2742 = vmatprep.mubr.msk.f32.mxu0 %vm294_vm0, %v82_v53 }
  0x9d   :  { %v182_v37 = vpop.permute.xlu1 %181  ;;  %v262_v38 = vpop.permute.xlu0 %261 }
  0x9f   :  { %2743 = vmatmul.mubr.msk.f32.gmra.mxu0 %vm294_vm0, %v83_v54 }
  0xa0   :  { %2745 = vmatprep.mubr.msk.f32.mxu0 %vm294_vm0, %v84_v55 }
  0xa1   :  { %v177_v42 = vpop.permute.xlu1 %176  ;;  %v257_v43 = vpop.permute.xlu0 %256 }
  0xa3   :  { %2746 = vmatmul.mubr.msk.f32.gmra.mxu0 %vm294_vm0, %v85_v56 }
  0xa4   :  { %2748 = vmatprep.mubr.msk.f32.mxu0 %vm294_vm0, %v86_v57 }
  0xa5   :  { %v3379_v47 = vpop.permute.xlu1 %171  ;;  %v252_v48 = vpop.permute.xlu0 %251 }
  0xa7   :  { %2749 = vmatmul.mubr.msk.f32.gmra.mxu0 %vm294_vm0, %v87_v58 }
  0xa8   :  { %2751 = vmatprep.mubr.msk.f32.mxu0 %vm294_vm0, %v88_v59 }
  0xa9   :  { %v3385_v52 = vpop.permute.xlu1 %166  ;;  %v3387_v53 = vpop.permute.xlu0 %246 }
  0xab   :  { %2752 = vmatmul.mubr.msk.f32.gmra.mxu0 %vm294_vm0, %v89_v60 }
  0xac   :  { %2754 = vmatprep.mubr.msk.f32.mxu0 %vm294_vm0, %v90_v61 }
  0xad   :  { %v3389_v57 = vpop.permute.xlu1 %161  ;;  %v3391_v58 = vpop.permute.xlu0 %241 }
  0xaf   :  { %2755 = vmatmul.mubr.msk.f32.gmra.mxu0 %vm294_vm0, %v91_v62 }
  0xb0   :  { %2757 = vmatprep.mubr.msk.f32.mxu0 %vm294_vm0, %v92_v63 }
  0xb1   :  { %v3393_v63 = vpop.permute.xlu1 %156 }
  0xb3   :  { %2758 = vmatmul.mubr.msk.f32.gmra.mxu0 %vm294_vm0, %v93_v0 }
  0xb4   :  { %2760 = vmatprep.mubr.msk.f32.mxu0 %vm294_vm0, %v94_v1  ;;  %v3395_v1 = vpop.permute.xlu0 %236 }
  0xb7   :  { %2761 = vmatmul.mubr.msk.f32.gmra.mxu0 %vm294_vm0, %v95_v2 }
  0xb8   :  { %2763 = vmatprep.mubr.msk.f32.mxu0 %vm294_vm0, %v96_v3 }
  0xbb   :  { %2764 = vmatmul.mubr.msk.f32.gmra.mxu0 %vm294_vm0, %v97_v4 }
  0xbc   :  { %2766 = vmatprep.mubr.msk.f32.mxu0 %vm294_vm0, %v98_v5 }
  0xbf   :  { %2767 = vmatmul.mubr.msk.f32.gmra.mxu0 %vm294_vm0, %v99_v6 }
  0xc0   :  { %2769 = vmatprep.mubr.msk.f32.mxu0 %vm294_vm0, %v100_v7 }
  0xc3   :  { %2770 = vmatmul.mubr.msk.f32.gmra.mxu0 %vm294_vm0, %v101_v8 }
 0x147   :  { %v3349_v14 = vpop.f32.mrf.mxu0 }
 0x148   :  { %4419 = vst [vmem:[#allocation2_spill] sm:$0xff] %v3349_v14 }
 0x149   :  { %v3351_v15 = vpop.f32.mrf.mxu0 }
 0x14a   :  { %4420 = vst [vmem:[#allocation3_spill] sm:$0xff] %v3351_v15 }
 0x14b   :  { %v3353_v16 = vpop.f32.mrf.mxu0 }
 0x14d   :  { %v3355_v19 = vpop.f32.mrf.mxu0 }
 0x14e   :  { %4421 = vst [vmem:[#allocation4_spill] sm:$0xff] %v3355_v19 }
 0x14f   :  { %v3357_v20 = vpop.f32.mrf.mxu0 }
 0x151   :  { %v3359_v21 = vpop.f32.mrf.mxu0 }
 0x153   :  { %v3361_v24 = vpop.f32.mrf.mxu0 }
 0x155   :  { %v3363_v25 = vpop.f32.mrf.mxu0 }
 0x157   :  { %v3365_v26 = vpop.f32.mrf.mxu0 }
 0x159   :  { %v3367_v29 = vpop.f32.mrf.mxu0 }
 0x15b   :  { %v2741_v30 = vpop.f32.mrf.mxu0 }
 0x15d   :  { %v507_v31 = vpop.f32.mrf.mxu0 }
 0x15f   :  { %v2744_v34 = vpop.f32.mrf.mxu0 }
 0x160   :  { %v523_v2 = vadd.f32 %v2744_v34, %v202_v17  ;;  %v232_v34 = vpop.permute.xlu0 %231 }
 0x161   :  { %v517_v35 = vpop.f32.mrf.mxu0 }
 0x162   :  { %v518_v7 = vadd.f32 %v517_v35, %v197_v22 }
 0x163   :  { %v2747_v36 = vpop.f32.mrf.mxu0 }
 0x164   :  { %v533_v61 = vadd.f32 %v2747_v36, %v212_v11  ;;  %v513_v11 = vadd.f32 %v2741_v30, %v192_v27  ;;  %v629_v36 = vmax.f32 %v523_v2, 0.0  ;;  %v478_v2 = vadd.f32 %v3359_v21, %v3393_v63 }
 0x165   :  { %v527_v39 = vpop.f32.mrf.mxu0 }
 0x166   :  { %v528_v3 = vadd.f32 %v527_v39, %v207_v12  ;;  %v631_v8 = vmax.f32 %v533_v61, 0.0 }
 0x167   :  { %v3369_v40 = vpop.f32.mrf.mxu0 }
 0x168   :  { %4422 = vst [vmem:[#allocation5_spill] sm:$0xff] %v3369_v40  ;;  %v630_v19 = vmax.f32 %v528_v3, 0.0 }
 0x169   :  { %v3371_v41 = vpop.f32.mrf.mxu0 }
 0x16a   :  { %4423 = vst [vmem:[#allocation6_spill] sm:$0xff] %v3371_v41 }
 0x16b   :  { %v3373_v44 = vpop.f32.mrf.mxu0 }
 0x16c   :  { %v553_v3 = vadd.f32 %v3373_v44, %v232_v34 }
 0x16d   :  { %v3375_v45 = vpop.f32.mrf.mxu0 }
 0x16e   :  { %4424 = vst [vmem:[#allocation7_spill] sm:$0xff] %v3375_v45  ;;  %v3398_v45 = vpop.permute.xlu1 %151 }
 0x16f   :  { %v3377_v46 = vpop.f32.mrf.mxu0 }
 0x171   :  { %v3381_v49 = vpop.f32.mrf.mxu0 }
 0x173   :  { %v2759_v50 = vpop.f32.mrf.mxu0 }
 0x175   :  { %v3383_v51 = vpop.f32.mrf.mxu0  ;;  %v4426_v21 = vld [vmem:[#allocation7_spill] sm:$0xff] }
 0x177   :  { %v2762_v54 = vpop.f32.mrf.mxu0 }
 0x178   :  { %v583_v22 = vadd.f32 %v2762_v54, %v262_v38  ;;  %v493_v38 = vadd.f32 %v3361_v24, %v3379_v47  ;;  %v563_v47 = vadd.f32 %v3377_v46, %v3391_v58 }
 0x179   :  { %v577_v55 = vpop.f32.mrf.mxu0 }
 0x17a   :  { %v578_v27 = vadd.f32 %v577_v55, %v257_v43  ;;  %v483_v55 = vadd.f32 %v3357_v20, %v3389_v57 }
 0x17b   :  { %v2765_v56 = vpop.f32.mrf.mxu0 }
 0x17c   :  { %v593_v15 = vadd.f32 %v2765_v56, %v272_v28 }
 0x17d   :  { %v587_v59 = vpop.f32.mrf.mxu0 }
 0x17e   :  { %v643_v35 = vmax.f32 %v593_v15, 0.0 }
 0x17f   :  { %v2768_v60 = vpop.f32.mrf.mxu0 }
 0x180   :  { %v603_v0 = vadd.f32 %v2768_v60, %v282_v18  ;;  %v588_v18 = vadd.f32 %v587_v59, %v267_v33  ;;  %v641_v33 = vmax.f32 %v583_v22, 0.0  ;;  %v623_v59 = vmax.f32 %v493_v38, 0.0 }
 0x181   :  { %v597_v62 = vpop.f32.mrf.mxu0 }
 0x182   :  { %v598_v5 = vadd.f32 %v597_v62, %v277_v23  ;;  %v645_v41 = vmax.f32 %v603_v0, 0.0  ;;  %v508_v23 = vadd.f32 %v507_v31, %v187_v32  ;;  %v642_v30 = vmax.f32 %v588_v18, 0.0  ;;  %v147_v32 = vpop.permute.xlu1 %146 }
 0x183   :  { %v2771_v4 = vpop.f32.mrf.mxu0  ;;  %v4425_v31 = vmov 0.0   ;;  %v620_v18 = vmax.f32 %v478_v2, 0.0  ;;  %v897_v2 = vld [vmem:[%s4404_s5 + $0x48] sm:$0xff] }
 0x184   :  { %v613_v6 = vadd.f32 %v2771_v4, %v292_v10  ;;  %v644_v60 = vmax.f32 %v598_v5, 0.0  ;;  %v628_v10 = vmax.f32 %v518_v7, 0.0  ;;  %v661_v39 = vadd.f32 %v645_v41, %v629_v36  ;;  %v227_v41 = vpop.permute.xlu0 %226 }
 0x185   :  { %v607_v9 = vpop.f32.mrf.mxu0  ;;  %v626_v15 = vmax.f32 %v508_v23, 0.0  ;;  %v637_v4 = vmax.f32 %v563_v47, 0.0  ;;  %v473_v5 = vadd.f32 %v3353_v16, %v3398_v45  ;;  %v548_v63 = vadd.f32 %v4426_v21, %v227_v41  ;;  %v4428_v45 = vld [vmem:[#allocation5_spill] sm:$0xff]  ;;  %v4429_v23 = vld [vmem:[#allocation2_spill] sm:$0xff]  ;;  %v909_v21 = vld [vmem:[%s4404_s5 + $0xa8] sm:$0xff] }
 0x186   :  { %v647_v14 = vmax.f32 %v613_v6, 0.0  ;;  %v608_v40 = vadd.f32 %v607_v9, %v3347_v13  ;;  %v503_v9 = vadd.f32 %v3365_v26, %v182_v37  ;;  %v627_v13 = vmax.f32 %v513_v11, 0.0  ;;  %v4427_v11 = vld [vmem:[#allocation4_spill] sm:$0xff] }
 0x187   :  { %v660_v61 = vadd.f32 %v644_v60, %v628_v10  ;;  %v3410_v37 = vmul.f32 0.5, %v661_v39  ;;  %v658_v43 = vadd.f32 %v642_v30, %v626_v15  ;;  %v621_v6 = vmax.f32 %v483_v55, 0.0  ;;  %v4430_v39 = vld [vmem:[#allocation6_spill] sm:$0xff]  ;;  %v793_v30 = vld [vmem:[%s4403_s4 + $0x8] sm:$0xff] }
 0x188   :  { %v663_v17 = vadd.f32 %v647_v14, %v631_v8  ;;  %v646_v12 = vmax.f32 %v608_v40, 0.0  ;;  %v498_v14 = vadd.f32 %v3367_v29, %v177_v42  ;;  %v659_v26 = vadd.f32 %v643_v35, %v627_v13  ;;  %v222_v57 = vpop.permute.xlu0 %221  ;;  %1144 = vmatprep.mubr.f32.mxu1 %v793_v30  ;;  %v917_v55 = vld [vmem:[%s4404_s5 + $0xe8] sm:$0xff] }
 0x189   :  { %v625_v40 = vmax.f32 %v503_v9, 0.0  ;;  %v568_v29 = vadd.f32 %v3383_v51, %v3387_v53  ;;  %v640_v42 = vmax.f32 %v578_v27, 0.0  ;;  %v3440_v0 = vmul.f32 0.5, %v658_v43 }
 0x18a   :  { %v3400_v28 = vmul.f32 0.5, %v663_v17  ;;  %v662_v56 = vadd.f32 %v646_v12, %v630_v19  ;;  %v573_v19 = vadd.f32 %v2759_v50, %v252_v48  ;;  %v3420_v48 = vmul.f32 0.5, %v660_v61  ;;  %v4431_v61 = vld [vmem:[#allocation3_spill] sm:$0xff] }
 0x18b   :  { %v488_v50 = vadd.f32 %v3363_v25, %v3385_v52  ;;  %v624_v24 = vmax.f32 %v498_v14, 0.0  ;;  %v657_v51 = vadd.f32 %v641_v33, %v625_v40  ;;  %v3430_v53 = vmul.f32 0.5, %v659_v26  ;;  %v142_v25 = vpop.permute.xlu1 %141 }
 0x18c   :  { %v3403_v62 = vmul.f32 0.5, %v662_v56  ;;  %726 = vrot.lane.b32.xlu1 %v3400_v28, %s2998_s22  ;;  %1081 = vmatpush1.msra.mxu1 %v3400_v28  ;;  %v639_v54 = vmax.f32 %v573_v19, 0.0  ;;  %v558_v52 = vadd.f32 %v3381_v49, %v3395_v1  ;;  %v638_v46 = vmax.f32 %v568_v29, 0.0  ;;  %v217_v35 = vpop.permute.xlu0 %216 }
 0x18d   :  { %1082 = vmatprep.subr.mxu1 %v4425_v31  ;;  %v656_v58 = vadd.f32 %v640_v42, %v624_v24  ;;  %v622_v20 = vmax.f32 %v488_v50, 0.0  ;;  %v3449_v1 = vmul.f32 0.5, %v657_v51  ;;  %v468_v36 = vadd.f32 %v4427_v11, %v147_v32  ;;  %v918_v51 = vld [vmem:[%s4404_s5 + $0xf0] sm:$0xff] }
 0x18e   :  { %724 = vrot.lane.b32.xlu0 %v3403_v62, %s2998_s22  ;;  %1083 = vmatpush1.msra.mxu1 %v3403_v62  ;;  %v655_v49 = vadd.f32 %v639_v54, %v623_v59  ;;  %v636_v7 = vmax.f32 %v558_v52, 0.0  ;;  %v543_v60 = vadd.f32 %v4428_v45, %v222_v57  ;;  %v635_v17 = vmax.f32 %v553_v3, 0.0  ;;  %v900_v59 = vld [vmem:[%s4404_s5 + $0x60] sm:$0xff]  ;;  %v899_v52 = vld [vmem:[%s4404_s5 + $0x58] sm:$0xff]  ;;  %v890_v11 = vld [vmem:[%s4404_s5 + $0x10] sm:$0xff] }
 0x18f   :  { %1084 = vmatprep.subr.mxu1 %v4425_v31  ;;  %v654_v8 = vadd.f32 %v638_v46, %v622_v20  ;;  %v3458_v44 = vmul.f32 0.5, %v656_v58  ;;  %v137_v16 = vpop.permute.xlu1 %136  ;;  %v653_v12 = vadd.f32 %v637_v4, %v621_v6  ;;  %v463_v10 = vadd.f32 %v4429_v23, %v142_v25  ;;  %v916_v25 = vld [vmem:[%s4404_s5 + $0xe0] sm:$0xff]  ;;  %v915_v46 = vld [vmem:[%s4404_s5 + $0xd8] sm:$0xff]  ;;  %v898_v58 = vld [vmem:[%s4404_s5 + $0x50] sm:$0xff] }
 0x190   :  { %722 = vrot.lane.b32.xlu1 %v3410_v37, %s2998_s22  ;;  %1085 = vmatpush1.msra.mxu1 %v3410_v37  ;;  %v671_v34 = vmul.f32 0.5, %v655_v49  ;;  %v619_v22 = vmax.f32 %v473_v5, 0.0  ;;  %v538_v56 = vadd.f32 %v4430_v39, %v217_v35  ;;  %v634_v9 = vmax.f32 %v548_v63, 0.0  ;;  %v913_v20 = vld [vmem:[%s4404_s5 + $0xc8] sm:$0xff]  ;;  %v896_v57 = vld [vmem:[%s4404_s5 + $0x40] sm:$0xff]  ;;  %v895_v4 = vld [vmem:[%s4404_s5 + $0x38] sm:$0xff] }
 0x191   :  { %1086 = vmatprep.subr.mxu1 %v4425_v31  ;;  %v652_v13 = vadd.f32 %v636_v7, %v620_v18  ;;  %v670_v27 = vmul.f32 0.5, %v654_v8  ;;  %v458_v14 = vadd.f32 %v4431_v61, %v137_v16  ;;  %v618_v15 = vmax.f32 %v468_v36, 0.0  ;;  %v912_v3 = vld [vmem:[%s4404_s5 + $0xc0] sm:$0xff]  ;;  %v911_v49 = vld [vmem:[%s4404_s5 + $0xb8] sm:$0xff]  ;;  %v910_v5 = vld [vmem:[%s4404_s5 + $0xb0] sm:$0xff] }
 0x192   :  { %720 = vrot.lane.b32.xlu0 %v3420_v48, %s2998_s22  ;;  %1087 = vmatpush1.msra.mxu1 %v3420_v48  ;;  %v633_v32 = vmax.f32 %v543_v60, 0.0  ;;  %v651_v19 = vadd.f32 %v635_v17, %v619_v22  ;;  %v669_v33 = vmul.f32 0.5, %v653_v12  ;;  %v617_v26 = vmax.f32 %v463_v10, 0.0  ;;  %v893_v6 = vld [vmem:[%s4404_s5 + $0x28] sm:$0xff]  ;;  %v892_v63 = vld [vmem:[%s4404_s5 + $0x20] sm:$0xff]  ;;  %v891_v8 = vld [vmem:[%s4404_s5 + $0x18] sm:$0xff] }
 0x193   :  { %1088 = vmatprep.subr.mxu1 %v4425_v31  ;;  %v632_v38 = vmax.f32 %v538_v56, 0.0  ;;  %v650_v40 = vadd.f32 %v634_v9, %v618_v15  ;;  %v668_v41 = vmul.f32 0.5, %v652_v13  ;;  %v616_v29 = vmax.f32 %v458_v14, 0.0  ;;  %v908_v7 = vld [vmem:[%s4404_s5 + $0xa0] sm:$0xff]  ;;  %v906_v18 = vld [vmem:[%s4404_s5 + $0x90] sm:$0xff]  ;;  %v889_v45 = vld [vmem:[%s4404_s5 + $0x8] sm:$0xff] }
 0x194   :  { %718 = vrot.lane.b32.xlu1 %v3430_v53, %s2998_s22  ;;  %1089 = vmatpush1.msra.mxu1 %v3430_v53  ;;  %v649_v42 = vadd.f32 %v633_v32, %v617_v26  ;;  %v667_v43 = vmul.f32 0.5, %v651_v19  ;;  %v905_v17 = vld [vmem:[%s4404_s5 + $0x88] sm:$0xff]  ;;  %v904_v10 = vld [vmem:[%s4404_s5 + $0x80] sm:$0xff]  ;;  %v795_v26 = vld [vmem:[%s4403_s4 + $0x18] sm:$0xff] }
 0x195   :  { %1090 = vmatprep.subr.mxu1 %v4425_v31  ;;  %v648_v50 = vadd.f32 %v632_v38, %v616_v29  ;;  %v666_v24 = vmul.f32 0.5, %v650_v40  ;;  %v792_v15 = vld [vmem:[%s4403_s4] sm:$0xff]  ;;  %v799_v40 = vld [vmem:[%s4403_s4 + $0x38] sm:$0xff]  ;;  %v798_v29 = vld [vmem:[%s4403_s4 + $0x30] sm:$0xff] }
 0x196   :  { %716 = vrot.lane.b32.xlu0 %v3440_v0, %s2998_s22  ;;  %1091 = vmatpush1.msra.mxu1 %v3440_v0  ;;  %v665_v47 = vmul.f32 0.5, %v649_v42  ;;  %v796_v19 = vld [vmem:[%s4403_s4 + $0x20] sm:$0xff] }
 0x197   :  { %1092 = vmatprep.subr.mxu1 %v4425_v31  ;;  %v664_v54 = vmul.f32 0.5, %v648_v50 }
 0x198   :  { %714 = vrot.lane.b32.xlu1 %v3449_v1, %s2998_s22  ;;  %1093 = vmatpush1.msra.mxu1 %v3449_v1 }
 0x199   :  { %1094 = vmatprep.subr.mxu1 %v4425_v31 }
 0x19a   :  { %712 = vrot.lane.b32.xlu0 %v3458_v44, %s2998_s22  ;;  %1095 = vmatpush1.msra.mxu1 %v3458_v44 }
 0x19b   :  { %1096 = vmatprep.subr.mxu1 %v4425_v31 }
 0x19c   :  { %710 = vrot.lane.b32.xlu1 %v671_v34, %s2998_s22  ;;  %1097 = vmatpush1.msra.mxu1 %v671_v34 }
 0x19d   :  { %1098 = vmatprep.subr.mxu1 %v4425_v31 }
 0x19e   :  { %708 = vrot.lane.b32.xlu0 %v670_v27, %s2998_s22  ;;  %1099 = vmatpush1.msra.mxu1 %v670_v27 }
 0x19f   :  { %1100 = vmatprep.subr.mxu1 %v4425_v31 }
 0x1a0   :  { %706 = vrot.lane.b32.xlu1 %v669_v33, %s2998_s22  ;;  %1101 = vmatpush1.msra.mxu1 %v669_v33 }
 0x1a1   :  { %1102 = vmatprep.subr.mxu1 %v4425_v31 }
 0x1a2   :  { %704 = vrot.lane.b32.xlu0 %v668_v41, %s2998_s22  ;;  %1103 = vmatpush1.msra.mxu1 %v668_v41 }
 0x1a3   :  { %1104 = vmatprep.subr.mxu1 %v4425_v31 }
 0x1a4   :  { %702 = vrot.lane.b32.xlu1 %v667_v43, %s2998_s22  ;;  %1105 = vmatpush1.msra.mxu1 %v667_v43 }
 0x1a5   :  { %1106 = vmatprep.subr.mxu1 %v4425_v31 }
 0x1a6   :  { %700 = vrot.lane.b32.xlu0 %v666_v24, %s2998_s22  ;;  %1107 = vmatpush1.msra.mxu1 %v666_v24 }
 0x1a7   :  { %1108 = vmatprep.subr.mxu1 %v4425_v31 }
 0x1a8   :  { %698 = vrot.lane.b32.xlu1 %v665_v47, %s2998_s22  ;;  %1109 = vmatpush1.msra.mxu1 %v665_v47 }
 0x1a9   :  { %1110 = vmatprep.subr.mxu1 %v4425_v31 }
 0x1aa   :  { %696 = vrot.lane.b32.xlu0 %v664_v54, %s2998_s22  ;;  %1111 = vmatpush1.msra.mxu1 %v664_v54 }
 0x1ab   :  { %1112 = vmatprep.subr.mxu1 %v4425_v31 }
 0x1ac   :  { %774 = vrot.lane.b32.xlu1 %v3400_v28, %s3001_s16  ;;  %v794_v28 = vld [vmem:[%s4403_s4 + $0x10] sm:$0xff] }
 0x1ad   :  { %2804 = vmatprep.mubr.f32.mxu0 %v794_v28 }
 0x1ae   :  { %772 = vrot.lane.b32.xlu0 %v3403_v62, %s3001_s16  ;;  %v903_v62 = vld [vmem:[%s4404_s5 + $0x78] sm:$0xff] }
 0x1b0   :  { %770 = vrot.lane.b32.xlu1 %v3410_v37, %s3001_s16  ;;  %v919_v37 = vld [vmem:[%s4404_s5 + $0xf8] sm:$0xff] }
 0x1b2   :  { %768 = vrot.lane.b32.xlu0 %v3420_v48, %s3001_s16  ;;  %v902_v48 = vld [vmem:[%s4404_s5 + $0x70] sm:$0xff] }
 0x1b4   :  { %766 = vrot.lane.b32.xlu1 %v3430_v53, %s3001_s16  ;;  %v901_v53 = vld [vmem:[%s4404_s5 + $0x68] sm:$0xff] }
 0x1b6   :  { %764 = vrot.lane.b32.xlu0 %v3440_v0, %s3001_s16  ;;  %v914_v0 = vld [vmem:[%s4404_s5 + $0xd0] sm:$0xff] }
 0x1b8   :  { %762 = vrot.lane.b32.xlu1 %v3449_v1, %s3001_s16  ;;  %v894_v1 = vld [vmem:[%s4404_s5 + $0x30] sm:$0xff] }
 0x1ba   :  { %760 = vrot.lane.b32.xlu0 %v3458_v44, %s3001_s16  ;;  %v907_v44 = vld [vmem:[%s4404_s5 + $0x98] sm:$0xff] }
 0x1bc   :  { %758 = vrot.lane.b32.xlu1 %v671_v34, %s3001_s16  ;;  %v888_v34 = vld [vmem:[%s4404_s5] sm:$0xff] }
 0x1be   :  { %756 = vrot.lane.b32.xlu0 %v670_v27, %s3001_s16 }
 0x1c0   :  { %754 = vrot.lane.b32.xlu1 %v669_v33, %s3001_s16 }
 0x1c2   :  { %752 = vrot.lane.b32.xlu0 %v668_v41, %s3001_s16 }
 0x1c4   :  { %750 = vrot.lane.b32.xlu1 %v667_v43, %s3001_s16  ;;  %v802_v43 = vld [vmem:[%s4403_s4 + $0x50] sm:$0xff] }
 0x1c6   :  { %748 = vrot.lane.b32.xlu0 %v666_v24, %s3001_s16  ;;  %v801_v24 = vld [vmem:[%s4403_s4 + $0x48] sm:$0xff] }
 0x1c8   :  { %746 = vrot.lane.b32.xlu1 %v665_v47, %s3001_s16 }
 0x1ca   :  { %744 = vrot.lane.b32.xlu0 %v664_v54, %s3001_s16  ;;  %v805_v54 = vld [vmem:[%s4403_s4 + $0x68] sm:$0xff] }
 0x1cc   :  { %997 = vperm.xlu1 %2997, %v903_v62   ;;  %v804_v62 = vld [vmem:[%s4403_s4 + $0x60] sm:$0xff] }
 0x1ce   :  { %1077 = vperm.xlu0 %2996, %v919_v37  }
 0x1d0   :  { %992 = vperm.xlu1 %2997, %v902_v48   ;;  %v808_v48 = vld [vmem:[%s4403_s4 + $0x80] sm:$0xff] }
 0x1d2   :  { %1072 = vperm.xlu0 %2996, %v918_v51  }
 0x1d4   :  { %987 = vperm.xlu1 %2997, %v901_v53   ;;  %v807_v53 = vld [vmem:[%s4403_s4 + $0x78] sm:$0xff] }
 0x1d6   :  { %1067 = vperm.xlu0 %2996, %v917_v55  }
 0x1d8   :  { %982 = vperm.xlu1 %2997, %v900_v59   ;;  %v811_v59 = vld [vmem:[%s4403_s4 + $0x98] sm:$0xff] }
 0x1da   :  { %1062 = vperm.xlu0 %2996, %v916_v25  }
 0x1dc   :  { %977 = vperm.xlu1 %2997, %v899_v52   ;;  %v810_v52 = vld [vmem:[%s4403_s4 + $0x90] sm:$0xff] }
 0x1de   :  { %1057 = vperm.xlu0 %2996, %v915_v46  }
 0x1e0   :  { %972 = vperm.xlu1 %2997, %v898_v58   ;;  %v814_v58 = vld [vmem:[%s4403_s4 + $0xb0] sm:$0xff] }
 0x1e2   :  { %1052 = vperm.xlu0 %2996, %v914_v0  }
 0x1e4   :  { %967 = vperm.xlu1 %2997, %v897_v2   ;;  %v813_v2 = vld [vmem:[%s4403_s4 + $0xa8] sm:$0xff] }
 0x1e6   :  { %1047 = vperm.xlu0 %2996, %v913_v20  }
 0x1e8   :  { %962 = vperm.xlu1 %2997, %v896_v57   ;;  %v817_v57 = vld [vmem:[%s4403_s4 + $0xc8] sm:$0xff] }
 0x1ea   :  { %1042 = vperm.xlu0 %2996, %v912_v3  }
 0x1ec   :  { %957 = vperm.xlu1 %2997, %v895_v4   ;;  %v816_v4 = vld [vmem:[%s4403_s4 + $0xc0] sm:$0xff] }
 0x1ee   :  { %1037 = vperm.xlu0 %2996, %v911_v49  }
 0x1f0   :  { %952 = vperm.xlu1 %2997, %v894_v1   ;;  %v797_v1 = vld [vmem:[%s4403_s4 + $0x28] sm:$0xff] }
 0x1f2   :  { %1032 = vperm.xlu0 %2996, %v910_v5   ;;  %v820_v5 = vld [vmem:[%s4403_s4 + $0xe0] sm:$0xff] }
 0x1f4   :  { %947 = vperm.xlu1 %2997, %v893_v6   ;;  %v800_v6 = vld [vmem:[%s4403_s4 + $0x40] sm:$0xff] }
 0x1f6   :  { %1027 = vperm.xlu0 %2996, %v909_v21   ;;  %v819_v21 = vld [vmem:[%s4403_s4 + $0xd8] sm:$0xff] }
 0x1f8   :  { %942 = vperm.xlu1 %2997, %v892_v63   ;;  %v803_v63 = vld [vmem:[%s4403_s4 + $0x58] sm:$0xff] }
 0x1fa   :  { %1022 = vperm.xlu0 %2996, %v908_v7   ;;  %v823_v7 = vld [vmem:[%s4403_s4 + $0xf8] sm:$0xff] }
 0x1fc   :  { %937 = vperm.xlu1 %2997, %v891_v8   ;;  %v806_v8 = vld [vmem:[%s4403_s4 + $0x70] sm:$0xff] }
 0x1fe   :  { %1017 = vperm.xlu0 %2996, %v907_v44   ;;  %v727_v36 = vpop.permute.xlu1 %726  ;;  %v822_v44 = vld [vmem:[%s4403_s4 + $0xf0] sm:$0xff] }
 0x1ff   :  { %1113 = vmatpush2.msra.mxu1 %v727_v36  ;;  %v826_v36 = vld [vmem:[%s4403_s4 + $0x110] sm:$0xff] }
 0x200   :  { %v725_v16 = vpop.permute.xlu0 %724  ;;  %932 = vperm.xlu1 %2997, %v890_v11   ;;  %1114 = vmatprep.subr.mxu1 %v4425_v31  ;;  %v809_v11 = vld [vmem:[%s4403_s4 + $0x88] sm:$0xff] }
 0x201   :  { %1115 = vmatpush2.msra.mxu1 %v725_v16  ;;  %v825_v16 = vld [vmem:[%s4403_s4 + $0x108] sm:$0xff] }
 0x202   :  { %1012 = vperm.xlu0 %2996, %v906_v18   ;;  %1116 = vmatprep.subr.mxu1 %v4425_v31  ;;  %v723_v60 = vpop.permute.xlu1 %722  ;;  %v812_v18 = vld [vmem:[%s4403_s4 + $0xa0] sm:$0xff] }
 0x203   :  { %1117 = vmatpush2.msra.mxu1 %v723_v60  ;;  %v829_v60 = vld [vmem:[%s4403_s4 + $0x128] sm:$0xff] }
 0x204   :  { %v721_v12 = vpop.permute.xlu0 %720  ;;  %927 = vperm.xlu1 %2997, %v889_v45   ;;  %1118 = vmatprep.subr.mxu1 %v4425_v31  ;;  %v815_v45 = vld [vmem:[%s4403_s4 + $0xb8] sm:$0xff] }
 0x205   :  { %1119 = vmatpush2.msra.mxu1 %v721_v12  ;;  %v828_v12 = vld [vmem:[%s4403_s4 + $0x120] sm:$0xff] }
 0x206   :  { %1007 = vperm.xlu0 %2996, %v905_v17   ;;  %1120 = vmatprep.subr.mxu1 %v4425_v31  ;;  %v719_v23 = vpop.permute.xlu1 %718  ;;  %v818_v17 = vld [vmem:[%s4403_s4 + $0xd0] sm:$0xff] }
 0x207   :  { %1121 = vmatpush2.msra.mxu1 %v719_v23  ;;  %v832_v23 = vld [vmem:[%s4403_s4 + $0x140] sm:$0xff] }
 0x208   :  { %v717_v22 = vpop.permute.xlu0 %716  ;;  %922 = vperm.xlu1 %2997, %v888_v34   ;;  %1122 = vmatprep.subr.mxu1 %v4425_v31  ;;  %v821_v34 = vld [vmem:[%s4403_s4 + $0xe8] sm:$0xff] }
 0x209   :  { %1123 = vmatpush2.msra.mxu1 %v717_v22  ;;  %v831_v22 = vld [vmem:[%s4403_s4 + $0x138] sm:$0xff] }
 0x20a   :  { %1002 = vperm.xlu0 %2996, %v904_v10   ;;  %1124 = vmatprep.subr.mxu1 %v4425_v31  ;;  %v715_v35 = vpop.permute.xlu1 %714  ;;  %v824_v10 = vld [vmem:[%s4403_s4 + $0x100] sm:$0xff] }
 0x20b   :  { %1125 = vmatpush2.msra.mxu1 %v715_v35  ;;  %v827_v35 = vld [vmem:[%s4403_s4 + $0x118] sm:$0xff] }
 0x20c   :  { %v713_v39 = vpop.permute.xlu0 %712  ;;  %1126 = vmatprep.subr.mxu1 %v4425_v31 }
 0x20d   :  { %1127 = vmatpush2.msra.mxu1 %v713_v39  ;;  %v835_v39 = vld [vmem:[%s4403_s4 + $0x158] sm:$0xff] }
 0x20e   :  { %1128 = vmatprep.subr.mxu1 %v4425_v31  ;;  %v711_v56 = vpop.permute.xlu1 %710 }
 0x20f   :  { %1129 = vmatpush2.msra.mxu1 %v711_v56  ;;  %v830_v56 = vld [vmem:[%s4403_s4 + $0x130] sm:$0xff] }
 0x210   :  { %v709_v9 = vpop.permute.xlu0 %708  ;;  %1130 = vmatprep.subr.mxu1 %v4425_v31 }
 0x211   :  { %1131 = vmatpush2.msra.mxu1 %v709_v9  ;;  %v834_v9 = vld [vmem:[%s4403_s4 + $0x150] sm:$0xff] }
 0x212   :  { %1132 = vmatprep.subr.mxu1 %v4425_v31  ;;  %v707_v13 = vpop.permute.xlu1 %706 }
 0x213   :  { %1133 = vmatpush2.msra.mxu1 %v707_v13  ;;  %v833_v13 = vld [vmem:[%s4403_s4 + $0x148] sm:$0xff] }
 0x214   :  { %v705_v27 = vpop.permute.xlu0 %704  ;;  %1134 = vmatprep.subr.mxu1 %v4425_v31 }
 0x215   :  { %1135 = vmatpush2.msra.mxu1 %v705_v27  ;;  %v838_v27 = vld [vmem:[%s4403_s4 + $0x170] sm:$0xff] }
 0x216   :  { %1136 = vmatprep.subr.mxu1 %v4425_v31  ;;  %v703_v30 = vpop.permute.xlu1 %702 }
 0x217   :  { %1137 = vmatpush2.msra.mxu1 %v703_v30  ;;  %v836_v30 = vld [vmem:[%s4403_s4 + $0x160] sm:$0xff] }
 0x218   :  { %v701_v61 = vpop.permute.xlu0 %700  ;;  %1138 = vmatprep.subr.mxu1 %v4425_v31 }
 0x219   :  { %1139 = vmatpush2.msra.mxu1 %v701_v61  ;;  %v837_v61 = vld [vmem:[%s4403_s4 + $0x168] sm:$0xff] }
 0x21a   :  { %1140 = vmatprep.subr.mxu1 %v4425_v31  ;;  %v699_v14 = vpop.permute.xlu1 %698 }
 0x21b   :  { %1141 = vmatpush2.msra.mxu1 %v699_v14  ;;  %v839_v14 = vld [vmem:[%s4403_s4 + $0x178] sm:$0xff] }
 0x21c   :  { %v697_v32 = vpop.permute.xlu0 %696  ;;  %1142 = vmatprep.subr.mxu1 %v4425_v31 }
 0x21d   :  { %1143 = vmatpush2.msra.mxu1 %v697_v32  ;;  %v842_v32 = vld [vmem:[%s4403_s4 + $0x190] sm:$0xff] }
 0x21e   :  { %1145 = vmatmul.mubr.f32.vlgmr.msra.gmra.mxu1 %v792_v15  ;;  %v775_v33 = vpop.permute.xlu1 %774  ;;  %v841_v15 = vld [vmem:[%s4403_s4 + $0x188] sm:$0xff] }
 0x21f   :  { %2772 = vmatprep.subr.mxu0 %v775_v33  ;;  %1149 = vmatprep.mubr.f32.mxu1 %v796_v19  ;;  %v840_v19 = vld [vmem:[%s4403_s4 + $0x180] sm:$0xff] }
 0x220   :  { %v773_v38 = vpop.permute.xlu0 %772  ;;  %2773 = vmatpush3.msra.mxu0 %v775_v33  ;;  %v845_v33 = vld [vmem:[%s4403_s4 + $0x1a8] sm:$0xff] }
 0x221   :  { %2774 = vmatprep.subr.mxu0 %v773_v38 }
 0x222   :  { %1150 = vmatmul.mubr.f32.gmra.mxu1 %v795_v26  ;;  %2775 = vmatpush3.msra.mxu0 %v773_v38  ;;  %v771_v41 = vpop.permute.xlu1 %770  ;;  %v844_v26 = vld [vmem:[%s4403_s4 + $0x1a0] sm:$0xff] }
 0x223   :  { %2776 = vmatprep.subr.mxu0 %v771_v41  ;;  %1154 = vmatprep.mubr.f32.mxu1 %v799_v40  ;;  %v848_v38 = vld [vmem:[%s4403_s4 + $0x1c0] sm:$0xff]  ;;  %v843_v40 = vld [vmem:[%s4403_s4 + $0x198] sm:$0xff] }
 0x224   :  { %v769_v42 = vpop.permute.xlu0 %768  ;;  %2777 = vmatpush3.msra.mxu0 %v771_v41  ;;  %v847_v41 = vld [vmem:[%s4403_s4 + $0x1b8] sm:$0xff] }
 0x225   :  { %2778 = vmatprep.subr.mxu0 %v769_v42 }
 0x226   :  { %1155 = vmatmul.mubr.f32.gmra.mxu1 %v798_v29  ;;  %2779 = vmatpush3.msra.mxu0 %v769_v42  ;;  %v767_v50 = vpop.permute.xlu1 %766  ;;  %v851_v29 = vld [vmem:[%s4403_s4 + $0x1d8] sm:$0xff]  ;;  %v854_v42 = vld [vmem:[%s4403_s4 + $0x1f0] sm:$0xff] }
 0x227   :  { %2780 = vmatprep.subr.mxu0 %v767_v50  ;;  %1159 = vmatprep.mubr.f32.mxu1 %v802_v43  ;;  %v846_v43 = vld [vmem:[%s4403_s4 + $0x1b0] sm:$0xff] }
 0x228   :  { %v765_v47 = vpop.permute.xlu0 %764  ;;  %2781 = vmatpush3.msra.mxu0 %v767_v50  ;;  %v850_v50 = vld [vmem:[%s4403_s4 + $0x1d0] sm:$0xff] }
 0x229   :  { %2782 = vmatprep.subr.mxu0 %v765_v47 }
 0x22a   :  { %1160 = vmatmul.mubr.f32.gmra.mxu1 %v801_v24  ;;  %2783 = vmatpush3.msra.mxu0 %v765_v47  ;;  %v763_v28 = vpop.permute.xlu1 %762  ;;  %v857_v24 = vld [vmem:[%s4403_s4 + $0x208] sm:$0xff]  ;;  %v860_v47 = vld [vmem:[%s4403_s4 + $0x220] sm:$0xff] }
 0x22b   :  { %2784 = vmatprep.subr.mxu0 %v763_v28  ;;  %1164 = vmatprep.mubr.f32.mxu1 %v805_v54  ;;  %v849_v54 = vld [vmem:[%s4403_s4 + $0x1c8] sm:$0xff] }
 0x22c   :  { %v761_v37 = vpop.permute.xlu0 %760  ;;  %2785 = vmatpush3.msra.mxu0 %v763_v28  ;;  %v853_v28 = vld [vmem:[%s4403_s4 + $0x1e8] sm:$0xff] }
 0x22d   :  { %2786 = vmatprep.subr.mxu0 %v761_v37 }
 0x22e   :  { %1165 = vmatmul.mubr.f32.gmra.mxu1 %v804_v62  ;;  %2787 = vmatpush3.msra.mxu0 %v761_v37  ;;  %v759_v51 = vpop.permute.xlu1 %758  ;;  %v863_v62 = vld [vmem:[%s4403_s4 + $0x238] sm:$0xff]  ;;  %v866_v37 = vld [vmem:[%s4403_s4 + $0x250] sm:$0xff] }
 0x22f   :  { %2788 = vmatprep.subr.mxu0 %v759_v51  ;;  %1169 = vmatprep.mubr.f32.mxu1 %v808_v48  ;;  %v852_v48 = vld [vmem:[%s4403_s4 + $0x1e0] sm:$0xff] }
 0x230   :  { %v757_v55 = vpop.permute.xlu0 %756  ;;  %2789 = vmatpush3.msra.mxu0 %v759_v51  ;;  %v856_v51 = vld [vmem:[%s4403_s4 + $0x200] sm:$0xff] }
 0x231   :  { %2790 = vmatprep.subr.mxu0 %v757_v55 }
 0x232   :  { %1170 = vmatmul.mubr.f32.gmra.mxu1 %v807_v53  ;;  %2791 = vmatpush3.msra.mxu0 %v757_v55  ;;  %v755_v25 = vpop.permute.xlu1 %754  ;;  %v869_v53 = vld [vmem:[%s4403_s4 + $0x268] sm:$0xff]  ;;  %v872_v55 = vld [vmem:[%s4403_s4 + $0x280] sm:$0xff] }
 0x233   :  { %2792 = vmatprep.subr.mxu0 %v755_v25  ;;  %1174 = vmatprep.mubr.f32.mxu1 %v811_v59  ;;  %v855_v59 = vld [vmem:[%s4403_s4 + $0x1f8] sm:$0xff] }
 0x234   :  { %v753_v46 = vpop.permute.xlu0 %752  ;;  %2793 = vmatpush3.msra.mxu0 %v755_v25  ;;  %v859_v25 = vld [vmem:[%s4403_s4 + $0x218] sm:$0xff] }
 0x235   :  { %2794 = vmatprep.subr.mxu0 %v753_v46 }
 0x236   :  { %1175 = vmatmul.mubr.f32.gmra.mxu1 %v810_v52  ;;  %2795 = vmatpush3.msra.mxu0 %v753_v46  ;;  %v751_v0 = vpop.permute.xlu1 %750  ;;  %v875_v52 = vld [vmem:[%s4403_s4 + $0x298] sm:$0xff]  ;;  %v878_v46 = vld [vmem:[%s4403_s4 + $0x2b0] sm:$0xff] }
 0x237   :  { %2796 = vmatprep.subr.mxu0 %v751_v0  ;;  %1179 = vmatprep.mubr.f32.mxu1 %v814_v58  ;;  %v858_v58 = vld [vmem:[%s4403_s4 + $0x210] sm:$0xff] }
 0x238   :  { %v749_v20 = vpop.permute.xlu0 %748  ;;  %2797 = vmatpush3.msra.mxu0 %v751_v0  ;;  %v862_v0 = vld [vmem:[%s4403_s4 + $0x230] sm:$0xff] }
 0x239   :  { %2798 = vmatprep.subr.mxu0 %v749_v20 }
 0x23a   :  { %1180 = vmatmul.mubr.f32.gmra.mxu1 %v813_v2  ;;  %2799 = vmatpush3.msra.mxu0 %v749_v20  ;;  %v747_v3 = vpop.permute.xlu1 %746  ;;  %v881_v2 = vld [vmem:[%s4403_s4 + $0x2c8] sm:$0xff]  ;;  %v884_v20 = vld [vmem:[%s4403_s4 + $0x2e0] sm:$0xff] }
 0x23b   :  { %2800 = vmatprep.subr.mxu0 %v747_v3  ;;  %1184 = vmatprep.mubr.f32.mxu1 %v817_v57  ;;  %v861_v57 = vld [vmem:[%s4403_s4 + $0x228] sm:$0xff] }
 0x23c   :  { %v745_v49 = vpop.permute.xlu0 %744  ;;  %2801 = vmatpush3.msra.mxu0 %v747_v3  ;;  %v865_v3 = vld [vmem:[%s4403_s4 + $0x248] sm:$0xff] }
 0x23d   :  { %2802 = vmatprep.subr.mxu0 %v745_v49 }
 0x23e   :  { %1185 = vmatmul.mubr.f32.gmra.mxu1 %v816_v4  ;;  %2803 = vmatpush3.msra.mxu0 %v745_v49  ;;  %v887_v4 = vld [vmem:[%s4403_s4 + $0x2f8] sm:$0xff]  ;;  %v864_v49 = vld [vmem:[%s4403_s4 + $0x240] sm:$0xff] }
 0x23f   :  { %2805 = vmatmul.mubr.f32.vlgmr.msra.gmra.mxu0 %v797_v1  ;;  %1189 = vmatprep.mubr.f32.mxu1 %v820_v5  ;;  %v868_v1 = vld [vmem:[%s4403_s4 + $0x260] sm:$0xff]  ;;  %v867_v5 = vld [vmem:[%s4403_s4 + $0x258] sm:$0xff] }
 0x240   :  { %2807 = vmatprep.mubr.f32.mxu0 %v800_v6  ;;  %v871_v6 = vld [vmem:[%s4403_s4 + $0x278] sm:$0xff] }
 0x242   :  { %1190 = vmatmul.mubr.f32.gmra.mxu1 %v819_v21  ;;  %v870_v21 = vld [vmem:[%s4403_s4 + $0x270] sm:$0xff] }
 0x243   :  { %2808 = vmatmul.mubr.f32.gmra.mxu0 %v803_v63  ;;  %1194 = vmatprep.mubr.f32.mxu1 %v823_v7  ;;  %v874_v63 = vld [vmem:[%s4403_s4 + $0x290] sm:$0xff]  ;;  %v873_v7 = vld [vmem:[%s4403_s4 + $0x288] sm:$0xff] }
 0x244   :  { %2810 = vmatprep.mubr.f32.mxu0 %v806_v8  ;;  %v877_v8 = vld [vmem:[%s4403_s4 + $0x2a8] sm:$0xff] }
 0x246   :  { %1195 = vmatmul.mubr.f32.gmra.mxu1 %v822_v44  ;;  %v876_v44 = vld [vmem:[%s4403_s4 + $0x2a0] sm:$0xff] }
 0x247   :  { %2811 = vmatmul.mubr.f32.gmra.mxu0 %v809_v11  ;;  %1199 = vmatprep.mubr.f32.mxu1 %v826_v36  ;;  %v880_v11 = vld [vmem:[%s4403_s4 + $0x2c0] sm:$0xff]  ;;  %v879_v36 = vld [vmem:[%s4403_s4 + $0x2b8] sm:$0xff] }
 0x248   :  { %2813 = vmatprep.mubr.f32.mxu0 %v812_v18  ;;  %v883_v18 = vld [vmem:[%s4403_s4 + $0x2d8] sm:$0xff] }
 0x24a   :  { %1200 = vmatmul.mubr.f32.gmra.mxu1 %v825_v16  ;;  %v882_v16 = vld [vmem:[%s4403_s4 + $0x2d0] sm:$0xff] }
 0x24b   :  { %2814 = vmatmul.mubr.f32.gmra.mxu0 %v815_v45  ;;  %1204 = vmatprep.mubr.f32.mxu1 %v829_v60  ;;  %v886_v45 = vld [vmem:[%s4403_s4 + $0x2f0] sm:$0xff]  ;;  %v885_v60 = vld [vmem:[%s4403_s4 + $0x2e8] sm:$0xff] }
 0x24c   :  { %2816 = vmatprep.mubr.f32.mxu0 %v818_v17  ;;  %v3912_v17 = vpop.permute.xlu1 %997 }
 0x24e   :  { %1205 = vmatmul.mubr.f32.gmra.mxu1 %v828_v12 }
 0x24f   :  { %2817 = vmatmul.mubr.f32.gmra.mxu0 %v821_v34  ;;  %1209 = vmatprep.mubr.f32.mxu1 %v832_v23 }
 0x250   :  { %2819 = vmatprep.mubr.f32.mxu0 %v824_v10  ;;  %v3914_v12 = vpop.permute.xlu1 %992 }
 0x252   :  { %1210 = vmatmul.mubr.f32.gmra.mxu1 %v831_v22 }
 0x253   :  { %2820 = vmatmul.mubr.f32.gmra.mxu0 %v827_v35  ;;  %1214 = vmatprep.mubr.f32.mxu1 %v835_v39  ;;  %v3924_v35 = vpop.permute.xlu0 %1077 }
 0x254   :  { %2822 = vmatprep.mubr.f32.mxu0 %v830_v56  ;;  %v3916_v34 = vpop.permute.xlu1 %987 }
 0x256   :  { %1215 = vmatmul.mubr.f32.gmra.mxu1 %v834_v9 }
 0x257   :  { %2823 = vmatmul.mubr.f32.gmra.mxu0 %v833_v13  ;;  %1219 = vmatprep.mubr.f32.mxu1 %v838_v27  ;;  %v3928_v56 = vpop.permute.xlu0 %1072 }
 0x258   :  { %2825 = vmatprep.mubr.f32.mxu0 %v836_v30  ;;  %v3918_v23 = vpop.permute.xlu1 %982 }
 0x25a   :  { %1220 = vmatmul.mubr.f32.gmra.mxu1 %v837_v61 }
 0x25b   :  { %2826 = vmatmul.mubr.f32.gmra.mxu0 %v839_v14  ;;  %1224 = vmatprep.mubr.f32.mxu1 %v841_v15  ;;  %v3932_v13 = vpop.permute.xlu0 %1067 }
 0x25c   :  { %2828 = vmatprep.mubr.f32.mxu0 %v842_v32  ;;  %v3920_v10 = vpop.permute.xlu1 %977 }
 0x25e   :  { %1225 = vmatmul.mubr.f32.gmra.mxu1 %v840_v19 }
 0x25f   :  { %2829 = vmatmul.mubr.f32.gmra.mxu0 %v845_v33  ;;  %1229 = vmatprep.mubr.f32.mxu1 %v844_v26  ;;  %v3934_v30 = vpop.permute.xlu0 %1062 }
 0x260   :  { %2831 = vmatprep.mubr.f32.mxu0 %v848_v38  ;;  %v3922_v22 = vpop.permute.xlu1 %972 }
 0x262   :  { %1230 = vmatmul.mubr.f32.gmra.mxu1 %v843_v40 }
 0x263   :  { %1234 = vmatprep.mubr.f32.mxu1 %v847_v41  ;;  %2832 = vmatmul.mubr.f32.gmra.mxu0 %v851_v29  ;;  %v3936_v14 = vpop.permute.xlu0 %1057 }
 0x264   :  { %2834 = vmatprep.mubr.f32.mxu0 %v854_v42  ;;  %v3926_v39 = vpop.permute.xlu1 %967 }
 0x266   :  { %1235 = vmatmul.mubr.f32.gmra.mxu1 %v846_v43 }
 0x267   :  { %1239 = vmatprep.mubr.f32.mxu1 %v850_v50  ;;  %2835 = vmatmul.mubr.f32.gmra.mxu0 %v857_v24  ;;  %v3938_v33 = vpop.permute.xlu0 %1052 }
 0x268   :  { %2837 = vmatprep.mubr.f32.mxu0 %v860_v47  ;;  %v3930_v9 = vpop.permute.xlu1 %962 }
 0x26a   :  { %1240 = vmatmul.mubr.f32.gmra.mxu1 %v849_v54 }
 0x26b   :  { %1244 = vmatprep.mubr.f32.mxu1 %v853_v28  ;;  %2838 = vmatmul.mubr.f32.gmra.mxu0 %v863_v62  ;;  %v3940_v29 = vpop.permute.xlu0 %1047 }
 0x26c   :  { %2840 = vmatprep.mubr.f32.mxu0 %v866_v37  ;;  %v958_v27 = vpop.permute.xlu1 %957 }
 0x26e   :  { %1245 = vmatmul.mubr.f32.gmra.mxu1 %v852_v48 }
 0x26f   :  { %1249 = vmatprep.mubr.f32.mxu1 %v856_v51  ;;  %2841 = vmatmul.mubr.f32.gmra.mxu0 %v869_v53  ;;  %v3942_v47 = vpop.permute.xlu0 %1042 }
 0x270   :  { %2843 = vmatprep.mubr.f32.mxu0 %v872_v55  ;;  %v953_v61 = vpop.permute.xlu1 %952 }
 0x272   :  { %1250 = vmatmul.mubr.f32.gmra.mxu1 %v855_v59 }
 0x273   :  { %1254 = vmatprep.mubr.f32.mxu1 %v859_v25  ;;  %2844 = vmatmul.mubr.f32.gmra.mxu0 %v875_v52  ;;  %v3944_v48 = vpop.permute.xlu0 %1037 }
 0x274   :  { %2846 = vmatprep.mubr.f32.mxu0 %v878_v46  ;;  %v948_v19 = vpop.permute.xlu1 %947 }
 0x276   :  { %1255 = vmatmul.mubr.f32.gmra.mxu1 %v858_v58 }
 0x277   :  { %1259 = vmatprep.mubr.f32.mxu1 %v862_v0  ;;  %2847 = vmatmul.mubr.f32.gmra.mxu0 %v881_v2  ;;  %v3946_v25 = vpop.permute.xlu0 %1032 }
 0x278   :  { %2849 = vmatprep.mubr.f32.mxu0 %v884_v20  ;;  %v943_v41 = vpop.permute.xlu1 %942 }
 0x27a   :  { %1260 = vmatmul.mubr.f32.gmra.mxu1 %v861_v57 }
 0x27b   :  { %1264 = vmatprep.mubr.f32.mxu1 %v865_v3  ;;  %2850 = vmatmul.mubr.f32.gmra.mxu0 %v887_v4  ;;  %v3950_v57 = vpop.permute.xlu0 %1027 }
 0x27c   :  { %v938_v24 = vpop.permute.xlu1 %937  ;;  %4432 = vst [vmem:[#allocation7_spill] sm:$0xff] %v3950_v57 }
 0x27e   :  { %1265 = vmatmul.mubr.f32.gmra.mxu1 %v864_v49 }
 0x27f   :  { %1269 = vmatprep.mubr.f32.mxu1 %v868_v1 }
 0x280   :  { %v933_v37 = vpop.permute.xlu1 %932 }
 0x282   :  { %1270 = vmatmul.mubr.f32.gmra.mxu1 %v867_v5 }
 0x283   :  { %1274 = vmatprep.mubr.f32.mxu1 %v871_v6 }
 0x284   :  { %v928_v59 = vpop.permute.xlu1 %927 }
 0x286   :  { %1275 = vmatmul.mubr.f32.gmra.mxu1 %v870_v21 }
 0x287   :  { %1279 = vmatprep.mubr.f32.mxu1 %v874_v63 }
 0x288   :  { %v923_v2 = vpop.permute.xlu1 %922 }
 0x28a   :  { %1280 = vmatmul.mubr.f32.gmra.mxu1 %v873_v7 }
 0x28b   :  { %1284 = vmatprep.mubr.f32.mxu1 %v877_v8 }
 0x28e   :  { %1285 = vmatmul.mubr.f32.gmra.mxu1 %v876_v44 }
 0x28f   :  { %1289 = vmatprep.mubr.f32.mxu1 %v880_v11 }
 0x292   :  { %1290 = vmatmul.mubr.f32.gmra.mxu1 %v879_v36  ;;  %v3958_v36 = vpop.permute.xlu0 %1022 }
 0x293   :  { %1294 = vmatprep.mubr.f32.mxu1 %v883_v18 }
 0x296   :  { %1295 = vmatmul.mubr.f32.gmra.mxu1 %v882_v16 }
 0x297   :  { %1299 = vmatprep.mubr.f32.mxu1 %v886_v45 }
 0x29a   :  { %1300 = vmatmul.mubr.f32.gmra.mxu1 %v885_v60 }
 0x2de   :  { %v1146_v15 = vpop.f32.mrf.mxu1 }
 0x2df   :  { %v1147_v3 = vadd.f32 %v1146_v15, %v923_v2 }
 0x2e0   :  { %v1148_v32 = vpop.f32.mrf.mxu1 }
 0x2e2   :  { %v1151_v26 = vpop.f32.mrf.mxu1 }
 0x2e3   :  { %v1152_v58 = vadd.f32 %v1151_v26, %v928_v59 }
 0x2e4   :  { %v1153_v38 = vpop.f32.mrf.mxu1 }
 0x2e6   :  { %v1156_v40 = vpop.f32.mrf.mxu1 }
 0x2e7   :  { %v1157_v7 = vadd.f32 %v1156_v40, %v933_v37 }
 0x2e8   :  { %v1158_v42 = vpop.f32.mrf.mxu1 }
 0x2ea   :  { %v1161_v43 = vpop.f32.mrf.mxu1 }
 0x2eb   :  { %v1162_v5 = vadd.f32 %v1161_v43, %v938_v24  ;;  %v1018_v24 = vpop.permute.xlu0 %1017 }
 0x2ec   :  { %v1163_v50 = vpop.f32.mrf.mxu1 }
 0x2ee   :  { %v1166_v54 = vpop.f32.mrf.mxu1 }
 0x2ef   :  { %v1167_v15 = vadd.f32 %v1166_v54, %v943_v41 }
 0x2f0   :  { %v1168_v28 = vpop.f32.mrf.mxu1 }
 0x2f2   :  { %v1171_v62 = vpop.f32.mrf.mxu1 }
 0x2f3   :  { %v1172_v18 = vadd.f32 %v1171_v62, %v948_v19 }
 0x2f4   :  { %v1173_v51 = vpop.f32.mrf.mxu1 }
 0x2f6   :  { %v1176_v53 = vpop.f32.mrf.mxu1 }
 0x2f7   :  { %v1177_v28 = vadd.f32 %v1176_v53, %v953_v61 }
 0x2f8   :  { %v1178_v55 = vpop.f32.mrf.mxu1 }
 0x2fa   :  { %v1181_v52 = vpop.f32.mrf.mxu1 }
 0x2fb   :  { %v1182_v42 = vadd.f32 %v1181_v52, %v958_v27  ;;  %v1013_v27 = vpop.permute.xlu0 %1012 }
 0x2fc   :  { %v1183_v46 = vpop.f32.mrf.mxu1 }
 0x2fe   :  { %v3948_v0 = vpop.f32.mrf.mxu1 }
 0x2ff   :  { %v2806_v20 = vpop.f32.mrf.mxu0 }
 0x300   :  { %v3952_v4 = vadd.f32 %v2806_v20, %v1152_v58  ;;  %v1188_v49 = vpop.f32.mrf.mxu1  ;;  %v1008_v20 = vpop.permute.xlu0 %1007 }
 0x301   :  { %v1371_v1 = vpop.f32.mrf.mxu0 }
 0x302   :  { %v1372_v6 = vadd.f32 %v1371_v1, %v1147_v3  ;;  %v3954_v21 = vpop.f32.mrf.mxu1 }
 0x303   :  { %v2809_v63 = vpop.f32.mrf.mxu0 }
 0x304   :  { %v3956_v8 = vadd.f32 %v2809_v63, %v1162_v5  ;;  %v1193_v44 = vpop.f32.mrf.mxu1 }
 0x305   :  { %v1381_v11 = vpop.f32.mrf.mxu0  ;;  %v1003_v44 = vpop.permute.xlu0 %1002 }
 0x306   :  { %v3960_v16 = vadd.f32 %v1381_v11, %v1157_v7  ;;  %v3962_v45 = vpop.f32.mrf.mxu1 }
 0x307   :  { %v2812_v60 = vpop.f32.mrf.mxu0 }
 0x308   :  { %v3964_v32 = vadd.f32 %v2812_v60, %v1172_v18  ;;  %v1198_v26 = vpop.f32.mrf.mxu1 }
 0x309   :  { %v1391_v38 = vpop.f32.mrf.mxu0 }
 0x30a   :  { %4433 = vst [vmem:[#allocation4_spill] sm:$0xff] %v3964_v32  ;;  %v3966_v43 = vadd.f32 %v1391_v38, %v1167_v15  ;;  %v3968_v40 = vpop.f32.mrf.mxu1  ;;  %v1531_v32 = vmax.f32 %v3952_v4, 0.0 }
 0x30b   :  { %v2815_v50 = vpop.f32.mrf.mxu0 }
 0x30c   :  { %4434 = vst [vmem:[#allocation5_spill] sm:$0xff] %v3966_v43  ;;  %v3970_v37 = vadd.f32 %v2815_v50, %v1182_v42  ;;  %v1203_v19 = vpop.f32.mrf.mxu1 }
 0x30d   :  { %v1401_v62 = vpop.f32.mrf.mxu0  ;;  %v1530_v19 = vmax.f32 %v1372_v6, 0.0 }
 0x30e   :  { %4435 = vst [vmem:[#allocation2_spill] sm:$0xff] %v3970_v37  ;;  %v3972_v51 = vadd.f32 %v1401_v62, %v1177_v28  ;;  %v3974_v55 = vpop.f32.mrf.mxu1 }
 0x30f   :  { %v3976_v41 = vpop.f32.mrf.mxu0 }
 0x310   :  { %4436 = vst [vmem:[#allocation6_spill] sm:$0xff] %v3972_v51  ;;  %v1208_v54 = vpop.f32.mrf.mxu1 }
 0x311   :  { %v3978_v59 = vpop.f32.mrf.mxu0 }
 0x312   :  { %v3980_v52 = vpop.f32.mrf.mxu1 }
 0x313   :  { %v3982_v46 = vpop.f32.mrf.mxu0 }
 0x314   :  { %v1213_v58 = vpop.f32.mrf.mxu1 }
 0x315   :  { %v3984_v61 = vpop.f32.mrf.mxu0 }
 0x316   :  { %v3986_v53 = vpop.f32.mrf.mxu1 }
 0x317   :  { %v3988_v2 = vpop.f32.mrf.mxu0 }
 0x318   :  { %v1218_v3 = vpop.f32.mrf.mxu1 }
 0x319   :  { %v3990_v49 = vpop.f32.mrf.mxu0 }
 0x31a   :  { %v3992_v1 = vpop.f32.mrf.mxu1 }
 0x31b   :  { %v3994_v5 = vpop.f32.mrf.mxu0 }
 0x31c   :  { %v1223_v63 = vpop.f32.mrf.mxu1 }
 0x31d   :  { %v3996_v7 = vpop.f32.mrf.mxu0 }
 0x31e   :  { %v1226_v11 = vpop.f32.mrf.mxu1 }
 0x31f   :  { %v1227_v18 = vadd.f32 %v1226_v11, %v1003_v44  ;;  %v2830_v60 = vpop.f32.mrf.mxu0 }
 0x320   :  { %v1228_v15 = vpop.f32.mrf.mxu1 }
 0x321   :  { %v1451_v26 = vpop.f32.mrf.mxu0 }
 0x322   :  { %v1452_v38 = vadd.f32 %v1451_v26, %v1227_v18  ;;  %v1231_v42 = vpop.f32.mrf.mxu1 }
 0x323   :  { %v1232_v50 = vadd.f32 %v1231_v42, %v1008_v20  ;;  %v2833_v28 = vpop.f32.mrf.mxu0  ;;  %v1532_v20 = vmax.f32 %v3960_v16, 0.0 }
 0x324   :  { %v1546_v62 = vmax.f32 %v1452_v38, 0.0  ;;  %v1233_v54 = vpop.f32.mrf.mxu1 }
 0x325   :  { %v1457_v58 = vadd.f32 %v2830_v60, %v1232_v50  ;;  %v1461_v63 = vpop.f32.mrf.mxu0 }
 0x326   :  { %v3998_v3 = vadd.f32 %v1546_v62, %v1530_v19  ;;  %v1236_v31 = vpop.f32.mrf.mxu1  ;;  %v1533_v19 = vmax.f32 %v3956_v8, 0.0 }
 0x327   :  { %v1547_v37 = vmax.f32 %v1457_v58, 0.0  ;;  %v1237_v43 = vadd.f32 %v1236_v31, %v1013_v27 }
 0x328   :  { %4437 = vst [vmem:[#allocation3_spill] sm:$0xff] %v3998_v3  ;;  %v1238_v44 = vpop.f32.mrf.mxu1 }
 0x329   :  { %v4001_v11 = vadd.f32 %v1547_v37, %v1531_v32  ;;  %v1462_v15 = vadd.f32 %v1461_v63, %v1237_v43  ;;  %v4013_v43 = vpop.f32.mrf.mxu0 }
 0x32a   :  { %v1241_v18 = vpop.f32.mrf.mxu1  ;;  %4442 = vst [vmem:[#allocation12_spill] sm:$0xff] %v4013_v43 }
 0x32b   :  { %4438 = vst [vmem:[#allocation8_spill] sm:$0xff] %v4001_v11  ;;  %v1548_v26 = vmax.f32 %v1462_v15, 0.0  ;;  %v1242_v6 = vadd.f32 %v1241_v18, %v1018_v24  ;;  %v4015_v27 = vpop.f32.mrf.mxu0 }
 0x32c   :  { %v1243_v38 = vpop.f32.mrf.mxu1 }
 0x32d   :  { %v4004_v42 = vadd.f32 %v1548_v26, %v1532_v20  ;;  %v1467_v60 = vadd.f32 %v2833_v28, %v1242_v6  ;;  %v4017_v54 = vpop.f32.mrf.mxu0 }
 0x32e   :  { %v4006_v50 = vpop.f32.mrf.mxu1  ;;  %4443 = vst [vmem:[#allocation13_spill] sm:$0xff] %v4017_v54 }
 0x32f   :  { %4439 = vst [vmem:[#allocation9_spill] sm:$0xff] %v4004_v42  ;;  %v1549_v4 = vmax.f32 %v1467_v60, 0.0  ;;  %v4021_v63 = vpop.f32.mrf.mxu0 }
 0x330   :  { %v1248_v62 = vpop.f32.mrf.mxu1 }
 0x331   :  { %v4009_v31 = vadd.f32 %v1549_v4, %v1533_v19  ;;  %v4023_v44 = vpop.f32.mrf.mxu0 }
 0x332   :  { %v4011_v32 = vpop.f32.mrf.mxu1 }
 0x333   :  { %4440 = vst [vmem:[#allocation10_spill] sm:$0xff] %v4009_v31  ;;  %4441 = vst [vmem:[#allocation11_spill] sm:$0xff] %v4011_v32  ;;  %v1491_v20 = vpop.f32.mrf.mxu0 }
 0x334   :  { %v1253_v37 = vpop.f32.mrf.mxu1 }
 0x335   :  { %v2845_v38 = vpop.f32.mrf.mxu0 }
 0x336   :  { %v1256_v16 = vpop.f32.mrf.mxu1 }
 0x337   :  { %v1501_v19 = vpop.f32.mrf.mxu0 }
 0x338   :  { %v1258_v24 = vpop.f32.mrf.mxu1 }
 0x339   :  { %v2848_v37 = vpop.f32.mrf.mxu0 }
 0x33a   :  { %v4019_v28 = vpop.f32.mrf.mxu1 }
 0x33b   :  { %v1511_v31 = vpop.f32.mrf.mxu0 }
 0x33c   :  { %v1263_v58 = vpop.f32.mrf.mxu1 }
 0x33d   :  { %v2851_v3 = vpop.f32.mrf.mxu0 }
 0x33e   :  { %v1266_v8 = vpop.f32.mrf.mxu1 }
 0x33f   :  { %v1521_v54 = vpop.f32.mrf.mxu0 }
 0x340   :  { %v1268_v15 = vpop.f32.mrf.mxu1 }
 0x341   :  { %v1217_v15 = vadd.f32 %v3986_v53, %v3914_v12  ;;  %v1187_v12 = vadd.f32 %v3948_v0, %v3930_v9 }
 0x342   :  { %v1271_v18 = vpop.f32.mrf.mxu1 }
 0x344   :  { %v1273_v26 = vpop.f32.mrf.mxu1 }
 0x345   :  { %v1222_v26 = vadd.f32 %v3992_v1, %v3912_v17 }
 0x346   :  { %v1276_v6 = vpop.f32.mrf.mxu1 }
 0x347   :  { %v1277_v51 = vadd.f32 %v1276_v6, %v3938_v33  ;;  %v1447_v33 = vadd.f32 %v3994_v5, %v1222_v26  ;;  %v4446_v26 = vld [vmem:[#allocation13_spill] sm:$0xff] }
 0x348   :  { %v1278_v60 = vpop.f32.mrf.mxu1 }
 0x349   :  { %v1207_v60 = vadd.f32 %v3974_v55, %v3918_v23  ;;  %v1197_v23 = vadd.f32 %v3962_v45, %v3922_v22  ;;  %v1212_v55 = vadd.f32 %v3980_v52, %v3916_v34  ;;  %v1202_v22 = vadd.f32 %v3968_v40, %v3920_v10 }
 0x34a   :  { %v1281_v4 = vpop.f32.mrf.mxu1  ;;  %v1192_v40 = vadd.f32 %v3954_v21, %v3926_v39 }
 0x34b   :  { %v1432_v53 = vadd.f32 %v3990_v49, %v1207_v60  ;;  %v1422_v34 = vadd.f32 %v3984_v61, %v1197_v23  ;;  %v1437_v45 = vadd.f32 %v3988_v2, %v1212_v55  ;;  %v1412_v61 = vadd.f32 %v3978_v59, %v1187_v12  ;;  %v4448_v55 = vld [vmem:[#allocation12_spill] sm:$0xff] }
 0x34c   :  { %v1283_v62 = vpop.f32.mrf.mxu1  ;;  %v1427_v2 = vadd.f32 %v3982_v46, %v1202_v22 }
 0x34d   :  { %v1442_v62 = vadd.f32 %v3996_v7, %v1217_v15  ;;  %v1542_v52 = vmax.f32 %v1432_v53, 0.0 }
 0x34e   :  { %v1286_v24 = vpop.f32.mrf.mxu1 }
 0x34f   :  { %v1287_v42 = vadd.f32 %v1286_v24, %v3934_v30  ;;  %v1544_v7 = vmax.f32 %v1442_v62, 0.0 }
 0x350   :  { %v1288_v11 = vpop.f32.mrf.mxu1 }
 0x351   :  { %v1512_v32 = vadd.f32 %v1511_v31, %v1287_v42  ;;  %v1502_v42 = vadd.f32 %v1501_v19, %v1277_v51 }
 0x352   :  { %v1291_v58 = vpop.f32.mrf.mxu1 }
 0x353   :  { %v1292_v57 = vadd.f32 %v1291_v58, %v3932_v13  ;;  %v1267_v13 = vadd.f32 %v1266_v8, %v3942_v47  ;;  %v1558_v9 = vmax.f32 %v1512_v32, 0.0  ;;  %v1257_v47 = vadd.f32 %v1256_v16, %v3946_v25 }
 0x354   :  { %v1293_v43 = vpop.f32.mrf.mxu1  ;;  %v1556_v32 = vmax.f32 %v1502_v42, 0.0  ;;  %v1540_v25 = vmax.f32 %v1422_v34, 0.0  ;;  %v1543_v16 = vmax.f32 %v1437_v45, 0.0 }
 0x355   :  { %v1517_v0 = vadd.f32 %v2848_v37, %v1292_v57  ;;  %v1492_v8 = vadd.f32 %v1491_v20, %v1267_v13  ;;  %v1272_v57 = vadd.f32 %v1271_v18, %v3940_v29  ;;  %v1482_v29 = vadd.f32 %v4021_v63, %v1257_v47 }
 0x356   :  { %v1296_v11 = vpop.f32.mrf.mxu1  ;;  %v1262_v20 = vadd.f32 %v4019_v28, %v3944_v48  ;;  %v1572_v21 = vadd.f32 %v1556_v32, %v1540_v25  ;;  %v1541_v63 = vmax.f32 %v1427_v2, 0.0  ;;  %v4444_v48 = vld [vmem:[#allocation7_spill] sm:$0xff]  ;;  %v1737_v25 = vld [vmem:[%s4406_s7 + $0x38] sm:$0xff] }
 0x357   :  { %v1297_v30 = vadd.f32 %v1296_v11, %v3928_v56  ;;  %v1282_v56 = vadd.f32 %v1281_v4, %v3936_v14  ;;  %v1559_v19 = vmax.f32 %v1517_v0, 0.0  ;;  %v1497_v39 = vadd.f32 %v4023_v44, %v1272_v57  ;;  %v4445_v28 = vld [vmem:[#allocation11_spill] sm:$0xff]  ;;  %v4450_v0 = vld [vmem:[#allocation2_spill] sm:$0xff]  ;;  %v4452_v57 = vld [vmem:[#allocation9_spill] sm:$0xff] }
 0x358   :  { %v1298_v17 = vpop.f32.mrf.mxu1  ;;  %v1252_v44 = vadd.f32 %v4445_v28, %v4444_v48  ;;  %v1552_v15 = vmax.f32 %v1482_v29, 0.0  ;;  %v1487_v60 = vadd.f32 %v4446_v26, %v1262_v20  ;;  %v4121_v32 = vmul.f32 0.5, %v4452_v57  ;;  %v1732_v29 = vld [vmem:[%s4406_s7 + $0x10] sm:$0xff]  ;;  %v1731_v20 = vld [vmem:[%s4406_s7 + $0x8] sm:$0xff] }
 0x359   :  { %v1522_v1 = vadd.f32 %v1521_v54, %v1297_v30  ;;  %v1545_v54 = vmax.f32 %v1447_v33, 0.0  ;;  %v1507_v6 = vadd.f32 %v2845_v38, %v1282_v56  ;;  %v1554_v38 = vmax.f32 %v1492_v8, 0.0  ;;  %v1707_v8 = vld [vmem:[%s4405_s6 + $0x8] sm:$0xff] }
 0x35a   :  { %v1301_v31 = vpop.f32.mrf.mxu1  ;;  %v1575_v37 = vadd.f32 %v1559_v19, %v1543_v16  ;;  %v1555_v11 = vmax.f32 %v1497_v39, 0.0  ;;  %v4080_v30 = vmul.f32 0.5, %v1572_v21  ;;  %v1477_v33 = vadd.f32 %v4448_v55, %v1252_v44  ;;  %1842 = vmatprep.mubr.f32.mxu0 %v1707_v8  ;;  %v1733_v16 = vld [vmem:[%s4406_s7 + $0x18] sm:$0xff]  ;;  %v1730_v39 = vld [vmem:[%s4406_s7] sm:$0xff]  ;;  %v1712_v55 = vld [vmem:[%s4405_s6 + $0x30] sm:$0xff] }
 0x35b   :  { %v1560_v49 = vmax.f32 %v1522_v1, 0.0  ;;  %v1302_v43 = vadd.f32 %v1301_v31, %v3924_v35  ;;  %v1574_v35 = vadd.f32 %v1558_v9, %v1542_v52  ;;  %v1557_v59 = vmax.f32 %v1507_v6, 0.0  ;;  %v4449_v31 = vld [vmem:[#allocation5_spill] sm:$0xff] }
 0x35c   :  { %v1303_v5 = vpop.f32.mrf.mxu1  ;;  %v4082_v12 = vmul.f32 0.5, %v1575_v37  ;;  %v1534_v9 = vmax.f32 %v4449_v31, 0.0  ;;  %v1551_v22 = vmax.f32 %v1477_v33, 0.0  ;;  %v1716_v33 = vld [vmem:[%s4405_s6 + $0x50] sm:$0xff] }
 0x35d   :  { %v1576_v51 = vadd.f32 %v1560_v49, %v1544_v7  ;;  %v1527_v14 = vadd.f32 %v2851_v3, %v1302_v43  ;;  %v1247_v3 = vadd.f32 %v4006_v50, %v3958_v36  ;;  %v4067_v46 = vmul.f32 0.5, %v1574_v35  ;;  %v4451_v5 = vld [vmem:[#allocation4_spill] sm:$0xff]  ;;  %v4453_v35 = vld [vmem:[#allocation3_spill] sm:$0xff] }
 0x35e   :  { %v1538_v36 = vmax.f32 %v1412_v61, 0.0  ;;  %v1417_v50 = vadd.f32 %v3976_v41, %v1192_v40  ;;  %v1573_v41 = vadd.f32 %v1557_v59, %v1541_v63  ;;  %v1553_v7 = vmax.f32 %v1487_v60, 0.0  ;;  %v4455_v61 = vld [vmem:[#allocation8_spill] sm:$0xff] }
 0x35f   :  { %v4053_v4 = vmul.f32 0.5, %v1576_v51  ;;  %v1561_v10 = vmax.f32 %v1527_v14, 0.0  ;;  %v1472_v58 = vadd.f32 %v4015_v27, %v1247_v3  ;;  %v4447_v27 = vld [vmem:[#allocation6_spill] sm:$0xff]  ;;  %v1537_v49 = vmax.f32 %v4450_v0, 0.0  ;;  %v1736_v3 = vld [vmem:[%s4406_s7 + $0x30] sm:$0xff] }
 0x360   :  { %v1570_v62 = vadd.f32 %v1554_v38, %v1538_v36  ;;  %v1536_v53 = vmax.f32 %v4447_v27, 0.0  ;;  %v1539_v17 = vmax.f32 %v1417_v50, 0.0  ;;  %v4092_v56 = vmul.f32 0.5, %v1573_v41  ;;  %v1734_v38 = vld [vmem:[%s4406_s7 + $0x20] sm:$0xff]  ;;  %v1709_v27 = vld [vmem:[%s4405_s6 + $0x18] sm:$0xff] }
 0x361   :  { %v1577_v18 = vadd.f32 %v1561_v10, %v1545_v54  ;;  %1638 = vrot.lane.b32.xlu0 %v4053_v4, %s2998_s22  ;;  %v1550_v23 = vmax.f32 %v1472_v58, 0.0  ;;  %v1569_v45 = vadd.f32 %v1553_v7, %v1537_v49  ;;  %v1535_v54 = vmax.f32 %v4451_v5, 0.0  ;;  %v4454_v10 = vld [vmem:[#allocation10_spill] sm:$0xff]  ;;  %v1728_v5 = vld [vmem:[%s4405_s6 + $0xb0] sm:$0xff] }
 0x362   :  { %v1568_v1 = vadd.f32 %v1552_v15, %v1536_v53  ;;  %v4090_v13 = vmul.f32 0.5, %v1570_v62  ;;  %v1571_v42 = vadd.f32 %v1555_v11, %v1539_v17  ;;  %v4130_v19 = vmul.f32 0.5, %v4453_v35  ;;  %v1706_v11 = vld [vmem:[%s4405_s6] sm:$0xff]  ;;  %v1713_v53 = vld [vmem:[%s4405_s6 + $0x38] sm:$0xff] }
 0x363   :  { %v4069_v24 = vmul.f32 0.5, %v1577_v18  ;;  %v1566_v43 = vadd.f32 %v1550_v23, %v1534_v9  ;;  %v1567_v51 = vadd.f32 %v1551_v22, %v1535_v54  ;;  %v4111_v14 = vmul.f32 0.5, %v1569_v45  ;;  %v1735_v18 = vld [vmem:[%s4406_s7 + $0x28] sm:$0xff]  ;;  %v1718_v9 = vld [vmem:[%s4405_s6 + $0x60] sm:$0xff]  ;;  %v1721_v22 = vld [vmem:[%s4405_s6 + $0x78] sm:$0xff] }
 0x364   :  { %v4100_v34 = vmul.f32 0.5, %v1568_v1  ;;  %v4102_v52 = vmul.f32 0.5, %v1571_v42  ;;  %v4133_v40 = vmul.f32 0.5, %v4454_v10  ;;  %v4140_v2 = vmul.f32 0.5, %v4455_v61  ;;  %v1719_v42 = vld [vmem:[%s4405_s6 + $0x68] sm:$0xff]  ;;  %v1722_v0 = vld [vmem:[%s4405_s6 + $0x80] sm:$0xff] }
 0x365   :  { %1640 = vrot.lane.b32.xlu1 %v4069_v24, %s2998_s22  ;;  %1634 = vrot.lane.b32.xlu0 %v4067_v46, %s2998_s22  ;;  %v4109_v47 = vmul.f32 0.5, %v1566_v43  ;;  %v4123_v6 = vmul.f32 0.5, %v1567_v51  ;;  %v1727_v51 = vld [vmem:[%s4405_s6 + $0xa8] sm:$0xff]  ;;  %v1717_v35 = vld [vmem:[%s4405_s6 + $0x58] sm:$0xff] }
 0x366   :  { %v1723_v10 = vld [vmem:[%s4405_s6 + $0x88] sm:$0xff]  ;;  %v1729_v61 = vld [vmem:[%s4405_s6 + $0xb8] sm:$0xff] }
 0x369   :  { %1636 = vrot.lane.b32.xlu1 %v4082_v12, %s2998_s22  ;;  %1630 = vrot.lane.b32.xlu0 %v4080_v30, %s2998_s22 }
 0x36d   :  { %1632 = vrot.lane.b32.xlu1 %v4092_v56, %s2998_s22  ;;  %1626 = vrot.lane.b32.xlu0 %v4090_v13, %s2998_s22 }
 0x371   :  { %1628 = vrot.lane.b32.xlu1 %v4102_v52, %s2998_s22  ;;  %1622 = vrot.lane.b32.xlu0 %v4100_v34, %s2998_s22 }
 0x375   :  { %1624 = vrot.lane.b32.xlu1 %v4111_v14, %s2998_s22  ;;  %1618 = vrot.lane.b32.xlu0 %v4109_v47, %s2998_s22 }
 0x379   :  { %1620 = vrot.lane.b32.xlu1 %v4123_v6, %s2998_s22  ;;  %1614 = vrot.lane.b32.xlu0 %v4121_v32, %s2998_s22 }
 0x37d   :  { %1616 = vrot.lane.b32.xlu1 %v4133_v40, %s2998_s22  ;;  %1610 = vrot.lane.b32.xlu0 %v4130_v19, %s2998_s22 }
 0x381   :  { %1612 = vrot.lane.b32.xlu1 %v4140_v2, %s2998_s22  ;;  %1686 = vrot.lane.b32.xlu0 %v4053_v4, %s3001_s16 }
 0x385   :  { %1688 = vrot.lane.b32.xlu1 %v4069_v24, %s3001_s16  ;;  %1682 = vrot.lane.b32.xlu0 %v4067_v46, %s3001_s16 }
 0x389   :  { %1684 = vrot.lane.b32.xlu1 %v4082_v12, %s3001_s16  ;;  %1678 = vrot.lane.b32.xlu0 %v4080_v30, %s3001_s16 }
 0x38d   :  { %1680 = vrot.lane.b32.xlu1 %v4092_v56, %s3001_s16  ;;  %1674 = vrot.lane.b32.xlu0 %v4090_v13, %s3001_s16 }
 0x391   :  { %1676 = vrot.lane.b32.xlu1 %v4102_v52, %s3001_s16  ;;  %1670 = vrot.lane.b32.xlu0 %v4100_v34, %s3001_s16 }
 0x395   :  { %1672 = vrot.lane.b32.xlu1 %v4111_v14, %s3001_s16  ;;  %1666 = vrot.lane.b32.xlu0 %v4109_v47, %s3001_s16 }
 0x399   :  { %1668 = vrot.lane.b32.xlu1 %v4123_v6, %s3001_s16  ;;  %1662 = vrot.lane.b32.xlu0 %v4121_v32, %s3001_s16 }
 0x39d   :  { %1664 = vrot.lane.b32.xlu1 %v4133_v40, %s3001_s16  ;;  %1658 = vrot.lane.b32.xlu0 %v4130_v19, %s3001_s16 }
 0x3a1   :  { %1660 = vrot.lane.b32.xlu1 %v4140_v2, %s3001_s16  ;;  %1775 = vperm.xlu0 %2996, %v1737_v25  }
 0x3a5   :  { %1755 = vperm.xlu1 %2997, %v1733_v16   ;;  %1770 = vperm.xlu0 %2996, %v1736_v3  }
 0x3a9   :  { %1750 = vperm.xlu1 %2997, %v1732_v29   ;;  %1765 = vperm.xlu0 %2996, %v1735_v18  }
 0x3ad   :  { %1745 = vperm.xlu1 %2997, %v1731_v20   ;;  %1760 = vperm.xlu0 %2996, %v1734_v38  }
 0x3b1   :  { %1740 = vperm.xlu1 %2997, %v1730_v39  }
 0x3d3   :  { %v1639_v21 = vpop.permute.xlu0 %1638 }
 0x3d7   :  { %v1635_v59 = vpop.permute.xlu0 %1634  ;;  %v1641_v37 = vpop.permute.xlu1 %1640 }
 0x3d8   :  { %2581 = vmatprep.subr.mxu0 %v1641_v37 }
 0x3d9   :  { %2582 = vmatpush3.msra.mxu0 %v4069_v24 }
 0x3da   :  { %2583 = vmatprep.subr.mxu0 %v1639_v21 }
 0x3db   :  { %v1631_v36 = vpop.permute.xlu0 %1630  ;;  %2584 = vmatpush3.msra.mxu0 %v4053_v4  ;;  %v1637_v50 = vpop.permute.xlu1 %1636 }
 0x3dc   :  { %2585 = vmatprep.subr.mxu0 %v1637_v50 }
 0x3dd   :  { %2586 = vmatpush3.msra.mxu0 %v4082_v12 }
 0x3de   :  { %2587 = vmatprep.subr.mxu0 %v1635_v59 }
 0x3df   :  { %v1627_v63 = vpop.permute.xlu0 %1626  ;;  %2588 = vmatpush3.msra.mxu0 %v4067_v46  ;;  %v1633_v58 = vpop.permute.xlu1 %1632 }
 0x3e0   :  { %2589 = vmatprep.subr.mxu0 %v1633_v58 }
 0x3e1   :  { %2590 = vmatpush3.msra.mxu0 %v4092_v56 }
 0x3e2   :  { %2591 = vmatprep.subr.mxu0 %v1631_v36 }
 0x3e3   :  { %v1623_v48 = vpop.permute.xlu0 %1622  ;;  %2592 = vmatpush3.msra.mxu0 %v4080_v30  ;;  %v1629_v24 = vpop.permute.xlu1 %1628  ;;  %v1710_v30 = vld [vmem:[%s4405_s6 + $0x20] sm:$0xff] }
 0x3e4   :  { %2593 = vmatprep.subr.mxu0 %v1629_v24 }
 0x3e5   :  { %2594 = vmatpush3.msra.mxu0 %v4102_v52  ;;  %v1724_v52 = vld [vmem:[%s4405_s6 + $0x90] sm:$0xff] }
 0x3e6   :  { %2595 = vmatprep.subr.mxu0 %v1627_v63 }
 0x3e7   :  { %v1619_v4 = vpop.permute.xlu0 %1618  ;;  %2596 = vmatpush3.msra.mxu0 %v4090_v13  ;;  %v1625_v28 = vpop.permute.xlu1 %1624  ;;  %v1715_v13 = vld [vmem:[%s4405_s6 + $0x48] sm:$0xff] }
 0x3e8   :  { %2597 = vmatprep.subr.mxu0 %v1625_v28 }
 0x3e9   :  { %2598 = vmatpush3.msra.mxu0 %v4111_v14  ;;  %v1708_v14 = vld [vmem:[%s4405_s6 + $0x10] sm:$0xff] }
 0x3ea   :  { %2599 = vmatprep.subr.mxu0 %v1623_v48 }
 0x3eb   :  { %v1615_v46 = vpop.permute.xlu0 %1614  ;;  %2600 = vmatpush3.msra.mxu0 %v4100_v34  ;;  %v1621_v44 = vpop.permute.xlu1 %1620  ;;  %v1725_v34 = vld [vmem:[%s4405_s6 + $0x98] sm:$0xff] }
 0x3ec   :  { %2601 = vmatprep.subr.mxu0 %v1621_v44 }
 0x3ed   :  { %2602 = vmatpush3.msra.mxu0 %v4123_v6  ;;  %v1714_v6 = vld [vmem:[%s4405_s6 + $0x40] sm:$0xff] }
 0x3ee   :  { %2603 = vmatprep.subr.mxu0 %v1619_v4 }
 0x3ef   :  { %v1611_v15 = vpop.permute.xlu0 %1610  ;;  %2604 = vmatpush3.msra.mxu0 %v4109_v47  ;;  %v1617_v26 = vpop.permute.xlu1 %1616 }
 0x3f0   :  { %2605 = vmatprep.subr.mxu0 %v1617_v26 }
 0x3f1   :  { %2606 = vmatpush3.msra.mxu0 %v4133_v40  ;;  %v1726_v40 = vld [vmem:[%s4405_s6 + $0xa0] sm:$0xff] }
 0x3f2   :  { %2607 = vmatprep.subr.mxu0 %v1615_v46 }
 0x3f3   :  { %v1687_v60 = vpop.permute.xlu0 %1686  ;;  %2608 = vmatpush3.msra.mxu0 %v4121_v32  ;;  %v1613_v62 = vpop.permute.xlu1 %1612  ;;  %v1711_v32 = vld [vmem:[%s4405_s6 + $0x28] sm:$0xff] }
 0x3f4   :  { %2609 = vmatprep.subr.mxu0 %v1613_v62 }
 0x3f5   :  { %2610 = vmatpush3.msra.mxu0 %v4140_v2 }
 0x3f6   :  { %2611 = vmatprep.subr.mxu0 %v1611_v15 }
 0x3f7   :  { %v1683_v41 = vpop.permute.xlu0 %1682  ;;  %2612 = vmatpush3.msra.mxu0 %v4130_v19  ;;  %v1689_v12 = vpop.permute.xlu1 %1688  ;;  %v1720_v19 = vld [vmem:[%s4405_s6 + $0x70] sm:$0xff] }
 0x3f8   :  { %1843 = vmatmul.mubr.f32.vlgmr.msra.gmra.mxu0 %v1706_v11  ;;  %2852 = vmatprep.subr.mxu0 %v1689_v12 }
 0x3f9   :  { %2853 = vmatpush3.msra.mxu0 %v1689_v12  ;;  %1847 = vmatprep.mubr.f32.mxu0 %v1710_v30 }
 0x3fa   :  { %2854 = vmatprep.subr.mxu0 %v1687_v60 }
 0x3fb   :  { %v1679_v17 = vpop.permute.xlu0 %1678  ;;  %2855 = vmatpush3.msra.mxu0 %v1687_v60  ;;  %v1685_v23 = vpop.permute.xlu1 %1684 }
 0x3fc   :  { %1848 = vmatmul.mubr.f32.gmra.mxu0 %v1709_v27  ;;  %2856 = vmatprep.subr.mxu0 %v1685_v23 }
 0x3fd   :  { %2857 = vmatpush3.msra.mxu0 %v1685_v23  ;;  %1852 = vmatprep.mubr.f32.mxu0 %v1713_v53 }
 0x3fe   :  { %2858 = vmatprep.subr.mxu0 %v1683_v41 }
 0x3ff   :  { %v1675_v1 = vpop.permute.xlu0 %1674  ;;  %2859 = vmatpush3.msra.mxu0 %v1683_v41  ;;  %v1681_v7 = vpop.permute.xlu1 %1680 }
 0x400   :  { %1853 = vmatmul.mubr.f32.gmra.mxu0 %v1712_v55  ;;  %2860 = vmatprep.subr.mxu0 %v1681_v7 }
 0x401   :  { %2861 = vmatpush3.msra.mxu0 %v1681_v7  ;;  %1857 = vmatprep.mubr.f32.mxu0 %v1716_v33 }
 0x402   :  { %2862 = vmatprep.subr.mxu0 %v1679_v17 }
 0x403   :  { %v1671_v56 = vpop.permute.xlu0 %1670  ;;  %2863 = vmatpush3.msra.mxu0 %v1679_v17  ;;  %v1677_v31 = vpop.permute.xlu1 %1676 }
 0x404   :  { %1858 = vmatmul.mubr.f32.gmra.mxu0 %v1715_v13  ;;  %2864 = vmatprep.subr.mxu0 %v1677_v31 }
 0x405   :  { %2865 = vmatpush3.msra.mxu0 %v1677_v31  ;;  %1862 = vmatprep.mubr.f32.mxu0 %v1719_v42 }
 0x406   :  { %2866 = vmatprep.subr.mxu0 %v1675_v1 }
 0x407   :  { %2867 = vmatpush3.msra.mxu0 %v1675_v1  ;;  %v1673_v49 = vpop.permute.xlu1 %1672  ;;  %v1667_v43 = vpop.permute.xlu0 %1666 }
 0x408   :  { %1863 = vmatmul.mubr.f32.gmra.mxu0 %v1718_v9  ;;  %2868 = vmatprep.subr.mxu0 %v1673_v49 }
 0x409   :  { %2869 = vmatpush3.msra.mxu0 %v1673_v49  ;;  %1867 = vmatprep.mubr.f32.mxu0 %v1722_v0 }
 0x40a   :  { %2870 = vmatprep.subr.mxu0 %v1671_v56 }
 0x40b   :  { %2871 = vmatpush3.msra.mxu0 %v1671_v56  ;;  %v1669_v45 = vpop.permute.xlu1 %1668  ;;  %v1663_v54 = vpop.permute.xlu0 %1662 }
 0x40c   :  { %1868 = vmatmul.mubr.f32.gmra.mxu0 %v1721_v22  ;;  %2872 = vmatprep.subr.mxu0 %v1669_v45 }
 0x40d   :  { %2873 = vmatpush3.msra.mxu0 %v1669_v45  ;;  %1872 = vmatprep.mubr.f32.mxu0 %v1725_v34 }
 0x40e   :  { %2874 = vmatprep.subr.mxu0 %v1667_v43 }
 0x40f   :  { %2875 = vmatpush3.msra.mxu0 %v1667_v43  ;;  %v1665_v47 = vpop.permute.xlu1 %1664  ;;  %v1659_v57 = vpop.permute.xlu0 %1658 }
 0x410   :  { %1873 = vmatmul.mubr.f32.gmra.mxu0 %v1724_v52  ;;  %2876 = vmatprep.subr.mxu0 %v1665_v47 }
 0x411   :  { %2877 = vmatpush3.msra.mxu0 %v1665_v47  ;;  %1877 = vmatprep.mubr.f32.mxu0 %v1728_v5 }
 0x412   :  { %2878 = vmatprep.subr.mxu0 %v1663_v54 }
 0x413   :  { %2879 = vmatpush3.msra.mxu0 %v1663_v54  ;;  %v1661_v8 = vpop.permute.xlu1 %1660 }
 0x414   :  { %1878 = vmatmul.mubr.f32.gmra.mxu0 %v1727_v51  ;;  %2880 = vmatprep.subr.mxu0 %v1661_v8 }
 0x415   :  { %2881 = vmatpush3.msra.mxu0 %v1661_v8  ;;  %2884 = vmatprep.mubr.f32.mxu0 %v1708_v14 }
 0x416   :  { %2882 = vmatprep.subr.mxu0 %v1659_v57 }
 0x417   :  { %2883 = vmatpush3.msra.mxu0 %v1659_v57 }
 0x418   :  { %2885 = vmatmul.mubr.f32.vlgmr.msra.gmra.mxu0 %v1711_v32 }
 0x419   :  { %2887 = vmatprep.mubr.f32.mxu0 %v1714_v6 }
 0x41c   :  { %2888 = vmatmul.mubr.f32.gmra.mxu0 %v1717_v35  ;;  %v1776_v36 = vpop.permute.xlu0 %1775 }
 0x41d   :  { %2890 = vmatprep.mubr.f32.mxu0 %v1720_v19 }
 0x420   :  { %2891 = vmatmul.mubr.f32.gmra.mxu0 %v1723_v10  ;;  %v1756_v63 = vpop.permute.xlu1 %1755  ;;  %v1771_v24 = vpop.permute.xlu0 %1770 }
 0x421   :  { %2893 = vmatprep.mubr.f32.mxu0 %v1726_v40 }
 0x424   :  { %2894 = vmatmul.mubr.f32.gmra.mxu0 %v1729_v61  ;;  %v1751_v28 = vpop.permute.xlu1 %1750  ;;  %v1766_v15 = vpop.permute.xlu0 %1765 }
 0x428   :  { %v1746_v60 = vpop.permute.xlu1 %1745  ;;  %v1761_v7 = vpop.permute.xlu0 %1760 }
 0x42c   :  { %v1741_v31 = vpop.permute.xlu1 %1740 }
 0x4b8   :  { %v2613_v2 = vpop.f32.mrf.mxu0 }
 0x4ba   :  { %v2614_v25 = vpop.f32.mrf.mxu0 }
 0x4bb   :  { %v2615_v17 = vadd.f32 %v2614_v25, %v2613_v2 }
 0x4bc   :  { %v2616_v16 = vpop.f32.mrf.mxu0 }
 0x4bd   :  { %v1845_v34 = vadd.f32 %v2615_v17, %v1741_v31  ;;  %v2150_v17 = vld [vmem:[%s4411_s10 + $0x38] sm:$0xff] }
 0x4be   :  { %v2617_v3 = vpop.f32.mrf.mxu0 }
 0x4bf   :  { %v2618_v30 = vadd.f32 %v2617_v3, %v2616_v16 }
 0x4c0   :  { %v2619_v29 = vpop.f32.mrf.mxu0 }
 0x4c1   :  { %v1850_v13 = vadd.f32 %v2618_v30, %v1746_v60  ;;  %v2270_v60 = vld [vmem:[%s4410_s11] sm:$0xf] }
 0x4c2   :  { %v2620_v18 = vpop.f32.mrf.mxu0  ;;  %v2155_v30 = vld [vmem:[%s4411_s10 + $0x60] sm:$0xff] }
 0x4c3   :  { %v2621_v41 = vadd.f32 %v2620_v18, %v2619_v29 }
 0x4c4   :  { %v2622_v20 = vpop.f32.mrf.mxu0 }
 0x4c5   :  { %v1855_v42 = vadd.f32 %v2621_v41, %v1751_v28  ;;  %v2033_v28 = vld [vmem:[%s4407_s8 + $0x8] sm:$0xff]  ;;  %v2154_v41 = vld [vmem:[%s4411_s10 + $0x58] sm:$0xff] }
 0x4c6   :  { %v2623_v38 = vpop.f32.mrf.mxu0 }
 0x4c7   :  { %v2624_v62 = vadd.f32 %v2623_v38, %v2622_v20 }
 0x4c8   :  { %v2625_v39 = vpop.f32.mrf.mxu0 }
 0x4c9   :  { %v1860_v33 = vadd.f32 %v2624_v62, %v1756_v63  ;;  %v2157_v62 = vld [vmem:[%s4411_s10 + $0x70] sm:$0xf] }
 0x4ca   :  { %v2626_v21 = vpop.f32.mrf.mxu0  ;;  %2923 = vmatprep.subr.msk.mxu0 %vm2171_vm2, %v2157_v62 }
 0x4cb   :  { %v2627_v27 = vadd.f32 %v2626_v21, %v2625_v39  ;;  %v2032_v39 = vld [vmem:[%s4407_s8] sm:$0xff]  ;;  %2924 = vmatpush3.msk.msra.mxu0 %vm2171_vm2, %v2157_v62 }
 0x4cc   :  { %v2628_v59 = vpop.f32.mrf.mxu0  ;;  %2920 = vmatprep.mubr.msk.f32.mxu1 %vm2046_vm1, %v2032_v39  ;;  %v2034_v21 = vld [vmem:[%s4408_s9] sm:$0xff] }
 0x4cd   :  { %v1865_v49 = vadd.f32 %v2627_v27, %v1761_v7  ;;  %v2152_v27 = vld [vmem:[%s4411_s10 + $0x48] sm:$0xff]  ;;  %v2145_v7 = vld [vmem:[%s4411_s10 + $0x10] sm:$0xff] }
 0x4ce   :  { %v2629_v37 = vpop.f32.mrf.mxu0 }
 0x4cf   :  { %v2630_v11 = vadd.f32 %v2629_v37, %v2628_v59  ;;  %v2035_v59 = vld [vmem:[%s4408_s9 + $0x8] sm:$0xff] }
 0x4d0   :  { %v2631_v50 = vpop.f32.mrf.mxu0 }
 0x4d1   :  { %v1870_v1 = vadd.f32 %v2630_v11, %v1766_v15  ;;  %v2272_v15 = vld [vmem:[%s4409_s1 + $0x8] sm:$0xff] }
 0x4d2   :  { %v2632_v58 = vpop.f32.mrf.mxu0  ;;  %v2156_v11 = vld [vmem:[%s4411_s10 + $0x68] sm:$0xff] }
 0x4d3   :  { %v2633_v55 = vadd.f32 %v2632_v58, %v2631_v50  ;;  %2925 = vmatprep.subr.mxu0 %v2156_v11 }
 0x4d4   :  { %v2634_v48 = vpop.f32.mrf.mxu0  ;;  %2926 = vmatpush3.msra.mxu0 %v2156_v11 }
 0x4d5   :  { %v1875_v47 = vadd.f32 %v2633_v55, %v1771_v24  ;;  %2927 = vmatprep.subr.mxu0 %v2155_v30  ;;  %v2148_v55 = vld [vmem:[%s4411_s10 + $0x28] sm:$0xff] }
 0x4d6   :  { %v2635_v4 = vpop.f32.mrf.mxu0  ;;  %2928 = vmatpush3.msra.mxu0 %v2155_v30 }
 0x4d7   :  { %v2636_v53 = vadd.f32 %v2635_v4, %v2634_v48  ;;  %2929 = vmatprep.subr.mxu0 %v2154_v41 }
 0x4d8   :  { %v2886_v46 = vpop.f32.mrf.mxu0  ;;  %2930 = vmatpush3.msra.mxu0 %v2154_v41 }
 0x4d9   :  { %v1880_v43 = vadd.f32 %v2636_v53, %v1776_v36  ;;  %v1955_v22 = vadd.f32 %v2886_v46, %v1850_v13  ;;  %v2273_v46 = vld [vmem:[%s4409_s1 + $0x10] sm:$0xf]  ;;  %v2151_v53 = vld [vmem:[%s4411_s10 + $0x40] sm:$0xff]  ;;  %v2144_v13 = vld [vmem:[%s4411_s10 + $0x8] sm:$0xff] }
 0x4da   :  { %v1949_v44 = vpop.f32.mrf.mxu0 }
 0x4db   :  { %v1950_v51 = vadd.f32 %v1949_v44, %v1845_v34  ;;  %v1989_v35 = vmax.f32 %v1955_v22, 0.0  ;;  %v4456_v44 = vmov 0.0  }
 0x4dc   :  { %v2889_v26 = vpop.f32.mrf.mxu0 }
 0x4dd   :  { %v1965_v9 = vadd.f32 %v2889_v26, %v1860_v33  ;;  %v1988_v2 = vmax.f32 %v1950_v51, 0.0  ;;  %v2271_v26 = vld [vmem:[%s4409_s1] sm:$0xff] }
 0x4de   :  { %v1959_v12 = vpop.f32.mrf.mxu0  ;;  %v2147_v33 = vld [vmem:[%s4411_s10 + $0x20] sm:$0xff] }
 0x4df   :  { %v1960_v52 = vadd.f32 %v1959_v12, %v1855_v42  ;;  %v1991_v8 = vmax.f32 %v1965_v9, 0.0  ;;  %v2153_v12 = vld [vmem:[%s4411_s10 + $0x50] sm:$0xff]  ;;  %v2143_v42 = vld [vmem:[%s4411_s10] sm:$0xff] }
 0x4e0   :  { %v2892_v23 = vpop.f32.mrf.mxu0  ;;  %2931 = vmatprep.subr.mxu0 %v2153_v12  ;;  %v2359_v51 = vld [vmem:[%s4413_s14] sm:$0x1f] }
 0x4e1   :  { %v1975_v0 = vadd.f32 %v2892_v23, %v1870_v1  ;;  %v1990_v19 = vmax.f32 %v1960_v52, 0.0  ;;  %2932 = vmatpush3.msra.mxu0 %v2153_v12  ;;  %v2149_v23 = vld [vmem:[%s4411_s10 + $0x30] sm:$0xff]  ;;  %v2146_v1 = vld [vmem:[%s4411_s10 + $0x18] sm:$0xff]  ;;  %s3003_s10 = smov 124  }
 0x4e2   :  { %v1969_v56 = vpop.f32.mrf.mxu0  ;;  %2933 = vmatprep.subr.mxu0 %v2152_v27 }
 0x4e3   :  { %v1970_v5 = vadd.f32 %v1969_v56, %v1865_v49  ;;  %v1993_v57 = vmax.f32 %v1975_v0, 0.0  ;;  %2934 = vmatpush3.msra.mxu0 %v2152_v27 }
 0x4e4   :  { %v2895_v45 = vpop.f32.mrf.mxu0  ;;  %2935 = vmatprep.subr.mxu0 %v2151_v53 }
 0x4e5   :  { %v1985_v54 = vadd.f32 %v2895_v45, %v1880_v43  ;;  %v1992_v10 = vmax.f32 %v1970_v5, 0.0  ;;  %v1997_v25 = vadd.f32 %v1993_v57, %v1989_v35  ;;  %2936 = vmatpush3.msra.mxu0 %v2151_v53 }
 0x4e6   :  { %v1979_v14 = vpop.f32.mrf.mxu0  ;;  %2937 = vmatprep.subr.mxu0 %v2150_v17 }
 0x4e7   :  { %v1995_v32 = vmax.f32 %v1985_v54, 0.0  ;;  %v1980_v6 = vadd.f32 %v1979_v14, %v1875_v47  ;;  %v1996_v29 = vadd.f32 %v1992_v10, %v1988_v2  ;;  %v2001_v20 = vmul.f32 0.5, %v1997_v25  ;;  %2938 = vmatpush3.msra.mxu0 %v2150_v17  ;;  %v2274_v47 = vld [vmem:[%s4412_s12] sm:$0xf] }
 0x4e8   :  { %2939 = vmatprep.subr.mxu0 %v2149_v23 }
 0x4e9   :  { %v1999_v40 = vadd.f32 %v1995_v32, %v1991_v8  ;;  %v1994_v61 = vmax.f32 %v1980_v6, 0.0  ;;  %v2000_v38 = vmul.f32 0.5, %v1996_v29  ;;  %2940 = vmatpush3.msra.mxu0 %v2149_v23  ;;  %v2358_v29 = vld [vmem:[%s4414_s13] sm:$0x1f] }
 0x4ea   :  { %2941 = vmatprep.subr.mxu0 %v2148_v55 }
 0x4eb   :  { %v2003_v16 = vmul.f32 0.5, %v1999_v40  ;;  %v1998_v3 = vadd.f32 %v1994_v61, %v1990_v19  ;;  %2942 = vmatpush3.msra.mxu0 %v2148_v55 }
 0x4ec   :  { %2943 = vmatprep.subr.mxu0 %v2147_v33 }
 0x4ed   :  { %v2002_v18 = vmul.f32 0.5, %v1998_v3  ;;  %2026 = vrot.lane.b32.xlu1 %v2003_v16, %s3001_s16  ;;  %2944 = vmatpush3.msra.mxu0 %v2147_v33 }
 0x4ee   :  { %2945 = vmatprep.subr.mxu0 %v2146_v1 }
 0x4ef   :  { %2024 = vrot.lane.b32.xlu0 %v2002_v18, %s3001_s16  ;;  %2946 = vmatpush3.msra.mxu0 %v2146_v1 }
 0x4f0   :  { %2947 = vmatprep.subr.mxu0 %v2145_v7 }
 0x4f1   :  { %2022 = vrot.lane.b32.xlu1 %v2001_v20, %s3001_s16  ;;  %2948 = vmatpush3.msra.mxu0 %v2145_v7 }
 0x4f2   :  { %2949 = vmatprep.subr.mxu0 %v2144_v13 }
 0x4f3   :  { %2020 = vrot.lane.b32.xlu0 %v2000_v38, %s3001_s16  ;;  %2950 = vmatpush3.msra.mxu0 %v2144_v13 }
 0x4f4   :  { %2951 = vmatprep.subr.mxu0 %v2143_v42 }
 0x4f5   :  { %2014 = vrot.lane.b32.xlu1 %v2003_v16, %s2998_s22  ;;  %2952 = vmatpush3.msra.mxu0 %v2143_v42 }
 0x4f7   :  { %2012 = vrot.lane.b32.xlu0 %v2002_v18, %s2998_s22 }
 0x4f9   :  { %2010 = vrot.lane.b32.xlu1 %v2001_v20, %s2998_s22 }
 0x4fb   :  { %2008 = vrot.lane.b32.xlu0 %v2000_v38, %s2998_s22 }
 0x4fd   :  { %2038 = vperm.xlu1 %2997, %v2034_v21  }
 0x4ff   :  { %2043 = vperm.xlu0 %2996, %v2035_v59  }
 0x55f   :  { %v2027_v37 = vpop.permute.xlu1 %2026 }
 0x560   :  { %2896 = vmatprep.subr.mxu1 %v2027_v37 }
 0x561   :  { %v2025_v36 = vpop.permute.xlu0 %2024  ;;  %2897 = vmatpush3.msra.mxu1 %v2027_v37 }
 0x562   :  { %2898 = vmatprep.subr.mxu1 %v2025_v36 }
 0x563   :  { %2899 = vmatpush3.msra.mxu1 %v2025_v36  ;;  %v2023_v50 = vpop.permute.xlu1 %2022 }
 0x564   :  { %2900 = vmatprep.subr.mxu1 %v2023_v50 }
 0x565   :  { %v2021_v63 = vpop.permute.xlu0 %2020  ;;  %2901 = vmatpush3.msra.mxu1 %v2023_v50 }
 0x566   :  { %2902 = vmatprep.subr.mxu1 %v2021_v63 }
 0x567   :  { %2903 = vmatpush3.msra.mxu1 %v2021_v63  ;;  %v2015_v58 = vpop.permute.xlu1 %2014 }
 0x568   :  { %2904 = vmatprep.subr.mxu1 %v2015_v58 }
 0x569   :  { %v2013_v48 = vpop.permute.xlu0 %2012  ;;  %2905 = vmatpush3.msra.mxu1 %v2015_v58 }
 0x56a   :  { %2906 = vmatprep.subr.mxu1 %v2013_v48 }
 0x56b   :  { %2907 = vmatpush3.msra.mxu1 %v2013_v48  ;;  %v2011_v24 = vpop.permute.xlu1 %2010 }
 0x56c   :  { %2908 = vmatprep.subr.mxu1 %v2011_v24 }
 0x56d   :  { %v2009_v4 = vpop.permute.xlu0 %2008  ;;  %2909 = vmatpush3.msra.mxu1 %v2011_v24 }
 0x56e   :  { %2910 = vmatprep.subr.mxu1 %v2009_v4 }
 0x56f   :  { %2911 = vmatpush3.msra.mxu1 %v2009_v4 }
 0x570   :  { %2912 = vmatprep.subr.mxu1 %v2003_v16 }
 0x571   :  { %2913 = vmatpush3.msra.mxu1 %v2003_v16 }
 0x572   :  { %2914 = vmatprep.subr.mxu1 %v2002_v18 }
 0x573   :  { %2915 = vmatpush3.msra.mxu1 %v2002_v18 }
 0x574   :  { %2916 = vmatprep.subr.mxu1 %v2001_v20 }
 0x575   :  { %2917 = vmatpush3.msra.mxu1 %v2001_v20 }
 0x576   :  { %2918 = vmatprep.subr.mxu1 %v2000_v38 }
 0x577   :  { %2919 = vmatpush3.msra.mxu1 %v2000_v38 }
 0x578   :  { %2921 = vmatmul.mubr.msk.f32.vlgmr.msra.gmra.mxu1 %vm2046_vm1, %v2033_v28  ;;  %2962 = vmatprep.subr.mxu1 %v4456_v44  ;;  %v2039_v0 = vpop.permute.xlu1 %2038 }
 0x579   :  { %2963 = vmatpush3.msk.msra.mxu1 %vm2171_vm2, %v2273_v46  ;;  %2968 = vmatprep.mubr.msk.f32.mxu1 %vm3002_vm3, %v4456_v44 }
 0x57a   :  { %2964 = vmatprep.subr.mxu1 %v4456_v44  ;;  %v2044_v56 = vpop.permute.xlu0 %2043 }
 0x57b   :  { %2965 = vmatpush3.msra.mxu1 %v2272_v15 }
 0x57c   :  { %2966 = vmatprep.subr.mxu1 %v4456_v44 }
 0x57d   :  { %2967 = vmatpush3.msra.mxu1 %v2271_v26 }
 0x57e   :  { %2969 = vmatmul.mubr.msk.f32.vlgmr.msra.gmra.mxu1 %vm2280_vm4, %v2270_v60  ;;  %2971 = vmatprep.subr.mxu1 %v4456_v44 }
 0x57f   :  { %2985 = vmatprep.mubr.msk.f32.mxu1 %vm3002_vm3, %v4456_v44 }
 0x638   :  { %v2922_v31 = vpop.f32.mrf.mxu1 }
 0x639   :  { %v2125_v9 = vadd.f32 %v2922_v31, %v2044_v56 }
 0x63a   :  { %v2119_v49 = vpop.f32.mrf.mxu1 }
 0x63b   :  { %v2120_v43 = vadd.f32 %v2119_v49, %v2039_v0  ;;  %v2129_v22 = vmax.f32 %v2125_v9, 0.0 }
 0x63d   :  { %v2128_v34 = vmax.f32 %v2120_v43, 0.0 }
 0x63e   :  { %v2353_v45 = vpop.f32.mrf.mxu1 }
 0x63f   :  { %v2130_v52 = vadd.f32 %v2129_v22, %v2128_v34 }
 0x640   :  { %v2970_v5 = vpop.f32.mrf.mxu1 }
 0x641   :  { %v2131_v54 = vmul.f32 0.5, %v2130_v52 }
 0x643   :  { %2135 = vrot.lane.b32.xlu0 %v2131_v54, %s3001_s16  ;;  %2133 = vrot.lane.b32.xlu1 %v2131_v54, %s2998_s22 }
 0x644   :  { %2953 = vmatprep.mubr.msk.f32.mxu0 %vm2158_vm5, %v2131_v54 }
 0x647   :  { %2139 = vrot.lane.b32.xlu0 %v2131_v54, %s3003_s10  ;;  %2137 = vrot.lane.b32.xlu1 %v2131_v54, %s3004_s23 }
 0x64b   :  { %2277 = vperm.xlu0 %2996, %v2274_v47   ;;  %2141 = vrot.lane.b32.xlu1 %v2131_v54, %s3005_s25 }
 0x64f   :  { %2362 = vperm.xlu1 %2997, %v2359_v51  }
 0x6b5   :  { %v2136_v14 = vpop.permute.xlu0 %2135  ;;  %v2134_v8 = vpop.permute.xlu1 %2133 }
 0x6b6   :  { %2954 = vmatmul.mubr.msk.f32.vlgmr.msra.gmra.mxu0 %vm2158_vm5, %v2134_v8 }
 0x6b7   :  { %2956 = vmatprep.mubr.msk.f32.mxu0 %vm2158_vm5, %v2136_v14 }
 0x6b9   :  { %v2140_v57 = vpop.permute.xlu0 %2139  ;;  %v2138_v32 = vpop.permute.xlu1 %2137 }
 0x6ba   :  { %2957 = vmatmul.mubr.msk.f32.gmra.mxu0 %vm2158_vm5, %v2138_v32 }
 0x6bb   :  { %2959 = vmatprep.mubr.msk.f32.mxu0 %vm2158_vm5, %v2140_v57 }
 0x6bd   :  { %v2142_v6 = vpop.permute.xlu1 %2141 }
 0x6be   :  { %2960 = vmatmul.mubr.msk.f32.gmra.mxu0 %vm2158_vm5, %v2142_v6 }
 0x6c6   :  { %v2278_v35 = vpop.permute.xlu0 %2277 }
 0x6c7   :  { %v2354_v19 = vadd.f32 %v2353_v45, %v2278_v35 }
 0x6c9   :  { %v2357_v10 = vmax.f32 %v2354_v19, 0.0 }
 0x6ca   :  { %v2363_v18 = vpop.permute.xlu1 %2362 }
 0x6cb   :  { %2972 = vmatpush3.msk.msra.mxu1 %vm2171_vm2, %v2357_v10 }
 0x6cc   :  { %2973 = vmatprep.subr.mxu1 %v4456_v44 }
 0x776   :  { %v2955_v40 = vpop.f32.mrf.mxu0 }
 0x778   :  { %v2241_v61 = vpop.f32.mrf.mxu0 }
 0x77a   :  { %v2958_v2 = vpop.f32.mrf.mxu0 }
 0x77c   :  { %v2251_v25 = vpop.f32.mrf.mxu0 }
 0x77e   :  { %v2961_v16 = vpop.f32.mrf.mxu0 }
 0x77f   :  { %2974 = vmatpush3.msra.mxu1 %v2961_v16 }
 0x780   :  { %v2261_v3 = vpop.f32.mrf.mxu0  ;;  %2975 = vmatprep.subr.mxu1 %v4456_v44 }
 0x781   :  { %2976 = vmatpush3.msra.mxu1 %v2261_v3 }
 0x782   :  { %2977 = vmatprep.subr.mxu1 %v4456_v44 }
 0x783   :  { %2978 = vmatpush3.msra.mxu1 %v2958_v2 }
 0x784   :  { %2979 = vmatprep.subr.mxu1 %v4456_v44 }
 0x785   :  { %2980 = vmatpush3.msra.mxu1 %v2251_v25 }
 0x786   :  { %2981 = vmatprep.subr.mxu1 %v4456_v44 }
 0x787   :  { %2982 = vmatpush3.msra.mxu1 %v2955_v40 }
 0x788   :  { %2983 = vmatprep.subr.mxu1 %v4456_v44 }
 0x789   :  { %2984 = vmatpush3.msra.mxu1 %v2241_v61 }
 0x78a   :  { %2986 = vmatmul.mubr.msk.f32.vlgmr.msra.gmra.mxu1 %vm2365_vm6, %v2358_v29 }
 0x84a   :  { %v2438_v20 = vpop.f32.mrf.mxu1 }
 0x84b   :  { %v2439_v38 = vadd.f32 %v2438_v20, %v2363_v18 }
 0x84c   :  { %v2987_v39 = vpop.f32.mrf.mxu1 }
 0x84d   :  { %2443 = vst.msk [vmem:[%s4415_s15] sm:$0x1f] %vm2442_vm7, %v2439_v38 }

</bundles_post_ra>
